<compile_context>
chip_gen: v7x
topology: tpu7x:2x2x1
jax: 0.10.0
libtpu: 0.0.40
codegen_flags: <defaults>
</compile_context>

<pallas_src>
import numpy as np
import jax
import jax.numpy as jnp
from jax.experimental import pallas as pl
from jax.experimental.pallas import tpu as pltpu

# ---- small (lane-friendly) stand-in shapes for the real 1024 / 768 / 30522 dims ----
B = 16            # batch
SEQ = 16          # question length
NOBJ = 8          # num image objects
VDIM = 128        # v_emb feature dim          (real: 1024)
QDIM = 128        # word-embedding dim         (real: 768, BERT)
HID = 128         # proj_feat dim              (real: 1024, AttFlat FLAT_OUT_SIZE)
VOCAB = 512       # token vocabulary           (real: 30522)
N_CLOSE = 8       # dataset.num_close_candidates
N_OPEN = 16       # dataset.num_open_candidates
N_IMG_TYPE = 5
N_HEADS = N_IMG_TYPE + N_OPEN + N_CLOSE          # 29 real head columns
HEAD_PAD = 128                                   # padded to a lane-dense multiple of 128

TOK_BLK = 32      # token rows gathered per grid step (DMAs in flight)
ROW_BLK = 8       # batch rows per grid step of the fused branch kernel


# ----------------------------- Pallas kernels -----------------------------------

def _embed_gather_kernel(tok_ref, table_hbm, out_ref, buf, sem):
    """Gather TOK_BLK embedding rows from the HBM table via async DMAs.

    tok_ref:   [N] int32 token ids in SMEM (scalar prefetch)
    table_hbm: [VOCAB, QDIM] f32, memory_space=pl.ANY (stays in HBM)
    out_ref:   [TOK_BLK, QDIM] VMEM output block
    buf:       [TOK_BLK, QDIM] VMEM scratch landing buffer
    sem:       [TOK_BLK] DMA semaphores
    """
    base = pl.program_id(0) * TOK_BLK
    copies = []
    for r in range(TOK_BLK):                 # all TOK_BLK row-DMAs in flight at once
        tok = tok_ref[base + r]
        cp = pltpu.make_async_copy(table_hbm.at[tok], buf.at[r], sem.at[r])
        copies.append(cp)
        cp.start()
    for cp in copies:
        cp.wait()
    out_ref[...] = buf[...]                  # dense 128-lane store


def _branch_kernel(q_ref, qv_ref, v_ref, wl_ref, wi_ref, bp_ref, wh_ref, bh_ref,
                   proj_ref, heads_ref):
    """Fused full-batch branch: masked pool(q) @ W_lang + pool(v) @ W_img -> proj,
    then one lane-dense fused head matmul producing [img_type | mask_open | mask_close | pad].
    softplus+clamp (AnswerMask, dropout = identity at eval) is applied only to the
    mask columns; img_type columns stay as raw logits."""
    q = q_ref[...]                                         # [RB, SEQ, QDIM] f32
    m = qv_ref[...]                                        # [RB, SEQ]       f32 (1=valid)
    v = v_ref[...]                                         # [RB, NOBJ, VDIM] f32

    # Mask-aware mean pool over the question (padding no longer leaks in).
    q_sum = jnp.sum(q * m[:, :, None], axis=1)             # [RB, QDIM]
    cnt = jnp.maximum(jnp.sum(m, axis=1, keepdims=True), 1.0)
    q_pool = q_sum * pl.reciprocal(cnt, approx=True)       # EUP, ~free
    # 1/NOBJ is folded into w_img at init -> plain sum pool here.
    v_pool = jnp.sum(v, axis=1)                            # [RB, VDIM]

    lang = jnp.dot(q_pool.astype(jnp.bfloat16), wl_ref[...],
                   preferred_element_type=jnp.float32)
    img = jnp.dot(v_pool.astype(jnp.bfloat16), wi_ref[...],
                  preferred_element_type=jnp.float32)
    proj = lang + img + bp_ref[...]                        # proj_feat (AttFlat biases folded)
    proj_ref[...] = proj

    # Single lane-dense fused head matmul.
    z = jnp.dot(proj.astype(jnp.bfloat16), wh_ref[...],
                preferred_element_type=jnp.float32) + bh_ref[...]   # [RB, HEAD_PAD]
    # AnswerMask epilogue only on columns >= N_IMG_TYPE (stable softplus, clamp max=1).
    sp = jnp.minimum(jnp.maximum(z, 0.0) + jnp.log1p(jnp.exp(-jnp.abs(z))), 1.0)
    col = jax.lax.broadcasted_iota(jnp.int32, z.shape, 1)
    heads_ref[...] = jnp.where(col >= N_IMG_TYPE, sp, z)


# ----------------------------- wrappers ------------------------------------------

def embed_lookup(token, table):
    """BERT word-embedding lookup as a scalar-prefetch DMA row gather."""
    b, s = token.shape
    n = b * s
    qdim = table.shape[1]
    assert n % TOK_BLK == 0, "pad token count to a multiple of TOK_BLK"
    tok = token.reshape(n).astype(jnp.int32)
    out = pl.pallas_call(
        _embed_gather_kernel,
        out_shape=jax.ShapeDtypeStruct((n, qdim), table.dtype),
        grid_spec=pltpu.PrefetchScalarGridSpec(
            num_scalar_prefetch=1,                       # token ids -> SMEM
            grid=(n // TOK_BLK,),
            in_specs=[pl.BlockSpec(memory_space=pl.ANY)],  # table stays in HBM
            out_specs=pl.BlockSpec((TOK_BLK, qdim), lambda i, tok_ref: (i, 0)),
            scratch_shapes=[pltpu.VMEM((TOK_BLK, qdim), table.dtype),
                            pltpu.SemaphoreType.DMA((TOK_BLK,))],
        ),
        compiler_params=pltpu.CompilerParams(dimension_semantics=("parallel",)),
    )(tok, table)
    return out.reshape(b, s, qdim)


def fused_branch(q_emb, q_valid, v_emb, params):
    """One fixed-shape full-batch call: returns proj_feat [B,HID] and the fused
    lane-dense head slab [B, HEAD_PAD]."""
    b = q_emb.shape[0]
    assert b % ROW_BLK == 0, "pad batch to a multiple of ROW_BLK"
    ins = (q_emb, q_valid, v_emb,
           params["w_lang"], params["w_img"], params["b_proj"],
           params["w_heads"], params["b_heads"])
    in_specs = [
        pl.BlockSpec((ROW_BLK, SEQ, QDIM), lambda i: (i, 0, 0)),
        pl.BlockSpec((ROW_BLK, SEQ), lambda i: (i, 0)),
        pl.BlockSpec((ROW_BLK, NOBJ, VDIM), lambda i: (i, 0, 0)),
        pl.BlockSpec((QDIM, HID), lambda i: (0, 0)),
        pl.BlockSpec((VDIM, HID), lambda i: (0, 0)),
        pl.BlockSpec((1, HID), lambda i: (0, 0)),
        pl.BlockSpec((HID, HEAD_PAD), lambda i: (0, 0)),
        pl.BlockSpec((1, HEAD_PAD), lambda i: (0, 0)),
    ]
    out_specs = [
        pl.BlockSpec((ROW_BLK, HID), lambda i: (i, 0)),
        pl.BlockSpec((ROW_BLK, HEAD_PAD), lambda i: (i, 0)),
    ]
    out_shape = (jax.ShapeDtypeStruct((b, HID), jnp.float32),
                 jax.ShapeDtypeStruct((b, HEAD_PAD), jnp.float32))
    return pl.pallas_call(
        _branch_kernel,
        grid=(b // ROW_BLK,),
        in_specs=in_specs,
        out_specs=out_specs,
        out_shape=out_shape,
        compiler_params=pltpu.CompilerParams(dimension_semantics=("parallel",)),
    )(*ins)


def make_mask(token):
    # (sum(|token.unsqueeze(2)|, -1) == 0).unsqueeze(1).unsqueeze(2) -> [B,1,1,S] bool
    s = jnp.sum(jnp.abs(token.astype(jnp.float32))[..., None], axis=-1)
    return (s == 0)[:, None, None, :]


def ban_forward(params, v_emb, token, answer_mask, a, answer_target):
    q_mask = make_mask(token)                               # [B,1,1,S] bool (padding)
    q_valid = (token != 0).astype(jnp.float32)              # [B,S] 1.0 for real tokens
    q_emb = embed_lookup(token, params["emb_table"])        # [B,S,QDIM]  (Pallas gather)

    # Single fixed-shape kernel over the whole batch (no answer_target dependence).
    proj, heads = fused_branch(q_emb, q_valid, v_emb, params)

    # img_type_open is shared by both branches in the PyTorch code -> all rows valid.
    img_predict = heads[:, :N_IMG_TYPE]

    # seperate_cma: host-side row split (glue only; kernel shapes are fixed).
    answer_target = np.asarray(answer_target)
    idx_close = np.where(answer_target == 0)[0]
    idx_open = np.where(answer_target != 0)[0]

    proj_open = proj[idx_open]
    proj_close = proj[idx_close]
    a_open = a[idx_open, N_CLOSE:]
    a_close = a[idx_close, :N_CLOSE]
    pred_mask_open = heads[idx_open, N_IMG_TYPE:N_IMG_TYPE + N_OPEN]
    pred_mask_close = heads[idx_close, N_IMG_TYPE + N_OPEN:N_IMG_TYPE + N_OPEN + N_CLOSE]
    answer_mask_open = answer_mask[idx_open, N_CLOSE:]
    answer_mask_close = answer_mask[idx_close, :N_CLOSE]
    _ = q_mask  # returned by seperate_cma in the reference; used downstream by classify()

    # AUTOENCODER off in this config -> reference returns the 4-tuple; extra heads
    # computed in forward are returned too for inspection.
    return (proj_close, proj_open, a_close, a_open,
            img_predict, pred_mask_open, pred_mask_close,
            answer_mask_open, answer_mask_close)


def init_params(key):
    ks = jax.random.split(key, 9)
    s = 0.05
    w_lang = jax.random.normal(ks[0], (QDIM, HID), jnp.float32) * s
    w_img = jax.random.normal(ks[1], (VDIM, HID), jnp.float32) * s
    b_lang = jax.random.normal(ks[2], (1, HID), jnp.float32) * s
    b_img = jax.random.normal(ks[3], (1, HID), jnp.float32) * s
    w_type = jax.random.normal(ks[4], (HID, N_IMG_TYPE), jnp.float32) * s
    b_type = jnp.zeros((1, N_IMG_TYPE), jnp.float32)
    w_mask_open = jax.random.normal(ks[5], (HID, N_OPEN), jnp.float32) * s
    b_mask_open = jnp.zeros((1, N_OPEN), jnp.float32)
    w_mask_close = jax.random.normal(ks[6], (HID, N_CLOSE), jnp.float32) * s
    b_mask_close = jnp.zeros((1, N_CLOSE), jnp.float32)

    # Fused lane-dense head slab: [img_type | mask_open | mask_close | zero-pad to 128].
    w_heads = jnp.concatenate(
        [w_type, w_mask_open, w_mask_close,
         jnp.zeros((HID, HEAD_PAD - N_HEADS), jnp.float32)], axis=1)
    b_heads = jnp.concatenate(
        [b_type, b_mask_open, b_mask_close,
         jnp.zeros((1, HEAD_PAD - N_HEADS), jnp.float32)], axis=1)

    return dict(
        emb_table=jax.random.normal(ks[7], (VOCAB, QDIM), jnp.float32) * s,
        # bf16 weights for the MXU (f32 accumulation in-kernel); 1/NOBJ mean scale
        # folded into w_img; AttFlat biases folded into one b_proj.
        w_lang=w_lang.astype(jnp.bfloat16),
        w_img=(w_img / float(NOBJ)).astype(jnp.bfloat16),
        b_proj=(b_lang + b_img),
        w_heads=w_heads.astype(jnp.bfloat16),
        b_heads=b_heads,
    )


if __name__ == "__main__":
    key = jax.random.PRNGKey(0)
    kp, kv, kt, km, ka = jax.random.split(key, 5)
    params = init_params(kp)

    v_emb = jax.random.normal(kv, (B, NOBJ, VDIM), jnp.float32)
    token = jax.random.randint(kt, (B, SEQ), 1, VOCAB).astype(jnp.int32)
    token = token.at[:, SEQ - 3:].set(0)            # trailing padding -> q_mask True
    answer_mask = jax.random.uniform(km, (B, N_CLOSE + N_OPEN), jnp.float32)
    a = jax.random.uniform(ka, (B, N_CLOSE + N_OPEN), jnp.float32)
    answer_target = np.array([0, 1] * (B // 2), dtype=np.int32)   # half close, half open

    outs = ban_forward(params, v_emb, token, answer_mask, a, answer_target)
    outs = jax.block_until_ready(outs)
    print("KERNEL_OK")
</pallas_src>

<mosaic_0001>
module attributes {stable_mosaic.version = 11 : i64} {
  func.func @_embed_gather_kernel(%arg0: i32, %arg1: memref<256xi32, #tpu.memory_space<smem>>, %arg2: memref<512x128xf32, #tpu.memory_space<any>>, %arg3: memref<32x128xf32, #tpu.memory_space<vmem>>, %arg4: memref<32x128xf32, #tpu.memory_space<vmem>>, %arg5: memref<32x!tpu.dma_semaphore, #tpu.memory_space<semaphore_mem>>) attributes {dimension_semantics = [#tpu.dimension_semantics<parallel>], iteration_bounds = array<i64: 8>, scalar_prefetch = 1 : i64, scratch_operands = 2 : i64, tpu.core_type = #tpu.core_type<tc>, window_params = [{}, {transform_indices = @transform_1, window_bounds = array<i64: 32, 128>}]} {
    %c32_i32 = arith.constant 32 : i32
    %0 = arith.muli %arg0, %c32_i32 : i32
    %c0_i32 = arith.constant 0 : i32
    %1 = arith.addi %0, %c0_i32 : i32
    %2 = arith.index_cast %1 : i32 to index
    %3 = memref.load %arg1[%2] : memref<256xi32, #tpu.memory_space<smem>>
    %c0_i32_0 = arith.constant 0 : i32
    %c0_i32_1 = arith.constant 0 : i32
    %c0_i32_2 = arith.constant 0 : i32
    %4 = tpu.memref_slice %arg2[%3, %c0_i32_2] : memref<512x128xf32, #tpu.memory_space<any>> -> memref<1x128xf32, #tpu.memory_space<any>>
    %5 = tpu.memref_squeeze %4 : memref<1x128xf32, #tpu.memory_space<any>> -> memref<128xf32, #tpu.memory_space<any>>
    %c0_i32_3 = arith.constant 0 : i32
    %6 = tpu.memref_slice %arg4[%c0_i32_0, %c0_i32_3] : memref<32x128xf32, #tpu.memory_space<vmem>> -> memref<1x128xf32, #tpu.memory_space<vmem>>
    %7 = tpu.memref_squeeze %6 : memref<1x128xf32, #tpu.memory_space<vmem>> -> memref<128xf32, #tpu.memory_space<vmem>>
    %8 = tpu.memref_slice %arg5[%c0_i32_1] : memref<32x!tpu.dma_semaphore, #tpu.memory_space<semaphore_mem>> -> memref<1x!tpu.dma_semaphore, #tpu.memory_space<semaphore_mem>>
    %9 = tpu.memref_squeeze %8 : memref<1x!tpu.dma_semaphore, #tpu.memory_space<semaphore_mem>> -> memref<!tpu.dma_semaphore, #tpu.memory_space<semaphore_mem>>
    tpu.enqueue_dma source(%5 : memref<128xf32, #tpu.memory_space<any>>) target(%7 : memref<128xf32, #tpu.memory_space<vmem>>) target_semaphore(%9 : memref<!tpu.dma_semaphore, #tpu.memory_space<semaphore_mem>>)
    %c1_i32 = arith.constant 1 : i32
    %10 = arith.addi %0, %c1_i32 : i32
    %11 = arith.index_cast %10 : i32 to index
    %12 = memref.load %arg1[%11] : memref<256xi32, #tpu.memory_space<smem>>
    %c1_i32_4 = arith.constant 1 : i32
    %c1_i32_5 = arith.constant 1 : i32
    %c0_i32_6 = arith.constant 0 : i32
    %13 = tpu.memref_slice %arg2[%12, %c0_i32_6] : memref<512x128xf32, #tpu.memory_space<any>> -> memref<1x128xf32, #tpu.memory_space<any>>
    %14 = tpu.memref_squeeze %13 : memref<1x128xf32, #tpu.memory_space<any>> -> memref<128xf32, #tpu.memory_space<any>>
    %c0_i32_7 = arith.constant 0 : i32
    %15 = tpu.memref_slice %arg4[%c1_i32_4, %c0_i32_7] : memref<32x128xf32, #tpu.memory_space<vmem>> -> memref<1x128xf32, #tpu.memory_space<vmem>>
    %16 = tpu.memref_squeeze %15 : memref<1x128xf32, #tpu.memory_space<vmem>> -> memref<128xf32, #tpu.memory_space<vmem>>
    %17 = tpu.memref_slice %arg5[%c1_i32_5] : memref<32x!tpu.dma_semaphore, #tpu.memory_space<semaphore_mem>> -> memref<1x!tpu.dma_semaphore, #tpu.memory_space<semaphore_mem>>
    %18 = tpu.memref_squeeze %17 : memref<1x!tpu.dma_semaphore, #tpu.memory_space<semaphore_mem>> -> memref<!tpu.dma_semaphore, #tpu.memory_space<semaphore_mem>>
    tpu.enqueue_dma source(%14 : memref<128xf32, #tpu.memory_space<any>>) target(%16 : memref<128xf32, #tpu.memory_space<vmem>>) target_semaphore(%18 : memref<!tpu.dma_semaphore, #tpu.memory_space<semaphore_mem>>)
    %c2_i32 = arith.constant 2 : i32
    %19 = arith.addi %0, %c2_i32 : i32
    %20 = arith.index_cast %19 : i32 to index
    %21 = memref.load %arg1[%20] : memref<256xi32, #tpu.memory_space<smem>>
    %c2_i32_8 = arith.constant 2 : i32
    %c2_i32_9 = arith.constant 2 : i32
    %c0_i32_10 = arith.constant 0 : i32
    %22 = tpu.memref_slice %arg2[%21, %c0_i32_10] : memref<512x128xf32, #tpu.memory_space<any>> -> memref<1x128xf32, #tpu.memory_space<any>>
    %23 = tpu.memref_squeeze %22 : memref<1x128xf32, #tpu.memory_space<any>> -> memref<128xf32, #tpu.memory_space<any>>
    %c0_i32_11 = arith.constant 0 : i32
    %24 = tpu.memref_slice %arg4[%c2_i32_8, %c0_i32_11] : memref<32x128xf32, #tpu.memory_space<vmem>> -> memref<1x128xf32, #tpu.memory_space<vmem>>
    %25 = tpu.memref_squeeze %24 : memref<1x128xf32, #tpu.memory_space<vmem>> -> memref<128xf32, #tpu.memory_space<vmem>>
    %26 = tpu.memref_slice %arg5[%c2_i32_9] : memref<32x!tpu.dma_semaphore, #tpu.memory_space<semaphore_mem>> -> memref<1x!tpu.dma_semaphore, #tpu.memory_space<semaphore_mem>>
    %27 = tpu.memref_squeeze %26 : memref<1x!tpu.dma_semaphore, #tpu.memory_space<semaphore_mem>> -> memref<!tpu.dma_semaphore, #tpu.memory_space<semaphore_mem>>
    tpu.enqueue_dma source(%23 : memref<128xf32, #tpu.memory_space<any>>) target(%25 : memref<128xf32, #tpu.memory_space<vmem>>) target_semaphore(%27 : memref<!tpu.dma_semaphore, #tpu.memory_space<semaphore_mem>>)
    %c3_i32 = arith.constant 3 : i32
    %28 = arith.addi %0, %c3_i32 : i32
    %29 = arith.index_cast %28 : i32 to index
    %30 = memref.load %arg1[%29] : memref<256xi32, #tpu.memory_space<smem>>
    %c3_i32_12 = arith.constant 3 : i32
    %c3_i32_13 = arith.constant 3 : i32
    %c0_i32_14 = arith.constant 0 : i32
    %31 = tpu.memref_slice %arg2[%30, %c0_i32_14] : memref<512x128xf32, #tpu.memory_space<any>> -> memref<1x128xf32, #tpu.memory_space<any>>
    %32 = tpu.memref_squeeze %31 : memref<1x128xf32, #tpu.memory_space<any>> -> memref<128xf32, #tpu.memory_space<any>>
    %c0_i32_15 = arith.constant 0 : i32
    %33 = tpu.memref_slice %arg4[%c3_i32_12, %c0_i32_15] : memref<32x128xf32, #tpu.memory_space<vmem>> -> memref<1x128xf32, #tpu.memory_space<vmem>>
    %34 = tpu.memref_squeeze %33 : memref<1x128xf32, #tpu.memory_space<vmem>> -> memref<128xf32, #tpu.memory_space<vmem>>
    %35 = tpu.memref_slice %arg5[%c3_i32_13] : memref<32x!tpu.dma_semaphore, #tpu.memory_space<semaphore_mem>> -> memref<1x!tpu.dma_semaphore, #tpu.memory_space<semaphore_mem>>
    %36 = tpu.memref_squeeze %35 : memref<1x!tpu.dma_semaphore, #tpu.memory_space<semaphore_mem>> -> memref<!tpu.dma_semaphore, #tpu.memory_space<semaphore_mem>>
    tpu.enqueue_dma source(%32 : memref<128xf32, #tpu.memory_space<any>>) target(%34 : memref<128xf32, #tpu.memory_space<vmem>>) target_semaphore(%36 : memref<!tpu.dma_semaphore, #tpu.memory_space<semaphore_mem>>)
    %c4_i32 = arith.constant 4 : i32
    %37 = arith.addi %0, %c4_i32 : i32
    %38 = arith.index_cast %37 : i32 to index
    %39 = memref.load %arg1[%38] : memref<256xi32, #tpu.memory_space<smem>>
    %c4_i32_16 = arith.constant 4 : i32
    %c4_i32_17 = arith.constant 4 : i32
    %c0_i32_18 = arith.constant 0 : i32
    %40 = tpu.memref_slice %arg2[%39, %c0_i32_18] : memref<512x128xf32, #tpu.memory_space<any>> -> memref<1x128xf32, #tpu.memory_space<any>>
    %41 = tpu.memref_squeeze %40 : memref<1x128xf32, #tpu.memory_space<any>> -> memref<128xf32, #tpu.memory_space<any>>
    %c0_i32_19 = arith.constant 0 : i32
    %42 = tpu.memref_slice %arg4[%c4_i32_16, %c0_i32_19] : memref<32x128xf32, #tpu.memory_space<vmem>> -> memref<1x128xf32, #tpu.memory_space<vmem>>
    %43 = tpu.memref_squeeze %42 : memref<1x128xf32, #tpu.memory_space<vmem>> -> memref<128xf32, #tpu.memory_space<vmem>>
    %44 = tpu.memref_slice %arg5[%c4_i32_17] : memref<32x!tpu.dma_semaphore, #tpu.memory_space<semaphore_mem>> -> memref<1x!tpu.dma_semaphore, #tpu.memory_space<semaphore_mem>>
    %45 = tpu.memref_squeeze %44 : memref<1x!tpu.dma_semaphore, #tpu.memory_space<semaphore_mem>> -> memref<!tpu.dma_semaphore, #tpu.memory_space<semaphore_mem>>
    tpu.enqueue_dma source(%41 : memref<128xf32, #tpu.memory_space<any>>) target(%43 : memref<128xf32, #tpu.memory_space<vmem>>) target_semaphore(%45 : memref<!tpu.dma_semaphore, #tpu.memory_space<semaphore_mem>>)
    %c5_i32 = arith.constant 5 : i32
    %46 = arith.addi %0, %c5_i32 : i32
    %47 = arith.index_cast %46 : i32 to index
    %48 = memref.load %arg1[%47] : memref<256xi32, #tpu.memory_space<smem>>
    %c5_i32_20 = arith.constant 5 : i32
    %c5_i32_21 = arith.constant 5 : i32
    %c0_i32_22 = arith.constant 0 : i32
    %49 = tpu.memref_slice %arg2[%48, %c0_i32_22] : memref<512x128xf32, #tpu.memory_space<any>> -> memref<1x128xf32, #tpu.memory_space<any>>
    %50 = tpu.memref_squeeze %49 : memref<1x128xf32, #tpu.memory_space<any>> -> memref<128xf32, #tpu.memory_space<any>>
    %c0_i32_23 = arith.constant 0 : i32
    %51 = tpu.memref_slice %arg4[%c5_i32_20, %c0_i32_23] : memref<32x128xf32, #tpu.memory_space<vmem>> -> memref<1x128xf32, #tpu.memory_space<vmem>>
    %52 = tpu.memref_squeeze %51 : memref<1x128xf32, #tpu.memory_space<vmem>> -> memref<128xf32, #tpu.memory_space<vmem>>
    %53 = tpu.memref_slice %arg5[%c5_i32_21] : memref<32x!tpu.dma_semaphore, #tpu.memory_space<semaphore_mem>> -> memref<1x!tpu.dma_semaphore, #tpu.memory_space<semaphore_mem>>
    %54 = tpu.memref_squeeze %53 : memref<1x!tpu.dma_semaphore, #tpu.memory_space<semaphore_mem>> -> memref<!tpu.dma_semaphore, #tpu.memory_space<semaphore_mem>>
    tpu.enqueue_dma source(%50 : memref<128xf32, #tpu.memory_space<any>>) target(%52 : memref<128xf32, #tpu.memory_space<vmem>>) target_semaphore(%54 : memref<!tpu.dma_semaphore, #tpu.memory_space<semaphore_mem>>)
    %c6_i32 = arith.constant 6 : i32
    %55 = arith.addi %0, %c6_i32 : i32
    %56 = arith.index_cast %55 : i32 to index
    %57 = memref.load %arg1[%56] : memref<256xi32, #tpu.memory_space<smem>>
    %c6_i32_24 = arith.constant 6 : i32
    %c6_i32_25 = arith.constant 6 : i32
    %c0_i32_26 = arith.constant 0 : i32
    %58 = tpu.memref_slice %arg2[%57, %c0_i32_26] : memref<512x128xf32, #tpu.memory_space<any>> -> memref<1x128xf32, #tpu.memory_space<any>>
    %59 = tpu.memref_squeeze %58 : memref<1x128xf32, #tpu.memory_space<any>> -> memref<128xf32, #tpu.memory_space<any>>
    %c0_i32_27 = arith.constant 0 : i32
    %60 = tpu.memref_slice %arg4[%c6_i32_24, %c0_i32_27] : memref<32x128xf32, #tpu.memory_space<vmem>> -> memref<1x128xf32, #tpu.memory_space<vmem>>
    %61 = tpu.memref_squeeze %60 : memref<1x128xf32, #tpu.memory_space<vmem>> -> memref<128xf32, #tpu.memory_space<vmem>>
    %62 = tpu.memref_slice %arg5[%c6_i32_25] : memref<32x!tpu.dma_semaphore, #tpu.memory_space<semaphore_mem>> -> memref<1x!tpu.dma_semaphore, #tpu.memory_space<semaphore_mem>>
    %63 = tpu.memref_squeeze %62 : memref<1x!tpu.dma_semaphore, #tpu.memory_space<semaphore_mem>> -> memref<!tpu.dma_semaphore, #tpu.memory_space<semaphore_mem>>
    tpu.enqueue_dma source(%59 : memref<128xf32, #tpu.memory_space<any>>) target(%61 : memref<128xf32, #tpu.memory_space<vmem>>) target_semaphore(%63 : memref<!tpu.dma_semaphore, #tpu.memory_space<semaphore_mem>>)
    %c7_i32 = arith.constant 7 : i32
    %64 = arith.addi %0, %c7_i32 : i32
    %65 = arith.index_cast %64 : i32 to index
    %66 = memref.load %arg1[%65] : memref<256xi32, #tpu.memory_space<smem>>
    %c7_i32_28 = arith.constant 7 : i32
    %c7_i32_29 = arith.constant 7 : i32
    %c0_i32_30 = arith.constant 0 : i32
    %67 = tpu.memref_slice %arg2[%66, %c0_i32_30] : memref<512x128xf32, #tpu.memory_space<any>> -> memref<1x128xf32, #tpu.memory_space<any>>
    %68 = tpu.memref_squeeze %67 : memref<1x128xf32, #tpu.memory_space<any>> -> memref<128xf32, #tpu.memory_space<any>>
    %c0_i32_31 = arith.constant 0 : i32
    %69 = tpu.memref_slice %arg4[%c7_i32_28, %c0_i32_31] : memref<32x128xf32, #tpu.memory_space<vmem>> -> memref<1x128xf32, #tpu.memory_space<vmem>>
    %70 = tpu.memref_squeeze %69 : memref<1x128xf32, #tpu.memory_space<vmem>> -> memref<128xf32, #tpu.memory_space<vmem>>
    %71 = tpu.memref_slice %arg5[%c7_i32_29] : memref<32x!tpu.dma_semaphore, #tpu.memory_space<semaphore_mem>> -> memref<1x!tpu.dma_semaphore, #tpu.memory_space<semaphore_mem>>
    %72 = tpu.memref_squeeze %71 : memref<1x!tpu.dma_semaphore, #tpu.memory_space<semaphore_mem>> -> memref<!tpu.dma_semaphore, #tpu.memory_space<semaphore_mem>>
    tpu.enqueue_dma source(%68 : memref<128xf32, #tpu.memory_space<any>>) target(%70 : memref<128xf32, #tpu.memory_space<vmem>>) target_semaphore(%72 : memref<!tpu.dma_semaphore, #tpu.memory_space<semaphore_mem>>)
    %c8_i32 = arith.constant 8 : i32
    %73 = arith.addi %0, %c8_i32 : i32
    %74 = arith.index_cast %73 : i32 to index
    %75 = memref.load %arg1[%74] : memref<256xi32, #tpu.memory_space<smem>>
    %c8_i32_32 = arith.constant 8 : i32
    %c8_i32_33 = arith.constant 8 : i32
    %c0_i32_34 = arith.constant 0 : i32
    %76 = tpu.memref_slice %arg2[%75, %c0_i32_34] : memref<512x128xf32, #tpu.memory_space<any>> -> memref<1x128xf32, #tpu.memory_space<any>>
    %77 = tpu.memref_squeeze %76 : memref<1x128xf32, #tpu.memory_space<any>> -> memref<128xf32, #tpu.memory_space<any>>
    %c0_i32_35 = arith.constant 0 : i32
    %78 = tpu.memref_slice %arg4[%c8_i32_32, %c0_i32_35] : memref<32x128xf32, #tpu.memory_space<vmem>> -> memref<1x128xf32, #tpu.memory_space<vmem>>
    %79 = tpu.memref_squeeze %78 : memref<1x128xf32, #tpu.memory_space<vmem>> -> memref<128xf32, #tpu.memory_space<vmem>>
    %80 = tpu.memref_slice %arg5[%c8_i32_33] : memref<32x!tpu.dma_semaphore, #tpu.memory_space<semaphore_mem>> -> memref<1x!tpu.dma_semaphore, #tpu.memory_space<semaphore_mem>>
    %81 = tpu.memref_squeeze %80 : memref<1x!tpu.dma_semaphore, #tpu.memory_space<semaphore_mem>> -> memref<!tpu.dma_semaphore, #tpu.memory_space<semaphore_mem>>
    tpu.enqueue_dma source(%77 : memref<128xf32, #tpu.memory_space<any>>) target(%79 : memref<128xf32, #tpu.memory_space<vmem>>) target_semaphore(%81 : memref<!tpu.dma_semaphore, #tpu.memory_space<semaphore_mem>>)
    %c9_i32 = arith.constant 9 : i32
    %82 = arith.addi %0, %c9_i32 : i32
    %83 = arith.index_cast %82 : i32 to index
    %84 = memref.load %arg1[%83] : memref<256xi32, #tpu.memory_space<smem>>
    %c9_i32_36 = arith.constant 9 : i32
    %c9_i32_37 = arith.constant 9 : i32
    %c0_i32_38 = arith.constant 0 : i32
    %85 = tpu.memref_slice %arg2[%84, %c0_i32_38] : memref<512x128xf32, #tpu.memory_space<any>> -> memref<1x128xf32, #tpu.memory_space<any>>
    %86 = tpu.memref_squeeze %85 : memref<1x128xf32, #tpu.memory_space<any>> -> memref<128xf32, #tpu.memory_space<any>>
    %c0_i32_39 = arith.constant 0 : i32
    %87 = tpu.memref_slice %arg4[%c9_i32_36, %c0_i32_39] : memref<32x128xf32, #tpu.memory_space<vmem>> -> memref<1x128xf32, #tpu.memory_space<vmem>>
    %88 = tpu.memref_squeeze %87 : memref<1x128xf32, #tpu.memory_space<vmem>> -> memref<128xf32, #tpu.memory_space<vmem>>
    %89 = tpu.memref_slice %arg5[%c9_i32_37] : memref<32x!tpu.dma_semaphore, #tpu.memory_space<semaphore_mem>> -> memref<1x!tpu.dma_semaphore, #tpu.memory_space<semaphore_mem>>
    %90 = tpu.memref_squeeze %89 : memref<1x!tpu.dma_semaphore, #tpu.memory_space<semaphore_mem>> -> memref<!tpu.dma_semaphore, #tpu.memory_space<semaphore_mem>>
    tpu.enqueue_dma source(%86 : memref<128xf32, #tpu.memory_space<any>>) target(%88 : memref<128xf32, #tpu.memory_space<vmem>>) target_semaphore(%90 : memref<!tpu.dma_semaphore, #tpu.memory_space<semaphore_mem>>)
    %c10_i32 = arith.constant 10 : i32
    %91 = arith.addi %0, %c10_i32 : i32
    %92 = arith.index_cast %91 : i32 to index
    %93 = memref.load %arg1[%92] : memref<256xi32, #tpu.memory_space<smem>>
    %c10_i32_40 = arith.constant 10 : i32
    %c10_i32_41 = arith.constant 10 : i32
    %c0_i32_42 = arith.constant 0 : i32
    %94 = tpu.memref_slice %arg2[%93, %c0_i32_42] : memref<512x128xf32, #tpu.memory_space<any>> -> memref<1x128xf32, #tpu.memory_space<any>>
    %95 = tpu.memref_squeeze %94 : memref<1x128xf32, #tpu.memory_space<any>> -> memref<128xf32, #tpu.memory_space<any>>
    %c0_i32_43 = arith.constant 0 : i32
    %96 = tpu.memref_slice %arg4[%c10_i32_40, %c0_i32_43] : memref<32x128xf32, #tpu.memory_space<vmem>> -> memref<1x128xf32, #tpu.memory_space<vmem>>
    %97 = tpu.memref_squeeze %96 : memref<1x128xf32, #tpu.memory_space<vmem>> -> memref<128xf32, #tpu.memory_space<vmem>>
    %98 = tpu.memref_slice %arg5[%c10_i32_41] : memref<32x!tpu.dma_semaphore, #tpu.memory_space<semaphore_mem>> -> memref<1x!tpu.dma_semaphore, #tpu.memory_space<semaphore_mem>>
    %99 = tpu.memref_squeeze %98 : memref<1x!tpu.dma_semaphore, #tpu.memory_space<semaphore_mem>> -> memref<!tpu.dma_semaphore, #tpu.memory_space<semaphore_mem>>
    tpu.enqueue_dma source(%95 : memref<128xf32, #tpu.memory_space<any>>) target(%97 : memref<128xf32, #tpu.memory_space<vmem>>) target_semaphore(%99 : memref<!tpu.dma_semaphore, #tpu.memory_space<semaphore_mem>>)
    %c11_i32 = arith.constant 11 : i32
    %100 = arith.addi %0, %c11_i32 : i32
    %101 = arith.index_cast %100 : i32 to index
    %102 = memref.load %arg1[%101] : memref<256xi32, #tpu.memory_space<smem>>
    %c11_i32_44 = arith.constant 11 : i32
    %c11_i32_45 = arith.constant 11 : i32
    %c0_i32_46 = arith.constant 0 : i32
    %103 = tpu.memref_slice %arg2[%102, %c0_i32_46] : memref<512x128xf32, #tpu.memory_space<any>> -> memref<1x128xf32, #tpu.memory_space<any>>
    %104 = tpu.memref_squeeze %103 : memref<1x128xf32, #tpu.memory_space<any>> -> memref<128xf32, #tpu.memory_space<any>>
    %c0_i32_47 = arith.constant 0 : i32
    %105 = tpu.memref_slice %arg4[%c11_i32_44, %c0_i32_47] : memref<32x128xf32, #tpu.memory_space<vmem>> -> memref<1x128xf32, #tpu.memory_space<vmem>>
    %106 = tpu.memref_squeeze %105 : memref<1x128xf32, #tpu.memory_space<vmem>> -> memref<128xf32, #tpu.memory_space<vmem>>
    %107 = tpu.memref_slice %arg5[%c11_i32_45] : memref<32x!tpu.dma_semaphore, #tpu.memory_space<semaphore_mem>> -> memref<1x!tpu.dma_semaphore, #tpu.memory_space<semaphore_mem>>
    %108 = tpu.memref_squeeze %107 : memref<1x!tpu.dma_semaphore, #tpu.memory_space<semaphore_mem>> -> memref<!tpu.dma_semaphore, #tpu.memory_space<semaphore_mem>>
    tpu.enqueue_dma source(%104 : memref<128xf32, #tpu.memory_space<any>>) target(%106 : memref<128xf32, #tpu.memory_space<vmem>>) target_semaphore(%108 : memref<!tpu.dma_semaphore, #tpu.memory_space<semaphore_mem>>)
    %c12_i32 = arith.constant 12 : i32
    %109 = arith.addi %0, %c12_i32 : i32
    %110 = arith.index_cast %109 : i32 to index
    %111 = memref.load %arg1[%110] : memref<256xi32, #tpu.memory_space<smem>>
    %c12_i32_48 = arith.constant 12 : i32
    %c12_i32_49 = arith.constant 12 : i32
    %c0_i32_50 = arith.constant 0 : i32
    %112 = tpu.memref_slice %arg2[%111, %c0_i32_50] : memref<512x128xf32, #tpu.memory_space<any>> -> memref<1x128xf32, #tpu.memory_space<any>>
    %113 = tpu.memref_squeeze %112 : memref<1x128xf32, #tpu.memory_space<any>> -> memref<128xf32, #tpu.memory_space<any>>
    %c0_i32_51 = arith.constant 0 : i32
    %114 = tpu.memref_slice %arg4[%c12_i32_48, %c0_i32_51] : memref<32x128xf32, #tpu.memory_space<vmem>> -> memref<1x128xf32, #tpu.memory_space<vmem>>
    %115 = tpu.memref_squeeze %114 : memref<1x128xf32, #tpu.memory_space<vmem>> -> memref<128xf32, #tpu.memory_space<vmem>>
    %116 = tpu.memref_slice %arg5[%c12_i32_49] : memref<32x!tpu.dma_semaphore, #tpu.memory_space<semaphore_mem>> -> memref<1x!tpu.dma_semaphore, #tpu.memory_space<semaphore_mem>>
    %117 = tpu.memref_squeeze %116 : memref<1x!tpu.dma_semaphore, #tpu.memory_space<semaphore_mem>> -> memref<!tpu.dma_semaphore, #tpu.memory_space<semaphore_mem>>
    tpu.enqueue_dma source(%113 : memref<128xf32, #tpu.memory_space<any>>) target(%115 : memref<128xf32, #tpu.memory_space<vmem>>) target_semaphore(%117 : memref<!tpu.dma_semaphore, #tpu.memory_space<semaphore_mem>>)
    %c13_i32 = arith.constant 13 : i32
    %118 = arith.addi %0, %c13_i32 : i32
    %119 = arith.index_cast %118 : i32 to index
    %120 = memref.load %arg1[%119] : memref<256xi32, #tpu.memory_space<smem>>
    %c13_i32_52 = arith.constant 13 : i32
    %c13_i32_53 = arith.constant 13 : i32
    %c0_i32_54 = arith.constant 0 : i32
    %121 = tpu.memref_slice %arg2[%120, %c0_i32_54] : memref<512x128xf32, #tpu.memory_space<any>> -> memref<1x128xf32, #tpu.memory_space<any>>
    %122 = tpu.memref_squeeze %121 : memref<1x128xf32, #tpu.memory_space<any>> -> memref<128xf32, #tpu.memory_space<any>>
    %c0_i32_55 = arith.constant 0 : i32
    %123 = tpu.memref_slice %arg4[%c13_i32_52, %c0_i32_55] : memref<32x128xf32, #tpu.memory_space<vmem>> -> memref<1x128xf32, #tpu.memory_space<vmem>>
    %124 = tpu.memref_squeeze %123 : memref<1x128xf32, #tpu.memory_space<vmem>> -> memref<128xf32, #tpu.memory_space<vmem>>
    %125 = tpu.memref_slice %arg5[%c13_i32_53] : memref<32x!tpu.dma_semaphore, #tpu.memory_space<semaphore_mem>> -> memref<1x!tpu.dma_semaphore, #tpu.memory_space<semaphore_mem>>
    %126 = tpu.memref_squeeze %125 : memref<1x!tpu.dma_semaphore, #tpu.memory_space<semaphore_mem>> -> memref<!tpu.dma_semaphore, #tpu.memory_space<semaphore_mem>>
    tpu.enqueue_dma source(%122 : memref<128xf32, #tpu.memory_space<any>>) target(%124 : memref<128xf32, #tpu.memory_space<vmem>>) target_semaphore(%126 : memref<!tpu.dma_semaphore, #tpu.memory_space<semaphore_mem>>)
    %c14_i32 = arith.constant 14 : i32
    %127 = arith.addi %0, %c14_i32 : i32
    %128 = arith.index_cast %127 : i32 to index
    %129 = memref.load %arg1[%128] : memref<256xi32, #tpu.memory_space<smem>>
    %c14_i32_56 = arith.constant 14 : i32
    %c14_i32_57 = arith.constant 14 : i32
    %c0_i32_58 = arith.constant 0 : i32
    %130 = tpu.memref_slice %arg2[%129, %c0_i32_58] : memref<512x128xf32, #tpu.memory_space<any>> -> memref<1x128xf32, #tpu.memory_space<any>>
    %131 = tpu.memref_squeeze %130 : memref<1x128xf32, #tpu.memory_space<any>> -> memref<128xf32, #tpu.memory_space<any>>
    %c0_i32_59 = arith.constant 0 : i32
    %132 = tpu.memref_slice %arg4[%c14_i32_56, %c0_i32_59] : memref<32x128xf32, #tpu.memory_space<vmem>> -> memref<1x128xf32, #tpu.memory_space<vmem>>
    %133 = tpu.memref_squeeze %132 : memref<1x128xf32, #tpu.memory_space<vmem>> -> memref<128xf32, #tpu.memory_space<vmem>>
    %134 = tpu.memref_slice %arg5[%c14_i32_57] : memref<32x!tpu.dma_semaphore, #tpu.memory_space<semaphore_mem>> -> memref<1x!tpu.dma_semaphore, #tpu.memory_space<semaphore_mem>>
    %135 = tpu.memref_squeeze %134 : memref<1x!tpu.dma_semaphore, #tpu.memory_space<semaphore_mem>> -> memref<!tpu.dma_semaphore, #tpu.memory_space<semaphore_mem>>
    tpu.enqueue_dma source(%131 : memref<128xf32, #tpu.memory_space<any>>) target(%133 : memref<128xf32, #tpu.memory_space<vmem>>) target_semaphore(%135 : memref<!tpu.dma_semaphore, #tpu.memory_space<semaphore_mem>>)
    %c15_i32 = arith.constant 15 : i32
    %136 = arith.addi %0, %c15_i32 : i32
    %137 = arith.index_cast %136 : i32 to index
    %138 = memref.load %arg1[%137] : memref<256xi32, #tpu.memory_space<smem>>
    %c15_i32_60 = arith.constant 15 : i32
    %c15_i32_61 = arith.constant 15 : i32
    %c0_i32_62 = arith.constant 0 : i32
    %139 = tpu.memref_slice %arg2[%138, %c0_i32_62] : memref<512x128xf32, #tpu.memory_space<any>> -> memref<1x128xf32, #tpu.memory_space<any>>
    %140 = tpu.memref_squeeze %139 : memref<1x128xf32, #tpu.memory_space<any>> -> memref<128xf32, #tpu.memory_space<any>>
    %c0_i32_63 = arith.constant 0 : i32
    %141 = tpu.memref_slice %arg4[%c15_i32_60, %c0_i32_63] : memref<32x128xf32, #tpu.memory_space<vmem>> -> memref<1x128xf32, #tpu.memory_space<vmem>>
    %142 = tpu.memref_squeeze %141 : memref<1x128xf32, #tpu.memory_space<vmem>> -> memref<128xf32, #tpu.memory_space<vmem>>
    %143 = tpu.memref_slice %arg5[%c15_i32_61] : memref<32x!tpu.dma_semaphore, #tpu.memory_space<semaphore_mem>> -> memref<1x!tpu.dma_semaphore, #tpu.memory_space<semaphore_mem>>
    %144 = tpu.memref_squeeze %143 : memref<1x!tpu.dma_semaphore, #tpu.memory_space<semaphore_mem>> -> memref<!tpu.dma_semaphore, #tpu.memory_space<semaphore_mem>>
    tpu.enqueue_dma source(%140 : memref<128xf32, #tpu.memory_space<any>>) target(%142 : memref<128xf32, #tpu.memory_space<vmem>>) target_semaphore(%144 : memref<!tpu.dma_semaphore, #tpu.memory_space<semaphore_mem>>)
    %c16_i32 = arith.constant 16 : i32
    %145 = arith.addi %0, %c16_i32 : i32
    %146 = arith.index_cast %145 : i32 to index
    %147 = memref.load %arg1[%146] : memref<256xi32, #tpu.memory_space<smem>>
    %c16_i32_64 = arith.constant 16 : i32
    %c16_i32_65 = arith.constant 16 : i32
    %c0_i32_66 = arith.constant 0 : i32
    %148 = tpu.memref_slice %arg2[%147, %c0_i32_66] : memref<512x128xf32, #tpu.memory_space<any>> -> memref<1x128xf32, #tpu.memory_space<any>>
    %149 = tpu.memref_squeeze %148 : memref<1x128xf32, #tpu.memory_space<any>> -> memref<128xf32, #tpu.memory_space<any>>
    %c0_i32_67 = arith.constant 0 : i32
    %150 = tpu.memref_slice %arg4[%c16_i32_64, %c0_i32_67] : memref<32x128xf32, #tpu.memory_space<vmem>> -> memref<1x128xf32, #tpu.memory_space<vmem>>
    %151 = tpu.memref_squeeze %150 : memref<1x128xf32, #tpu.memory_space<vmem>> -> memref<128xf32, #tpu.memory_space<vmem>>
    %152 = tpu.memref_slice %arg5[%c16_i32_65] : memref<32x!tpu.dma_semaphore, #tpu.memory_space<semaphore_mem>> -> memref<1x!tpu.dma_semaphore, #tpu.memory_space<semaphore_mem>>
    %153 = tpu.memref_squeeze %152 : memref<1x!tpu.dma_semaphore, #tpu.memory_space<semaphore_mem>> -> memref<!tpu.dma_semaphore, #tpu.memory_space<semaphore_mem>>
    tpu.enqueue_dma source(%149 : memref<128xf32, #tpu.memory_space<any>>) target(%151 : memref<128xf32, #tpu.memory_space<vmem>>) target_semaphore(%153 : memref<!tpu.dma_semaphore, #tpu.memory_space<semaphore_mem>>)
    %c17_i32 = arith.constant 17 : i32
    %154 = arith.addi %0, %c17_i32 : i32
    %155 = arith.index_cast %154 : i32 to index
    %156 = memref.load %arg1[%155] : memref<256xi32, #tpu.memory_space<smem>>
    %c17_i32_68 = arith.constant 17 : i32
    %c17_i32_69 = arith.constant 17 : i32
    %c0_i32_70 = arith.constant 0 : i32
    %157 = tpu.memref_slice %arg2[%156, %c0_i32_70] : memref<512x128xf32, #tpu.memory_space<any>> -> memref<1x128xf32, #tpu.memory_space<any>>
    %158 = tpu.memref_squeeze %157 : memref<1x128xf32, #tpu.memory_space<any>> -> memref<128xf32, #tpu.memory_space<any>>
    %c0_i32_71 = arith.constant 0 : i32
    %159 = tpu.memref_slice %arg4[%c17_i32_68, %c0_i32_71] : memref<32x128xf32, #tpu.memory_space<vmem>> -> memref<1x128xf32, #tpu.memory_space<vmem>>
    %160 = tpu.memref_squeeze %159 : memref<1x128xf32, #tpu.memory_space<vmem>> -> memref<128xf32, #tpu.memory_space<vmem>>
    %161 = tpu.memref_slice %arg5[%c17_i32_69] : memref<32x!tpu.dma_semaphore, #tpu.memory_space<semaphore_mem>> -> memref<1x!tpu.dma_semaphore, #tpu.memory_space<semaphore_mem>>
    %162 = tpu.memref_squeeze %161 : memref<1x!tpu.dma_semaphore, #tpu.memory_space<semaphore_mem>> -> memref<!tpu.dma_semaphore, #tpu.memory_space<semaphore_mem>>
    tpu.enqueue_dma source(%158 : memref<128xf32, #tpu.memory_space<any>>) target(%160 : memref<128xf32, #tpu.memory_space<vmem>>) target_semaphore(%162 : memref<!tpu.dma_semaphore, #tpu.memory_space<semaphore_mem>>)
    %c18_i32 = arith.constant 18 : i32
    %163 = arith.addi %0, %c18_i32 : i32
    %164 = arith.index_cast %163 : i32 to index
    %165 = memref.load %arg1[%164] : memref<256xi32, #tpu.memory_space<smem>>
    %c18_i32_72 = arith.constant 18 : i32
    %c18_i32_73 = arith.constant 18 : i32
    %c0_i32_74 = arith.constant 0 : i32
    %166 = tpu.memref_slice %arg2[%165, %c0_i32_74] : memref<512x128xf32, #tpu.memory_space<any>> -> memref<1x128xf32, #tpu.memory_space<any>>
    %167 = tpu.memref_squeeze %166 : memref<1x128xf32, #tpu.memory_space<any>> -> memref<128xf32, #tpu.memory_space<any>>
    %c0_i32_75 = arith.constant 0 : i32
    %168 = tpu.memref_slice %arg4[%c18_i32_72, %c0_i32_75] : memref<32x128xf32, #tpu.memory_space<vmem>> -> memref<1x128xf32, #tpu.memory_space<vmem>>
    %169 = tpu.memref_squeeze %168 : memref<1x128xf32, #tpu.memory_space<vmem>> -> memref<128xf32, #tpu.memory_space<vmem>>
    %170 = tpu.memref_slice %arg5[%c18_i32_73] : memref<32x!tpu.dma_semaphore, #tpu.memory_space<semaphore_mem>> -> memref<1x!tpu.dma_semaphore, #tpu.memory_space<semaphore_mem>>
    %171 = tpu.memref_squeeze %170 : memref<1x!tpu.dma_semaphore, #tpu.memory_space<semaphore_mem>> -> memref<!tpu.dma_semaphore, #tpu.memory_space<semaphore_mem>>
    tpu.enqueue_dma source(%167 : memref<128xf32, #tpu.memory_space<any>>) target(%169 : memref<128xf32, #tpu.memory_space<vmem>>) target_semaphore(%171 : memref<!tpu.dma_semaphore, #tpu.memory_space<semaphore_mem>>)
    %c19_i32 = arith.constant 19 : i32
    %172 = arith.addi %0, %c19_i32 : i32
    %173 = arith.index_cast %172 : i32 to index
    %174 = memref.load %arg1[%173] : memref<256xi32, #tpu.memory_space<smem>>
    %c19_i32_76 = arith.constant 19 : i32
    %c19_i32_77 = arith.constant 19 : i32
    %c0_i32_78 = arith.constant 0 : i32
    %175 = tpu.memref_slice %arg2[%174, %c0_i32_78] : memref<512x128xf32, #tpu.memory_space<any>> -> memref<1x128xf32, #tpu.memory_space<any>>
    %176 = tpu.memref_squeeze %175 : memref<1x128xf32, #tpu.memory_space<any>> -> memref<128xf32, #tpu.memory_space<any>>
    %c0_i32_79 = arith.constant 0 : i32
    %177 = tpu.memref_slice %arg4[%c19_i32_76, %c0_i32_79] : memref<32x128xf32, #tpu.memory_space<vmem>> -> memref<1x128xf32, #tpu.memory_space<vmem>>
    %178 = tpu.memref_squeeze %177 : memref<1x128xf32, #tpu.memory_space<vmem>> -> memref<128xf32, #tpu.memory_space<vmem>>
    %179 = tpu.memref_slice %arg5[%c19_i32_77] : memref<32x!tpu.dma_semaphore, #tpu.memory_space<semaphore_mem>> -> memref<1x!tpu.dma_semaphore, #tpu.memory_space<semaphore_mem>>
    %180 = tpu.memref_squeeze %179 : memref<1x!tpu.dma_semaphore, #tpu.memory_space<semaphore_mem>> -> memref<!tpu.dma_semaphore, #tpu.memory_space<semaphore_mem>>
    tpu.enqueue_dma source(%176 : memref<128xf32, #tpu.memory_space<any>>) target(%178 : memref<128xf32, #tpu.memory_space<vmem>>) target_semaphore(%180 : memref<!tpu.dma_semaphore, #tpu.memory_space<semaphore_mem>>)
    %c20_i32 = arith.constant 20 : i32
    %181 = arith.addi %0, %c20_i32 : i32
    %182 = arith.index_cast %181 : i32 to index
    %183 = memref.load %arg1[%182] : memref<256xi32, #tpu.memory_space<smem>>
    %c20_i32_80 = arith.constant 20 : i32
    %c20_i32_81 = arith.constant 20 : i32
    %c0_i32_82 = arith.constant 0 : i32
    %184 = tpu.memref_slice %arg2[%183, %c0_i32_82] : memref<512x128xf32, #tpu.memory_space<any>> -> memref<1x128xf32, #tpu.memory_space<any>>
    %185 = tpu.memref_squeeze %184 : memref<1x128xf32, #tpu.memory_space<any>> -> memref<128xf32, #tpu.memory_space<any>>
    %c0_i32_83 = arith.constant 0 : i32
    %186 = tpu.memref_slice %arg4[%c20_i32_80, %c0_i32_83] : memref<32x128xf32, #tpu.memory_space<vmem>> -> memref<1x128xf32, #tpu.memory_space<vmem>>
    %187 = tpu.memref_squeeze %186 : memref<1x128xf32, #tpu.memory_space<vmem>> -> memref<128xf32, #tpu.memory_space<vmem>>
    %188 = tpu.memref_slice %arg5[%c20_i32_81] : memref<32x!tpu.dma_semaphore, #tpu.memory_space<semaphore_mem>> -> memref<1x!tpu.dma_semaphore, #tpu.memory_space<semaphore_mem>>
    %189 = tpu.memref_squeeze %188 : memref<1x!tpu.dma_semaphore, #tpu.memory_space<semaphore_mem>> -> memref<!tpu.dma_semaphore, #tpu.memory_space<semaphore_mem>>
    tpu.enqueue_dma source(%185 : memref<128xf32, #tpu.memory_space<any>>) target(%187 : memref<128xf32, #tpu.memory_space<vmem>>) target_semaphore(%189 : memref<!tpu.dma_semaphore, #tpu.memory_space<semaphore_mem>>)
    %c21_i32 = arith.constant 21 : i32
    %190 = arith.addi %0, %c21_i32 : i32
    %191 = arith.index_cast %190 : i32 to index
    %192 = memref.load %arg1[%191] : memref<256xi32, #tpu.memory_space<smem>>
    %c21_i32_84 = arith.constant 21 : i32
    %c21_i32_85 = arith.constant 21 : i32
    %c0_i32_86 = arith.constant 0 : i32
    %193 = tpu.memref_slice %arg2[%192, %c0_i32_86] : memref<512x128xf32, #tpu.memory_space<any>> -> memref<1x128xf32, #tpu.memory_space<any>>
    %194 = tpu.memref_squeeze %193 : memref<1x128xf32, #tpu.memory_space<any>> -> memref<128xf32, #tpu.memory_space<any>>
    %c0_i32_87 = arith.constant 0 : i32
    %195 = tpu.memref_slice %arg4[%c21_i32_84, %c0_i32_87] : memref<32x128xf32, #tpu.memory_space<vmem>> -> memref<1x128xf32, #tpu.memory_space<vmem>>
    %196 = tpu.memref_squeeze %195 : memref<1x128xf32, #tpu.memory_space<vmem>> -> memref<128xf32, #tpu.memory_space<vmem>>
    %197 = tpu.memref_slice %arg5[%c21_i32_85] : memref<32x!tpu.dma_semaphore, #tpu.memory_space<semaphore_mem>> -> memref<1x!tpu.dma_semaphore, #tpu.memory_space<semaphore_mem>>
    %198 = tpu.memref_squeeze %197 : memref<1x!tpu.dma_semaphore, #tpu.memory_space<semaphore_mem>> -> memref<!tpu.dma_semaphore, #tpu.memory_space<semaphore_mem>>
    tpu.enqueue_dma source(%194 : memref<128xf32, #tpu.memory_space<any>>) target(%196 : memref<128xf32, #tpu.memory_space<vmem>>) target_semaphore(%198 : memref<!tpu.dma_semaphore, #tpu.memory_space<semaphore_mem>>)
    %c22_i32 = arith.constant 22 : i32
    %199 = arith.addi %0, %c22_i32 : i32
    %200 = arith.index_cast %199 : i32 to index
    %201 = memref.load %arg1[%200] : memref<256xi32, #tpu.memory_space<smem>>
    %c22_i32_88 = arith.constant 22 : i32
    %c22_i32_89 = arith.constant 22 : i32
    %c0_i32_90 = arith.constant 0 : i32
    %202 = tpu.memref_slice %arg2[%201, %c0_i32_90] : memref<512x128xf32, #tpu.memory_space<any>> -> memref<1x128xf32, #tpu.memory_space<any>>
    %203 = tpu.memref_squeeze %202 : memref<1x128xf32, #tpu.memory_space<any>> -> memref<128xf32, #tpu.memory_space<any>>
    %c0_i32_91 = arith.constant 0 : i32
    %204 = tpu.memref_slice %arg4[%c22_i32_88, %c0_i32_91] : memref<32x128xf32, #tpu.memory_space<vmem>> -> memref<1x128xf32, #tpu.memory_space<vmem>>
    %205 = tpu.memref_squeeze %204 : memref<1x128xf32, #tpu.memory_space<vmem>> -> memref<128xf32, #tpu.memory_space<vmem>>
    %206 = tpu.memref_slice %arg5[%c22_i32_89] : memref<32x!tpu.dma_semaphore, #tpu.memory_space<semaphore_mem>> -> memref<1x!tpu.dma_semaphore, #tpu.memory_space<semaphore_mem>>
    %207 = tpu.memref_squeeze %206 : memref<1x!tpu.dma_semaphore, #tpu.memory_space<semaphore_mem>> -> memref<!tpu.dma_semaphore, #tpu.memory_space<semaphore_mem>>
    tpu.enqueue_dma source(%203 : memref<128xf32, #tpu.memory_space<any>>) target(%205 : memref<128xf32, #tpu.memory_space<vmem>>) target_semaphore(%207 : memref<!tpu.dma_semaphore, #tpu.memory_space<semaphore_mem>>)
    %c23_i32 = arith.constant 23 : i32
    %208 = arith.addi %0, %c23_i32 : i32
    %209 = arith.index_cast %208 : i32 to index
    %210 = memref.load %arg1[%209] : memref<256xi32, #tpu.memory_space<smem>>
    %c23_i32_92 = arith.constant 23 : i32
    %c23_i32_93 = arith.constant 23 : i32
    %c0_i32_94 = arith.constant 0 : i32
    %211 = tpu.memref_slice %arg2[%210, %c0_i32_94] : memref<512x128xf32, #tpu.memory_space<any>> -> memref<1x128xf32, #tpu.memory_space<any>>
    %212 = tpu.memref_squeeze %211 : memref<1x128xf32, #tpu.memory_space<any>> -> memref<128xf32, #tpu.memory_space<any>>
    %c0_i32_95 = arith.constant 0 : i32
    %213 = tpu.memref_slice %arg4[%c23_i32_92, %c0_i32_95] : memref<32x128xf32, #tpu.memory_space<vmem>> -> memref<1x128xf32, #tpu.memory_space<vmem>>
    %214 = tpu.memref_squeeze %213 : memref<1x128xf32, #tpu.memory_space<vmem>> -> memref<128xf32, #tpu.memory_space<vmem>>
    %215 = tpu.memref_slice %arg5[%c23_i32_93] : memref<32x!tpu.dma_semaphore, #tpu.memory_space<semaphore_mem>> -> memref<1x!tpu.dma_semaphore, #tpu.memory_space<semaphore_mem>>
    %216 = tpu.memref_squeeze %215 : memref<1x!tpu.dma_semaphore, #tpu.memory_space<semaphore_mem>> -> memref<!tpu.dma_semaphore, #tpu.memory_space<semaphore_mem>>
    tpu.enqueue_dma source(%212 : memref<128xf32, #tpu.memory_space<any>>) target(%214 : memref<128xf32, #tpu.memory_space<vmem>>) target_semaphore(%216 : memref<!tpu.dma_semaphore, #tpu.memory_space<semaphore_mem>>)
    %c24_i32 = arith.constant 24 : i32
    %217 = arith.addi %0, %c24_i32 : i32
    %218 = arith.index_cast %217 : i32 to index
    %219 = memref.load %arg1[%218] : memref<256xi32, #tpu.memory_space<smem>>
    %c24_i32_96 = arith.constant 24 : i32
    %c24_i32_97 = arith.constant 24 : i32
    %c0_i32_98 = arith.constant 0 : i32
    %220 = tpu.memref_slice %arg2[%219, %c0_i32_98] : memref<512x128xf32, #tpu.memory_space<any>> -> memref<1x128xf32, #tpu.memory_space<any>>
    %221 = tpu.memref_squeeze %220 : memref<1x128xf32, #tpu.memory_space<any>> -> memref<128xf32, #tpu.memory_space<any>>
    %c0_i32_99 = arith.constant 0 : i32
    %222 = tpu.memref_slice %arg4[%c24_i32_96, %c0_i32_99] : memref<32x128xf32, #tpu.memory_space<vmem>> -> memref<1x128xf32, #tpu.memory_space<vmem>>
    %223 = tpu.memref_squeeze %222 : memref<1x128xf32, #tpu.memory_space<vmem>> -> memref<128xf32, #tpu.memory_space<vmem>>
    %224 = tpu.memref_slice %arg5[%c24_i32_97] : memref<32x!tpu.dma_semaphore, #tpu.memory_space<semaphore_mem>> -> memref<1x!tpu.dma_semaphore, #tpu.memory_space<semaphore_mem>>
    %225 = tpu.memref_squeeze %224 : memref<1x!tpu.dma_semaphore, #tpu.memory_space<semaphore_mem>> -> memref<!tpu.dma_semaphore, #tpu.memory_space<semaphore_mem>>
    tpu.enqueue_dma source(%221 : memref<128xf32, #tpu.memory_space<any>>) target(%223 : memref<128xf32, #tpu.memory_space<vmem>>) target_semaphore(%225 : memref<!tpu.dma_semaphore, #tpu.memory_space<semaphore_mem>>)
    %c25_i32 = arith.constant 25 : i32
    %226 = arith.addi %0, %c25_i32 : i32
    %227 = arith.index_cast %226 : i32 to index
    %228 = memref.load %arg1[%227] : memref<256xi32, #tpu.memory_space<smem>>
    %c25_i32_100 = arith.constant 25 : i32
    %c25_i32_101 = arith.constant 25 : i32
    %c0_i32_102 = arith.constant 0 : i32
    %229 = tpu.memref_slice %arg2[%228, %c0_i32_102] : memref<512x128xf32, #tpu.memory_space<any>> -> memref<1x128xf32, #tpu.memory_space<any>>
    %230 = tpu.memref_squeeze %229 : memref<1x128xf32, #tpu.memory_space<any>> -> memref<128xf32, #tpu.memory_space<any>>
    %c0_i32_103 = arith.constant 0 : i32
    %231 = tpu.memref_slice %arg4[%c25_i32_100, %c0_i32_103] : memref<32x128xf32, #tpu.memory_space<vmem>> -> memref<1x128xf32, #tpu.memory_space<vmem>>
    %232 = tpu.memref_squeeze %231 : memref<1x128xf32, #tpu.memory_space<vmem>> -> memref<128xf32, #tpu.memory_space<vmem>>
    %233 = tpu.memref_slice %arg5[%c25_i32_101] : memref<32x!tpu.dma_semaphore, #tpu.memory_space<semaphore_mem>> -> memref<1x!tpu.dma_semaphore, #tpu.memory_space<semaphore_mem>>
    %234 = tpu.memref_squeeze %233 : memref<1x!tpu.dma_semaphore, #tpu.memory_space<semaphore_mem>> -> memref<!tpu.dma_semaphore, #tpu.memory_space<semaphore_mem>>
    tpu.enqueue_dma source(%230 : memref<128xf32, #tpu.memory_space<any>>) target(%232 : memref<128xf32, #tpu.memory_space<vmem>>) target_semaphore(%234 : memref<!tpu.dma_semaphore, #tpu.memory_space<semaphore_mem>>)
    %c26_i32 = arith.constant 26 : i32
    %235 = arith.addi %0, %c26_i32 : i32
    %236 = arith.index_cast %235 : i32 to index
    %237 = memref.load %arg1[%236] : memref<256xi32, #tpu.memory_space<smem>>
    %c26_i32_104 = arith.constant 26 : i32
    %c26_i32_105 = arith.constant 26 : i32
    %c0_i32_106 = arith.constant 0 : i32
    %238 = tpu.memref_slice %arg2[%237, %c0_i32_106] : memref<512x128xf32, #tpu.memory_space<any>> -> memref<1x128xf32, #tpu.memory_space<any>>
    %239 = tpu.memref_squeeze %238 : memref<1x128xf32, #tpu.memory_space<any>> -> memref<128xf32, #tpu.memory_space<any>>
    %c0_i32_107 = arith.constant 0 : i32
    %240 = tpu.memref_slice %arg4[%c26_i32_104, %c0_i32_107] : memref<32x128xf32, #tpu.memory_space<vmem>> -> memref<1x128xf32, #tpu.memory_space<vmem>>
    %241 = tpu.memref_squeeze %240 : memref<1x128xf32, #tpu.memory_space<vmem>> -> memref<128xf32, #tpu.memory_space<vmem>>
    %242 = tpu.memref_slice %arg5[%c26_i32_105] : memref<32x!tpu.dma_semaphore, #tpu.memory_space<semaphore_mem>> -> memref<1x!tpu.dma_semaphore, #tpu.memory_space<semaphore_mem>>
    %243 = tpu.memref_squeeze %242 : memref<1x!tpu.dma_semaphore, #tpu.memory_space<semaphore_mem>> -> memref<!tpu.dma_semaphore, #tpu.memory_space<semaphore_mem>>
    tpu.enqueue_dma source(%239 : memref<128xf32, #tpu.memory_space<any>>) target(%241 : memref<128xf32, #tpu.memory_space<vmem>>) target_semaphore(%243 : memref<!tpu.dma_semaphore, #tpu.memory_space<semaphore_mem>>)
    %c27_i32 = arith.constant 27 : i32
    %244 = arith.addi %0, %c27_i32 : i32
    %245 = arith.index_cast %244 : i32 to index
    %246 = memref.load %arg1[%245] : memref<256xi32, #tpu.memory_space<smem>>
    %c27_i32_108 = arith.constant 27 : i32
    %c27_i32_109 = arith.constant 27 : i32
    %c0_i32_110 = arith.constant 0 : i32
    %247 = tpu.memref_slice %arg2[%246, %c0_i32_110] : memref<512x128xf32, #tpu.memory_space<any>> -> memref<1x128xf32, #tpu.memory_space<any>>
    %248 = tpu.memref_squeeze %247 : memref<1x128xf32, #tpu.memory_space<any>> -> memref<128xf32, #tpu.memory_space<any>>
    %c0_i32_111 = arith.constant 0 : i32
    %249 = tpu.memref_slice %arg4[%c27_i32_108, %c0_i32_111] : memref<32x128xf32, #tpu.memory_space<vmem>> -> memref<1x128xf32, #tpu.memory_space<vmem>>
    %250 = tpu.memref_squeeze %249 : memref<1x128xf32, #tpu.memory_space<vmem>> -> memref<128xf32, #tpu.memory_space<vmem>>
    %251 = tpu.memref_slice %arg5[%c27_i32_109] : memref<32x!tpu.dma_semaphore, #tpu.memory_space<semaphore_mem>> -> memref<1x!tpu.dma_semaphore, #tpu.memory_space<semaphore_mem>>
    %252 = tpu.memref_squeeze %251 : memref<1x!tpu.dma_semaphore, #tpu.memory_space<semaphore_mem>> -> memref<!tpu.dma_semaphore, #tpu.memory_space<semaphore_mem>>
    tpu.enqueue_dma source(%248 : memref<128xf32, #tpu.memory_space<any>>) target(%250 : memref<128xf32, #tpu.memory_space<vmem>>) target_semaphore(%252 : memref<!tpu.dma_semaphore, #tpu.memory_space<semaphore_mem>>)
    %c28_i32 = arith.constant 28 : i32
    %253 = arith.addi %0, %c28_i32 : i32
    %254 = arith.index_cast %253 : i32 to index
    %255 = memref.load %arg1[%254] : memref<256xi32, #tpu.memory_space<smem>>
    %c28_i32_112 = arith.constant 28 : i32
    %c28_i32_113 = arith.constant 28 : i32
    %c0_i32_114 = arith.constant 0 : i32
    %256 = tpu.memref_slice %arg2[%255, %c0_i32_114] : memref<512x128xf32, #tpu.memory_space<any>> -> memref<1x128xf32, #tpu.memory_space<any>>
    %257 = tpu.memref_squeeze %256 : memref<1x128xf32, #tpu.memory_space<any>> -> memref<128xf32, #tpu.memory_space<any>>
    %c0_i32_115 = arith.constant 0 : i32
    %258 = tpu.memref_slice %arg4[%c28_i32_112, %c0_i32_115] : memref<32x128xf32, #tpu.memory_space<vmem>> -> memref<1x128xf32, #tpu.memory_space<vmem>>
    %259 = tpu.memref_squeeze %258 : memref<1x128xf32, #tpu.memory_space<vmem>> -> memref<128xf32, #tpu.memory_space<vmem>>
    %260 = tpu.memref_slice %arg5[%c28_i32_113] : memref<32x!tpu.dma_semaphore, #tpu.memory_space<semaphore_mem>> -> memref<1x!tpu.dma_semaphore, #tpu.memory_space<semaphore_mem>>
    %261 = tpu.memref_squeeze %260 : memref<1x!tpu.dma_semaphore, #tpu.memory_space<semaphore_mem>> -> memref<!tpu.dma_semaphore, #tpu.memory_space<semaphore_mem>>
    tpu.enqueue_dma source(%257 : memref<128xf32, #tpu.memory_space<any>>) target(%259 : memref<128xf32, #tpu.memory_space<vmem>>) target_semaphore(%261 : memref<!tpu.dma_semaphore, #tpu.memory_space<semaphore_mem>>)
    %c29_i32 = arith.constant 29 : i32
    %262 = arith.addi %0, %c29_i32 : i32
    %263 = arith.index_cast %262 : i32 to index
    %264 = memref.load %arg1[%263] : memref<256xi32, #tpu.memory_space<smem>>
    %c29_i32_116 = arith.constant 29 : i32
    %c29_i32_117 = arith.constant 29 : i32
    %c0_i32_118 = arith.constant 0 : i32
    %265 = tpu.memref_slice %arg2[%264, %c0_i32_118] : memref<512x128xf32, #tpu.memory_space<any>> -> memref<1x128xf32, #tpu.memory_space<any>>
    %266 = tpu.memref_squeeze %265 : memref<1x128xf32, #tpu.memory_space<any>> -> memref<128xf32, #tpu.memory_space<any>>
    %c0_i32_119 = arith.constant 0 : i32
    %267 = tpu.memref_slice %arg4[%c29_i32_116, %c0_i32_119] : memref<32x128xf32, #tpu.memory_space<vmem>> -> memref<1x128xf32, #tpu.memory_space<vmem>>
    %268 = tpu.memref_squeeze %267 : memref<1x128xf32, #tpu.memory_space<vmem>> -> memref<128xf32, #tpu.memory_space<vmem>>
    %269 = tpu.memref_slice %arg5[%c29_i32_117] : memref<32x!tpu.dma_semaphore, #tpu.memory_space<semaphore_mem>> -> memref<1x!tpu.dma_semaphore, #tpu.memory_space<semaphore_mem>>
    %270 = tpu.memref_squeeze %269 : memref<1x!tpu.dma_semaphore, #tpu.memory_space<semaphore_mem>> -> memref<!tpu.dma_semaphore, #tpu.memory_space<semaphore_mem>>
    tpu.enqueue_dma source(%266 : memref<128xf32, #tpu.memory_space<any>>) target(%268 : memref<128xf32, #tpu.memory_space<vmem>>) target_semaphore(%270 : memref<!tpu.dma_semaphore, #tpu.memory_space<semaphore_mem>>)
    %c30_i32 = arith.constant 30 : i32
    %271 = arith.addi %0, %c30_i32 : i32
    %272 = arith.index_cast %271 : i32 to index
    %273 = memref.load %arg1[%272] : memref<256xi32, #tpu.memory_space<smem>>
    %c30_i32_120 = arith.constant 30 : i32
    %c30_i32_121 = arith.constant 30 : i32
    %c0_i32_122 = arith.constant 0 : i32
    %274 = tpu.memref_slice %arg2[%273, %c0_i32_122] : memref<512x128xf32, #tpu.memory_space<any>> -> memref<1x128xf32, #tpu.memory_space<any>>
    %275 = tpu.memref_squeeze %274 : memref<1x128xf32, #tpu.memory_space<any>> -> memref<128xf32, #tpu.memory_space<any>>
    %c0_i32_123 = arith.constant 0 : i32
    %276 = tpu.memref_slice %arg4[%c30_i32_120, %c0_i32_123] : memref<32x128xf32, #tpu.memory_space<vmem>> -> memref<1x128xf32, #tpu.memory_space<vmem>>
    %277 = tpu.memref_squeeze %276 : memref<1x128xf32, #tpu.memory_space<vmem>> -> memref<128xf32, #tpu.memory_space<vmem>>
    %278 = tpu.memref_slice %arg5[%c30_i32_121] : memref<32x!tpu.dma_semaphore, #tpu.memory_space<semaphore_mem>> -> memref<1x!tpu.dma_semaphore, #tpu.memory_space<semaphore_mem>>
    %279 = tpu.memref_squeeze %278 : memref<1x!tpu.dma_semaphore, #tpu.memory_space<semaphore_mem>> -> memref<!tpu.dma_semaphore, #tpu.memory_space<semaphore_mem>>
    tpu.enqueue_dma source(%275 : memref<128xf32, #tpu.memory_space<any>>) target(%277 : memref<128xf32, #tpu.memory_space<vmem>>) target_semaphore(%279 : memref<!tpu.dma_semaphore, #tpu.memory_space<semaphore_mem>>)
    %c31_i32 = arith.constant 31 : i32
    %280 = arith.addi %0, %c31_i32 : i32
    %281 = arith.index_cast %280 : i32 to index
    %282 = memref.load %arg1[%281] : memref<256xi32, #tpu.memory_space<smem>>
    %c31_i32_124 = arith.constant 31 : i32
    %c31_i32_125 = arith.constant 31 : i32
    %c0_i32_126 = arith.constant 0 : i32
    %283 = tpu.memref_slice %arg2[%282, %c0_i32_126] : memref<512x128xf32, #tpu.memory_space<any>> -> memref<1x128xf32, #tpu.memory_space<any>>
    %284 = tpu.memref_squeeze %283 : memref<1x128xf32, #tpu.memory_space<any>> -> memref<128xf32, #tpu.memory_space<any>>
    %c0_i32_127 = arith.constant 0 : i32
    %285 = tpu.memref_slice %arg4[%c31_i32_124, %c0_i32_127] : memref<32x128xf32, #tpu.memory_space<vmem>> -> memref<1x128xf32, #tpu.memory_space<vmem>>
    %286 = tpu.memref_squeeze %285 : memref<1x128xf32, #tpu.memory_space<vmem>> -> memref<128xf32, #tpu.memory_space<vmem>>
    %287 = tpu.memref_slice %arg5[%c31_i32_125] : memref<32x!tpu.dma_semaphore, #tpu.memory_space<semaphore_mem>> -> memref<1x!tpu.dma_semaphore, #tpu.memory_space<semaphore_mem>>
    %288 = tpu.memref_squeeze %287 : memref<1x!tpu.dma_semaphore, #tpu.memory_space<semaphore_mem>> -> memref<!tpu.dma_semaphore, #tpu.memory_space<semaphore_mem>>
    tpu.enqueue_dma source(%284 : memref<128xf32, #tpu.memory_space<any>>) target(%286 : memref<128xf32, #tpu.memory_space<vmem>>) target_semaphore(%288 : memref<!tpu.dma_semaphore, #tpu.memory_space<semaphore_mem>>)
    %c0_i32_128 = arith.constant 0 : i32
    %c0_i32_129 = arith.constant 0 : i32
    %c0_i32_130 = arith.constant 0 : i32
    %289 = tpu.memref_slice %arg2[%3, %c0_i32_130] : memref<512x128xf32, #tpu.memory_space<any>> -> memref<1x128xf32, #tpu.memory_space<any>>
    %290 = tpu.memref_squeeze %289 : memref<1x128xf32, #tpu.memory_space<any>> -> memref<128xf32, #tpu.memory_space<any>>
    %c0_i32_131 = arith.constant 0 : i32
    %291 = tpu.memref_slice %arg4[%c0_i32_128, %c0_i32_131] : memref<32x128xf32, #tpu.memory_space<vmem>> -> memref<1x128xf32, #tpu.memory_space<vmem>>
    %292 = tpu.memref_squeeze %291 : memref<1x128xf32, #tpu.memory_space<vmem>> -> memref<128xf32, #tpu.memory_space<vmem>>
    %293 = tpu.memref_slice %arg5[%c0_i32_129] : memref<32x!tpu.dma_semaphore, #tpu.memory_space<semaphore_mem>> -> memref<1x!tpu.dma_semaphore, #tpu.memory_space<semaphore_mem>>
    %294 = tpu.memref_squeeze %293 : memref<1x!tpu.dma_semaphore, #tpu.memory_space<semaphore_mem>> -> memref<!tpu.dma_semaphore, #tpu.memory_space<semaphore_mem>>
    tpu.wait_dma2 semaphore(%294 : memref<!tpu.dma_semaphore, #tpu.memory_space<semaphore_mem>>) src(%290 : memref<128xf32, #tpu.memory_space<any>>) dst(%292 : memref<128xf32, #tpu.memory_space<vmem>>)
    %c1_i32_132 = arith.constant 1 : i32
    %c1_i32_133 = arith.constant 1 : i32
    %c0_i32_134 = arith.constant 0 : i32
    %295 = tpu.memref_slice %arg2[%12, %c0_i32_134] : memref<512x128xf32, #tpu.memory_space<any>> -> memref<1x128xf32, #tpu.memory_space<any>>
    %296 = tpu.memref_squeeze %295 : memref<1x128xf32, #tpu.memory_space<any>> -> memref<128xf32, #tpu.memory_space<any>>
    %c0_i32_135 = arith.constant 0 : i32
    %297 = tpu.memref_slice %arg4[%c1_i32_132, %c0_i32_135] : memref<32x128xf32, #tpu.memory_space<vmem>> -> memref<1x128xf32, #tpu.memory_space<vmem>>
    %298 = tpu.memref_squeeze %297 : memref<1x128xf32, #tpu.memory_space<vmem>> -> memref<128xf32, #tpu.memory_space<vmem>>
    %299 = tpu.memref_slice %arg5[%c1_i32_133] : memref<32x!tpu.dma_semaphore, #tpu.memory_space<semaphore_mem>> -> memref<1x!tpu.dma_semaphore, #tpu.memory_space<semaphore_mem>>
    %300 = tpu.memref_squeeze %299 : memref<1x!tpu.dma_semaphore, #tpu.memory_space<semaphore_mem>> -> memref<!tpu.dma_semaphore, #tpu.memory_space<semaphore_mem>>
    tpu.wait_dma2 semaphore(%300 : memref<!tpu.dma_semaphore, #tpu.memory_space<semaphore_mem>>) src(%296 : memref<128xf32, #tpu.memory_space<any>>) dst(%298 : memref<128xf32, #tpu.memory_space<vmem>>)
    %c2_i32_136 = arith.constant 2 : i32
    %c2_i32_137 = arith.constant 2 : i32
    %c0_i32_138 = arith.constant 0 : i32
    %301 = tpu.memref_slice %arg2[%21, %c0_i32_138] : memref<512x128xf32, #tpu.memory_space<any>> -> memref<1x128xf32, #tpu.memory_space<any>>
    %302 = tpu.memref_squeeze %301 : memref<1x128xf32, #tpu.memory_space<any>> -> memref<128xf32, #tpu.memory_space<any>>
    %c0_i32_139 = arith.constant 0 : i32
    %303 = tpu.memref_slice %arg4[%c2_i32_136, %c0_i32_139] : memref<32x128xf32, #tpu.memory_space<vmem>> -> memref<1x128xf32, #tpu.memory_space<vmem>>
    %304 = tpu.memref_squeeze %303 : memref<1x128xf32, #tpu.memory_space<vmem>> -> memref<128xf32, #tpu.memory_space<vmem>>
    %305 = tpu.memref_slice %arg5[%c2_i32_137] : memref<32x!tpu.dma_semaphore, #tpu.memory_space<semaphore_mem>> -> memref<1x!tpu.dma_semaphore, #tpu.memory_space<semaphore_mem>>
    %306 = tpu.memref_squeeze %305 : memref<1x!tpu.dma_semaphore, #tpu.memory_space<semaphore_mem>> -> memref<!tpu.dma_semaphore, #tpu.memory_space<semaphore_mem>>
    tpu.wait_dma2 semaphore(%306 : memref<!tpu.dma_semaphore, #tpu.memory_space<semaphore_mem>>) src(%302 : memref<128xf32, #tpu.memory_space<any>>) dst(%304 : memref<128xf32, #tpu.memory_space<vmem>>)
    %c3_i32_140 = arith.constant 3 : i32
    %c3_i32_141 = arith.constant 3 : i32
    %c0_i32_142 = arith.constant 0 : i32
    %307 = tpu.memref_slice %arg2[%30, %c0_i32_142] : memref<512x128xf32, #tpu.memory_space<any>> -> memref<1x128xf32, #tpu.memory_space<any>>
    %308 = tpu.memref_squeeze %307 : memref<1x128xf32, #tpu.memory_space<any>> -> memref<128xf32, #tpu.memory_space<any>>
    %c0_i32_143 = arith.constant 0 : i32
    %309 = tpu.memref_slice %arg4[%c3_i32_140, %c0_i32_143] : memref<32x128xf32, #tpu.memory_space<vmem>> -> memref<1x128xf32, #tpu.memory_space<vmem>>
    %310 = tpu.memref_squeeze %309 : memref<1x128xf32, #tpu.memory_space<vmem>> -> memref<128xf32, #tpu.memory_space<vmem>>
    %311 = tpu.memref_slice %arg5[%c3_i32_141] : memref<32x!tpu.dma_semaphore, #tpu.memory_space<semaphore_mem>> -> memref<1x!tpu.dma_semaphore, #tpu.memory_space<semaphore_mem>>
    %312 = tpu.memref_squeeze %311 : memref<1x!tpu.dma_semaphore, #tpu.memory_space<semaphore_mem>> -> memref<!tpu.dma_semaphore, #tpu.memory_space<semaphore_mem>>
    tpu.wait_dma2 semaphore(%312 : memref<!tpu.dma_semaphore, #tpu.memory_space<semaphore_mem>>) src(%308 : memref<128xf32, #tpu.memory_space<any>>) dst(%310 : memref<128xf32, #tpu.memory_space<vmem>>)
    %c4_i32_144 = arith.constant 4 : i32
    %c4_i32_145 = arith.constant 4 : i32
    %c0_i32_146 = arith.constant 0 : i32
    %313 = tpu.memref_slice %arg2[%39, %c0_i32_146] : memref<512x128xf32, #tpu.memory_space<any>> -> memref<1x128xf32, #tpu.memory_space<any>>
    %314 = tpu.memref_squeeze %313 : memref<1x128xf32, #tpu.memory_space<any>> -> memref<128xf32, #tpu.memory_space<any>>
    %c0_i32_147 = arith.constant 0 : i32
    %315 = tpu.memref_slice %arg4[%c4_i32_144, %c0_i32_147] : memref<32x128xf32, #tpu.memory_space<vmem>> -> memref<1x128xf32, #tpu.memory_space<vmem>>
    %316 = tpu.memref_squeeze %315 : memref<1x128xf32, #tpu.memory_space<vmem>> -> memref<128xf32, #tpu.memory_space<vmem>>
    %317 = tpu.memref_slice %arg5[%c4_i32_145] : memref<32x!tpu.dma_semaphore, #tpu.memory_space<semaphore_mem>> -> memref<1x!tpu.dma_semaphore, #tpu.memory_space<semaphore_mem>>
    %318 = tpu.memref_squeeze %317 : memref<1x!tpu.dma_semaphore, #tpu.memory_space<semaphore_mem>> -> memref<!tpu.dma_semaphore, #tpu.memory_space<semaphore_mem>>
    tpu.wait_dma2 semaphore(%318 : memref<!tpu.dma_semaphore, #tpu.memory_space<semaphore_mem>>) src(%314 : memref<128xf32, #tpu.memory_space<any>>) dst(%316 : memref<128xf32, #tpu.memory_space<vmem>>)
    %c5_i32_148 = arith.constant 5 : i32
    %c5_i32_149 = arith.constant 5 : i32
    %c0_i32_150 = arith.constant 0 : i32
    %319 = tpu.memref_slice %arg2[%48, %c0_i32_150] : memref<512x128xf32, #tpu.memory_space<any>> -> memref<1x128xf32, #tpu.memory_space<any>>
    %320 = tpu.memref_squeeze %319 : memref<1x128xf32, #tpu.memory_space<any>> -> memref<128xf32, #tpu.memory_space<any>>
    %c0_i32_151 = arith.constant 0 : i32
    %321 = tpu.memref_slice %arg4[%c5_i32_148, %c0_i32_151] : memref<32x128xf32, #tpu.memory_space<vmem>> -> memref<1x128xf32, #tpu.memory_space<vmem>>
    %322 = tpu.memref_squeeze %321 : memref<1x128xf32, #tpu.memory_space<vmem>> -> memref<128xf32, #tpu.memory_space<vmem>>
    %323 = tpu.memref_slice %arg5[%c5_i32_149] : memref<32x!tpu.dma_semaphore, #tpu.memory_space<semaphore_mem>> -> memref<1x!tpu.dma_semaphore, #tpu.memory_space<semaphore_mem>>
    %324 = tpu.memref_squeeze %323 : memref<1x!tpu.dma_semaphore, #tpu.memory_space<semaphore_mem>> -> memref<!tpu.dma_semaphore, #tpu.memory_space<semaphore_mem>>
    tpu.wait_dma2 semaphore(%324 : memref<!tpu.dma_semaphore, #tpu.memory_space<semaphore_mem>>) src(%320 : memref<128xf32, #tpu.memory_space<any>>) dst(%322 : memref<128xf32, #tpu.memory_space<vmem>>)
    %c6_i32_152 = arith.constant 6 : i32
    %c6_i32_153 = arith.constant 6 : i32
    %c0_i32_154 = arith.constant 0 : i32
    %325 = tpu.memref_slice %arg2[%57, %c0_i32_154] : memref<512x128xf32, #tpu.memory_space<any>> -> memref<1x128xf32, #tpu.memory_space<any>>
    %326 = tpu.memref_squeeze %325 : memref<1x128xf32, #tpu.memory_space<any>> -> memref<128xf32, #tpu.memory_space<any>>
    %c0_i32_155 = arith.constant 0 : i32
    %327 = tpu.memref_slice %arg4[%c6_i32_152, %c0_i32_155] : memref<32x128xf32, #tpu.memory_space<vmem>> -> memref<1x128xf32, #tpu.memory_space<vmem>>
    %328 = tpu.memref_squeeze %327 : memref<1x128xf32, #tpu.memory_space<vmem>> -> memref<128xf32, #tpu.memory_space<vmem>>
    %329 = tpu.memref_slice %arg5[%c6_i32_153] : memref<32x!tpu.dma_semaphore, #tpu.memory_space<semaphore_mem>> -> memref<1x!tpu.dma_semaphore, #tpu.memory_space<semaphore_mem>>
    %330 = tpu.memref_squeeze %329 : memref<1x!tpu.dma_semaphore, #tpu.memory_space<semaphore_mem>> -> memref<!tpu.dma_semaphore, #tpu.memory_space<semaphore_mem>>
    tpu.wait_dma2 semaphore(%330 : memref<!tpu.dma_semaphore, #tpu.memory_space<semaphore_mem>>) src(%326 : memref<128xf32, #tpu.memory_space<any>>) dst(%328 : memref<128xf32, #tpu.memory_space<vmem>>)
    %c7_i32_156 = arith.constant 7 : i32
    %c7_i32_157 = arith.constant 7 : i32
    %c0_i32_158 = arith.constant 0 : i32
    %331 = tpu.memref_slice %arg2[%66, %c0_i32_158] : memref<512x128xf32, #tpu.memory_space<any>> -> memref<1x128xf32, #tpu.memory_space<any>>
    %332 = tpu.memref_squeeze %331 : memref<1x128xf32, #tpu.memory_space<any>> -> memref<128xf32, #tpu.memory_space<any>>
    %c0_i32_159 = arith.constant 0 : i32
    %333 = tpu.memref_slice %arg4[%c7_i32_156, %c0_i32_159] : memref<32x128xf32, #tpu.memory_space<vmem>> -> memref<1x128xf32, #tpu.memory_space<vmem>>
    %334 = tpu.memref_squeeze %333 : memref<1x128xf32, #tpu.memory_space<vmem>> -> memref<128xf32, #tpu.memory_space<vmem>>
    %335 = tpu.memref_slice %arg5[%c7_i32_157] : memref<32x!tpu.dma_semaphore, #tpu.memory_space<semaphore_mem>> -> memref<1x!tpu.dma_semaphore, #tpu.memory_space<semaphore_mem>>
    %336 = tpu.memref_squeeze %335 : memref<1x!tpu.dma_semaphore, #tpu.memory_space<semaphore_mem>> -> memref<!tpu.dma_semaphore, #tpu.memory_space<semaphore_mem>>
    tpu.wait_dma2 semaphore(%336 : memref<!tpu.dma_semaphore, #tpu.memory_space<semaphore_mem>>) src(%332 : memref<128xf32, #tpu.memory_space<any>>) dst(%334 : memref<128xf32, #tpu.memory_space<vmem>>)
    %c8_i32_160 = arith.constant 8 : i32
    %c8_i32_161 = arith.constant 8 : i32
    %c0_i32_162 = arith.constant 0 : i32
    %337 = tpu.memref_slice %arg2[%75, %c0_i32_162] : memref<512x128xf32, #tpu.memory_space<any>> -> memref<1x128xf32, #tpu.memory_space<any>>
    %338 = tpu.memref_squeeze %337 : memref<1x128xf32, #tpu.memory_space<any>> -> memref<128xf32, #tpu.memory_space<any>>
    %c0_i32_163 = arith.constant 0 : i32
    %339 = tpu.memref_slice %arg4[%c8_i32_160, %c0_i32_163] : memref<32x128xf32, #tpu.memory_space<vmem>> -> memref<1x128xf32, #tpu.memory_space<vmem>>
    %340 = tpu.memref_squeeze %339 : memref<1x128xf32, #tpu.memory_space<vmem>> -> memref<128xf32, #tpu.memory_space<vmem>>
    %341 = tpu.memref_slice %arg5[%c8_i32_161] : memref<32x!tpu.dma_semaphore, #tpu.memory_space<semaphore_mem>> -> memref<1x!tpu.dma_semaphore, #tpu.memory_space<semaphore_mem>>
    %342 = tpu.memref_squeeze %341 : memref<1x!tpu.dma_semaphore, #tpu.memory_space<semaphore_mem>> -> memref<!tpu.dma_semaphore, #tpu.memory_space<semaphore_mem>>
    tpu.wait_dma2 semaphore(%342 : memref<!tpu.dma_semaphore, #tpu.memory_space<semaphore_mem>>) src(%338 : memref<128xf32, #tpu.memory_space<any>>) dst(%340 : memref<128xf32, #tpu.memory_space<vmem>>)
    %c9_i32_164 = arith.constant 9 : i32
    %c9_i32_165 = arith.constant 9 : i32
    %c0_i32_166 = arith.constant 0 : i32
    %343 = tpu.memref_slice %arg2[%84, %c0_i32_166] : memref<512x128xf32, #tpu.memory_space<any>> -> memref<1x128xf32, #tpu.memory_space<any>>
    %344 = tpu.memref_squeeze %343 : memref<1x128xf32, #tpu.memory_space<any>> -> memref<128xf32, #tpu.memory_space<any>>
    %c0_i32_167 = arith.constant 0 : i32
    %345 = tpu.memref_slice %arg4[%c9_i32_164, %c0_i32_167] : memref<32x128xf32, #tpu.memory_space<vmem>> -> memref<1x128xf32, #tpu.memory_space<vmem>>
    %346 = tpu.memref_squeeze %345 : memref<1x128xf32, #tpu.memory_space<vmem>> -> memref<128xf32, #tpu.memory_space<vmem>>
    %347 = tpu.memref_slice %arg5[%c9_i32_165] : memref<32x!tpu.dma_semaphore, #tpu.memory_space<semaphore_mem>> -> memref<1x!tpu.dma_semaphore, #tpu.memory_space<semaphore_mem>>
    %348 = tpu.memref_squeeze %347 : memref<1x!tpu.dma_semaphore, #tpu.memory_space<semaphore_mem>> -> memref<!tpu.dma_semaphore, #tpu.memory_space<semaphore_mem>>
    tpu.wait_dma2 semaphore(%348 : memref<!tpu.dma_semaphore, #tpu.memory_space<semaphore_mem>>) src(%344 : memref<128xf32, #tpu.memory_space<any>>) dst(%346 : memref<128xf32, #tpu.memory_space<vmem>>)
    %c10_i32_168 = arith.constant 10 : i32
    %c10_i32_169 = arith.constant 10 : i32
    %c0_i32_170 = arith.constant 0 : i32
    %349 = tpu.memref_slice %arg2[%93, %c0_i32_170] : memref<512x128xf32, #tpu.memory_space<any>> -> memref<1x128xf32, #tpu.memory_space<any>>
    %350 = tpu.memref_squeeze %349 : memref<1x128xf32, #tpu.memory_space<any>> -> memref<128xf32, #tpu.memory_space<any>>
    %c0_i32_171 = arith.constant 0 : i32
    %351 = tpu.memref_slice %arg4[%c10_i32_168, %c0_i32_171] : memref<32x128xf32, #tpu.memory_space<vmem>> -> memref<1x128xf32, #tpu.memory_space<vmem>>
    %352 = tpu.memref_squeeze %351 : memref<1x128xf32, #tpu.memory_space<vmem>> -> memref<128xf32, #tpu.memory_space<vmem>>
    %353 = tpu.memref_slice %arg5[%c10_i32_169] : memref<32x!tpu.dma_semaphore, #tpu.memory_space<semaphore_mem>> -> memref<1x!tpu.dma_semaphore, #tpu.memory_space<semaphore_mem>>
    %354 = tpu.memref_squeeze %353 : memref<1x!tpu.dma_semaphore, #tpu.memory_space<semaphore_mem>> -> memref<!tpu.dma_semaphore, #tpu.memory_space<semaphore_mem>>
    tpu.wait_dma2 semaphore(%354 : memref<!tpu.dma_semaphore, #tpu.memory_space<semaphore_mem>>) src(%350 : memref<128xf32, #tpu.memory_space<any>>) dst(%352 : memref<128xf32, #tpu.memory_space<vmem>>)
    %c11_i32_172 = arith.constant 11 : i32
    %c11_i32_173 = arith.constant 11 : i32
    %c0_i32_174 = arith.constant 0 : i32
    %355 = tpu.memref_slice %arg2[%102, %c0_i32_174] : memref<512x128xf32, #tpu.memory_space<any>> -> memref<1x128xf32, #tpu.memory_space<any>>
    %356 = tpu.memref_squeeze %355 : memref<1x128xf32, #tpu.memory_space<any>> -> memref<128xf32, #tpu.memory_space<any>>
    %c0_i32_175 = arith.constant 0 : i32
    %357 = tpu.memref_slice %arg4[%c11_i32_172, %c0_i32_175] : memref<32x128xf32, #tpu.memory_space<vmem>> -> memref<1x128xf32, #tpu.memory_space<vmem>>
    %358 = tpu.memref_squeeze %357 : memref<1x128xf32, #tpu.memory_space<vmem>> -> memref<128xf32, #tpu.memory_space<vmem>>
    %359 = tpu.memref_slice %arg5[%c11_i32_173] : memref<32x!tpu.dma_semaphore, #tpu.memory_space<semaphore_mem>> -> memref<1x!tpu.dma_semaphore, #tpu.memory_space<semaphore_mem>>
    %360 = tpu.memref_squeeze %359 : memref<1x!tpu.dma_semaphore, #tpu.memory_space<semaphore_mem>> -> memref<!tpu.dma_semaphore, #tpu.memory_space<semaphore_mem>>
    tpu.wait_dma2 semaphore(%360 : memref<!tpu.dma_semaphore, #tpu.memory_space<semaphore_mem>>) src(%356 : memref<128xf32, #tpu.memory_space<any>>) dst(%358 : memref<128xf32, #tpu.memory_space<vmem>>)
    %c12_i32_176 = arith.constant 12 : i32
    %c12_i32_177 = arith.constant 12 : i32
    %c0_i32_178 = arith.constant 0 : i32
    %361 = tpu.memref_slice %arg2[%111, %c0_i32_178] : memref<512x128xf32, #tpu.memory_space<any>> -> memref<1x128xf32, #tpu.memory_space<any>>
    %362 = tpu.memref_squeeze %361 : memref<1x128xf32, #tpu.memory_space<any>> -> memref<128xf32, #tpu.memory_space<any>>
    %c0_i32_179 = arith.constant 0 : i32
    %363 = tpu.memref_slice %arg4[%c12_i32_176, %c0_i32_179] : memref<32x128xf32, #tpu.memory_space<vmem>> -> memref<1x128xf32, #tpu.memory_space<vmem>>
    %364 = tpu.memref_squeeze %363 : memref<1x128xf32, #tpu.memory_space<vmem>> -> memref<128xf32, #tpu.memory_space<vmem>>
    %365 = tpu.memref_slice %arg5[%c12_i32_177] : memref<32x!tpu.dma_semaphore, #tpu.memory_space<semaphore_mem>> -> memref<1x!tpu.dma_semaphore, #tpu.memory_space<semaphore_mem>>
    %366 = tpu.memref_squeeze %365 : memref<1x!tpu.dma_semaphore, #tpu.memory_space<semaphore_mem>> -> memref<!tpu.dma_semaphore, #tpu.memory_space<semaphore_mem>>
    tpu.wait_dma2 semaphore(%366 : memref<!tpu.dma_semaphore, #tpu.memory_space<semaphore_mem>>) src(%362 : memref<128xf32, #tpu.memory_space<any>>) dst(%364 : memref<128xf32, #tpu.memory_space<vmem>>)
    %c13_i32_180 = arith.constant 13 : i32
    %c13_i32_181 = arith.constant 13 : i32
    %c0_i32_182 = arith.constant 0 : i32
    %367 = tpu.memref_slice %arg2[%120, %c0_i32_182] : memref<512x128xf32, #tpu.memory_space<any>> -> memref<1x128xf32, #tpu.memory_space<any>>
    %368 = tpu.memref_squeeze %367 : memref<1x128xf32, #tpu.memory_space<any>> -> memref<128xf32, #tpu.memory_space<any>>
    %c0_i32_183 = arith.constant 0 : i32
    %369 = tpu.memref_slice %arg4[%c13_i32_180, %c0_i32_183] : memref<32x128xf32, #tpu.memory_space<vmem>> -> memref<1x128xf32, #tpu.memory_space<vmem>>
    %370 = tpu.memref_squeeze %369 : memref<1x128xf32, #tpu.memory_space<vmem>> -> memref<128xf32, #tpu.memory_space<vmem>>
    %371 = tpu.memref_slice %arg5[%c13_i32_181] : memref<32x!tpu.dma_semaphore, #tpu.memory_space<semaphore_mem>> -> memref<1x!tpu.dma_semaphore, #tpu.memory_space<semaphore_mem>>
    %372 = tpu.memref_squeeze %371 : memref<1x!tpu.dma_semaphore, #tpu.memory_space<semaphore_mem>> -> memref<!tpu.dma_semaphore, #tpu.memory_space<semaphore_mem>>
    tpu.wait_dma2 semaphore(%372 : memref<!tpu.dma_semaphore, #tpu.memory_space<semaphore_mem>>) src(%368 : memref<128xf32, #tpu.memory_space<any>>) dst(%370 : memref<128xf32, #tpu.memory_space<vmem>>)
    %c14_i32_184 = arith.constant 14 : i32
    %c14_i32_185 = arith.constant 14 : i32
    %c0_i32_186 = arith.constant 0 : i32
    %373 = tpu.memref_slice %arg2[%129, %c0_i32_186] : memref<512x128xf32, #tpu.memory_space<any>> -> memref<1x128xf32, #tpu.memory_space<any>>
    %374 = tpu.memref_squeeze %373 : memref<1x128xf32, #tpu.memory_space<any>> -> memref<128xf32, #tpu.memory_space<any>>
    %c0_i32_187 = arith.constant 0 : i32
    %375 = tpu.memref_slice %arg4[%c14_i32_184, %c0_i32_187] : memref<32x128xf32, #tpu.memory_space<vmem>> -> memref<1x128xf32, #tpu.memory_space<vmem>>
    %376 = tpu.memref_squeeze %375 : memref<1x128xf32, #tpu.memory_space<vmem>> -> memref<128xf32, #tpu.memory_space<vmem>>
    %377 = tpu.memref_slice %arg5[%c14_i32_185] : memref<32x!tpu.dma_semaphore, #tpu.memory_space<semaphore_mem>> -> memref<1x!tpu.dma_semaphore, #tpu.memory_space<semaphore_mem>>
    %378 = tpu.memref_squeeze %377 : memref<1x!tpu.dma_semaphore, #tpu.memory_space<semaphore_mem>> -> memref<!tpu.dma_semaphore, #tpu.memory_space<semaphore_mem>>
    tpu.wait_dma2 semaphore(%378 : memref<!tpu.dma_semaphore, #tpu.memory_space<semaphore_mem>>) src(%374 : memref<128xf32, #tpu.memory_space<any>>) dst(%376 : memref<128xf32, #tpu.memory_space<vmem>>)
    %c15_i32_188 = arith.constant 15 : i32
    %c15_i32_189 = arith.constant 15 : i32
    %c0_i32_190 = arith.constant 0 : i32
    %379 = tpu.memref_slice %arg2[%138, %c0_i32_190] : memref<512x128xf32, #tpu.memory_space<any>> -> memref<1x128xf32, #tpu.memory_space<any>>
    %380 = tpu.memref_squeeze %379 : memref<1x128xf32, #tpu.memory_space<any>> -> memref<128xf32, #tpu.memory_space<any>>
    %c0_i32_191 = arith.constant 0 : i32
    %381 = tpu.memref_slice %arg4[%c15_i32_188, %c0_i32_191] : memref<32x128xf32, #tpu.memory_space<vmem>> -> memref<1x128xf32, #tpu.memory_space<vmem>>
    %382 = tpu.memref_squeeze %381 : memref<1x128xf32, #tpu.memory_space<vmem>> -> memref<128xf32, #tpu.memory_space<vmem>>
    %383 = tpu.memref_slice %arg5[%c15_i32_189] : memref<32x!tpu.dma_semaphore, #tpu.memory_space<semaphore_mem>> -> memref<1x!tpu.dma_semaphore, #tpu.memory_space<semaphore_mem>>
    %384 = tpu.memref_squeeze %383 : memref<1x!tpu.dma_semaphore, #tpu.memory_space<semaphore_mem>> -> memref<!tpu.dma_semaphore, #tpu.memory_space<semaphore_mem>>
    tpu.wait_dma2 semaphore(%384 : memref<!tpu.dma_semaphore, #tpu.memory_space<semaphore_mem>>) src(%380 : memref<128xf32, #tpu.memory_space<any>>) dst(%382 : memref<128xf32, #tpu.memory_space<vmem>>)
    %c16_i32_192 = arith.constant 16 : i32
    %c16_i32_193 = arith.constant 16 : i32
    %c0_i32_194 = arith.constant 0 : i32
    %385 = tpu.memref_slice %arg2[%147, %c0_i32_194] : memref<512x128xf32, #tpu.memory_space<any>> -> memref<1x128xf32, #tpu.memory_space<any>>
    %386 = tpu.memref_squeeze %385 : memref<1x128xf32, #tpu.memory_space<any>> -> memref<128xf32, #tpu.memory_space<any>>
    %c0_i32_195 = arith.constant 0 : i32
    %387 = tpu.memref_slice %arg4[%c16_i32_192, %c0_i32_195] : memref<32x128xf32, #tpu.memory_space<vmem>> -> memref<1x128xf32, #tpu.memory_space<vmem>>
    %388 = tpu.memref_squeeze %387 : memref<1x128xf32, #tpu.memory_space<vmem>> -> memref<128xf32, #tpu.memory_space<vmem>>
    %389 = tpu.memref_slice %arg5[%c16_i32_193] : memref<32x!tpu.dma_semaphore, #tpu.memory_space<semaphore_mem>> -> memref<1x!tpu.dma_semaphore, #tpu.memory_space<semaphore_mem>>
    %390 = tpu.memref_squeeze %389 : memref<1x!tpu.dma_semaphore, #tpu.memory_space<semaphore_mem>> -> memref<!tpu.dma_semaphore, #tpu.memory_space<semaphore_mem>>
    tpu.wait_dma2 semaphore(%390 : memref<!tpu.dma_semaphore, #tpu.memory_space<semaphore_mem>>) src(%386 : memref<128xf32, #tpu.memory_space<any>>) dst(%388 : memref<128xf32, #tpu.memory_space<vmem>>)
    %c17_i32_196 = arith.constant 17 : i32
    %c17_i32_197 = arith.constant 17 : i32
    %c0_i32_198 = arith.constant 0 : i32
    %391 = tpu.memref_slice %arg2[%156, %c0_i32_198] : memref<512x128xf32, #tpu.memory_space<any>> -> memref<1x128xf32, #tpu.memory_space<any>>
    %392 = tpu.memref_squeeze %391 : memref<1x128xf32, #tpu.memory_space<any>> -> memref<128xf32, #tpu.memory_space<any>>
    %c0_i32_199 = arith.constant 0 : i32
    %393 = tpu.memref_slice %arg4[%c17_i32_196, %c0_i32_199] : memref<32x128xf32, #tpu.memory_space<vmem>> -> memref<1x128xf32, #tpu.memory_space<vmem>>
    %394 = tpu.memref_squeeze %393 : memref<1x128xf32, #tpu.memory_space<vmem>> -> memref<128xf32, #tpu.memory_space<vmem>>
    %395 = tpu.memref_slice %arg5[%c17_i32_197] : memref<32x!tpu.dma_semaphore, #tpu.memory_space<semaphore_mem>> -> memref<1x!tpu.dma_semaphore, #tpu.memory_space<semaphore_mem>>
    %396 = tpu.memref_squeeze %395 : memref<1x!tpu.dma_semaphore, #tpu.memory_space<semaphore_mem>> -> memref<!tpu.dma_semaphore, #tpu.memory_space<semaphore_mem>>
    tpu.wait_dma2 semaphore(%396 : memref<!tpu.dma_semaphore, #tpu.memory_space<semaphore_mem>>) src(%392 : memref<128xf32, #tpu.memory_space<any>>) dst(%394 : memref<128xf32, #tpu.memory_space<vmem>>)
    %c18_i32_200 = arith.constant 18 : i32
    %c18_i32_201 = arith.constant 18 : i32
    %c0_i32_202 = arith.constant 0 : i32
    %397 = tpu.memref_slice %arg2[%165, %c0_i32_202] : memref<512x128xf32, #tpu.memory_space<any>> -> memref<1x128xf32, #tpu.memory_space<any>>
    %398 = tpu.memref_squeeze %397 : memref<1x128xf32, #tpu.memory_space<any>> -> memref<128xf32, #tpu.memory_space<any>>
    %c0_i32_203 = arith.constant 0 : i32
    %399 = tpu.memref_slice %arg4[%c18_i32_200, %c0_i32_203] : memref<32x128xf32, #tpu.memory_space<vmem>> -> memref<1x128xf32, #tpu.memory_space<vmem>>
    %400 = tpu.memref_squeeze %399 : memref<1x128xf32, #tpu.memory_space<vmem>> -> memref<128xf32, #tpu.memory_space<vmem>>
    %401 = tpu.memref_slice %arg5[%c18_i32_201] : memref<32x!tpu.dma_semaphore, #tpu.memory_space<semaphore_mem>> -> memref<1x!tpu.dma_semaphore, #tpu.memory_space<semaphore_mem>>
    %402 = tpu.memref_squeeze %401 : memref<1x!tpu.dma_semaphore, #tpu.memory_space<semaphore_mem>> -> memref<!tpu.dma_semaphore, #tpu.memory_space<semaphore_mem>>
    tpu.wait_dma2 semaphore(%402 : memref<!tpu.dma_semaphore, #tpu.memory_space<semaphore_mem>>) src(%398 : memref<128xf32, #tpu.memory_space<any>>) dst(%400 : memref<128xf32, #tpu.memory_space<vmem>>)
    %c19_i32_204 = arith.constant 19 : i32
    %c19_i32_205 = arith.constant 19 : i32
    %c0_i32_206 = arith.constant 0 : i32
    %403 = tpu.memref_slice %arg2[%174, %c0_i32_206] : memref<512x128xf32, #tpu.memory_space<any>> -> memref<1x128xf32, #tpu.memory_space<any>>
    %404 = tpu.memref_squeeze %403 : memref<1x128xf32, #tpu.memory_space<any>> -> memref<128xf32, #tpu.memory_space<any>>
    %c0_i32_207 = arith.constant 0 : i32
    %405 = tpu.memref_slice %arg4[%c19_i32_204, %c0_i32_207] : memref<32x128xf32, #tpu.memory_space<vmem>> -> memref<1x128xf32, #tpu.memory_space<vmem>>
    %406 = tpu.memref_squeeze %405 : memref<1x128xf32, #tpu.memory_space<vmem>> -> memref<128xf32, #tpu.memory_space<vmem>>
    %407 = tpu.memref_slice %arg5[%c19_i32_205] : memref<32x!tpu.dma_semaphore, #tpu.memory_space<semaphore_mem>> -> memref<1x!tpu.dma_semaphore, #tpu.memory_space<semaphore_mem>>
    %408 = tpu.memref_squeeze %407 : memref<1x!tpu.dma_semaphore, #tpu.memory_space<semaphore_mem>> -> memref<!tpu.dma_semaphore, #tpu.memory_space<semaphore_mem>>
    tpu.wait_dma2 semaphore(%408 : memref<!tpu.dma_semaphore, #tpu.memory_space<semaphore_mem>>) src(%404 : memref<128xf32, #tpu.memory_space<any>>) dst(%406 : memref<128xf32, #tpu.memory_space<vmem>>)
    %c20_i32_208 = arith.constant 20 : i32
    %c20_i32_209 = arith.constant 20 : i32
    %c0_i32_210 = arith.constant 0 : i32
    %409 = tpu.memref_slice %arg2[%183, %c0_i32_210] : memref<512x128xf32, #tpu.memory_space<any>> -> memref<1x128xf32, #tpu.memory_space<any>>
    %410 = tpu.memref_squeeze %409 : memref<1x128xf32, #tpu.memory_space<any>> -> memref<128xf32, #tpu.memory_space<any>>
    %c0_i32_211 = arith.constant 0 : i32
    %411 = tpu.memref_slice %arg4[%c20_i32_208, %c0_i32_211] : memref<32x128xf32, #tpu.memory_space<vmem>> -> memref<1x128xf32, #tpu.memory_space<vmem>>
    %412 = tpu.memref_squeeze %411 : memref<1x128xf32, #tpu.memory_space<vmem>> -> memref<128xf32, #tpu.memory_space<vmem>>
    %413 = tpu.memref_slice %arg5[%c20_i32_209] : memref<32x!tpu.dma_semaphore, #tpu.memory_space<semaphore_mem>> -> memref<1x!tpu.dma_semaphore, #tpu.memory_space<semaphore_mem>>
    %414 = tpu.memref_squeeze %413 : memref<1x!tpu.dma_semaphore, #tpu.memory_space<semaphore_mem>> -> memref<!tpu.dma_semaphore, #tpu.memory_space<semaphore_mem>>
    tpu.wait_dma2 semaphore(%414 : memref<!tpu.dma_semaphore, #tpu.memory_space<semaphore_mem>>) src(%410 : memref<128xf32, #tpu.memory_space<any>>) dst(%412 : memref<128xf32, #tpu.memory_space<vmem>>)
    %c21_i32_212 = arith.constant 21 : i32
    %c21_i32_213 = arith.constant 21 : i32
    %c0_i32_214 = arith.constant 0 : i32
    %415 = tpu.memref_slice %arg2[%192, %c0_i32_214] : memref<512x128xf32, #tpu.memory_space<any>> -> memref<1x128xf32, #tpu.memory_space<any>>
    %416 = tpu.memref_squeeze %415 : memref<1x128xf32, #tpu.memory_space<any>> -> memref<128xf32, #tpu.memory_space<any>>
    %c0_i32_215 = arith.constant 0 : i32
    %417 = tpu.memref_slice %arg4[%c21_i32_212, %c0_i32_215] : memref<32x128xf32, #tpu.memory_space<vmem>> -> memref<1x128xf32, #tpu.memory_space<vmem>>
    %418 = tpu.memref_squeeze %417 : memref<1x128xf32, #tpu.memory_space<vmem>> -> memref<128xf32, #tpu.memory_space<vmem>>
    %419 = tpu.memref_slice %arg5[%c21_i32_213] : memref<32x!tpu.dma_semaphore, #tpu.memory_space<semaphore_mem>> -> memref<1x!tpu.dma_semaphore, #tpu.memory_space<semaphore_mem>>
    %420 = tpu.memref_squeeze %419 : memref<1x!tpu.dma_semaphore, #tpu.memory_space<semaphore_mem>> -> memref<!tpu.dma_semaphore, #tpu.memory_space<semaphore_mem>>
    tpu.wait_dma2 semaphore(%420 : memref<!tpu.dma_semaphore, #tpu.memory_space<semaphore_mem>>) src(%416 : memref<128xf32, #tpu.memory_space<any>>) dst(%418 : memref<128xf32, #tpu.memory_space<vmem>>)
    %c22_i32_216 = arith.constant 22 : i32
    %c22_i32_217 = arith.constant 22 : i32
    %c0_i32_218 = arith.constant 0 : i32
    %421 = tpu.memref_slice %arg2[%201, %c0_i32_218] : memref<512x128xf32, #tpu.memory_space<any>> -> memref<1x128xf32, #tpu.memory_space<any>>
    %422 = tpu.memref_squeeze %421 : memref<1x128xf32, #tpu.memory_space<any>> -> memref<128xf32, #tpu.memory_space<any>>
    %c0_i32_219 = arith.constant 0 : i32
    %423 = tpu.memref_slice %arg4[%c22_i32_216, %c0_i32_219] : memref<32x128xf32, #tpu.memory_space<vmem>> -> memref<1x128xf32, #tpu.memory_space<vmem>>
    %424 = tpu.memref_squeeze %423 : memref<1x128xf32, #tpu.memory_space<vmem>> -> memref<128xf32, #tpu.memory_space<vmem>>
    %425 = tpu.memref_slice %arg5[%c22_i32_217] : memref<32x!tpu.dma_semaphore, #tpu.memory_space<semaphore_mem>> -> memref<1x!tpu.dma_semaphore, #tpu.memory_space<semaphore_mem>>
    %426 = tpu.memref_squeeze %425 : memref<1x!tpu.dma_semaphore, #tpu.memory_space<semaphore_mem>> -> memref<!tpu.dma_semaphore, #tpu.memory_space<semaphore_mem>>
    tpu.wait_dma2 semaphore(%426 : memref<!tpu.dma_semaphore, #tpu.memory_space<semaphore_mem>>) src(%422 : memref<128xf32, #tpu.memory_space<any>>) dst(%424 : memref<128xf32, #tpu.memory_space<vmem>>)
    %c23_i32_220 = arith.constant 23 : i32
    %c23_i32_221 = arith.constant 23 : i32
    %c0_i32_222 = arith.constant 0 : i32
    %427 = tpu.memref_slice %arg2[%210, %c0_i32_222] : memref<512x128xf32, #tpu.memory_space<any>> -> memref<1x128xf32, #tpu.memory_space<any>>
    %428 = tpu.memref_squeeze %427 : memref<1x128xf32, #tpu.memory_space<any>> -> memref<128xf32, #tpu.memory_space<any>>
    %c0_i32_223 = arith.constant 0 : i32
    %429 = tpu.memref_slice %arg4[%c23_i32_220, %c0_i32_223] : memref<32x128xf32, #tpu.memory_space<vmem>> -> memref<1x128xf32, #tpu.memory_space<vmem>>
    %430 = tpu.memref_squeeze %429 : memref<1x128xf32, #tpu.memory_space<vmem>> -> memref<128xf32, #tpu.memory_space<vmem>>
    %431 = tpu.memref_slice %arg5[%c23_i32_221] : memref<32x!tpu.dma_semaphore, #tpu.memory_space<semaphore_mem>> -> memref<1x!tpu.dma_semaphore, #tpu.memory_space<semaphore_mem>>
    %432 = tpu.memref_squeeze %431 : memref<1x!tpu.dma_semaphore, #tpu.memory_space<semaphore_mem>> -> memref<!tpu.dma_semaphore, #tpu.memory_space<semaphore_mem>>
    tpu.wait_dma2 semaphore(%432 : memref<!tpu.dma_semaphore, #tpu.memory_space<semaphore_mem>>) src(%428 : memref<128xf32, #tpu.memory_space<any>>) dst(%430 : memref<128xf32, #tpu.memory_space<vmem>>)
    %c24_i32_224 = arith.constant 24 : i32
    %c24_i32_225 = arith.constant 24 : i32
    %c0_i32_226 = arith.constant 0 : i32
    %433 = tpu.memref_slice %arg2[%219, %c0_i32_226] : memref<512x128xf32, #tpu.memory_space<any>> -> memref<1x128xf32, #tpu.memory_space<any>>
    %434 = tpu.memref_squeeze %433 : memref<1x128xf32, #tpu.memory_space<any>> -> memref<128xf32, #tpu.memory_space<any>>
    %c0_i32_227 = arith.constant 0 : i32
    %435 = tpu.memref_slice %arg4[%c24_i32_224, %c0_i32_227] : memref<32x128xf32, #tpu.memory_space<vmem>> -> memref<1x128xf32, #tpu.memory_space<vmem>>
    %436 = tpu.memref_squeeze %435 : memref<1x128xf32, #tpu.memory_space<vmem>> -> memref<128xf32, #tpu.memory_space<vmem>>
    %437 = tpu.memref_slice %arg5[%c24_i32_225] : memref<32x!tpu.dma_semaphore, #tpu.memory_space<semaphore_mem>> -> memref<1x!tpu.dma_semaphore, #tpu.memory_space<semaphore_mem>>
    %438 = tpu.memref_squeeze %437 : memref<1x!tpu.dma_semaphore, #tpu.memory_space<semaphore_mem>> -> memref<!tpu.dma_semaphore, #tpu.memory_space<semaphore_mem>>
    tpu.wait_dma2 semaphore(%438 : memref<!tpu.dma_semaphore, #tpu.memory_space<semaphore_mem>>) src(%434 : memref<128xf32, #tpu.memory_space<any>>) dst(%436 : memref<128xf32, #tpu.memory_space<vmem>>)
    %c25_i32_228 = arith.constant 25 : i32
    %c25_i32_229 = arith.constant 25 : i32
    %c0_i32_230 = arith.constant 0 : i32
    %439 = tpu.memref_slice %arg2[%228, %c0_i32_230] : memref<512x128xf32, #tpu.memory_space<any>> -> memref<1x128xf32, #tpu.memory_space<any>>
    %440 = tpu.memref_squeeze %439 : memref<1x128xf32, #tpu.memory_space<any>> -> memref<128xf32, #tpu.memory_space<any>>
    %c0_i32_231 = arith.constant 0 : i32
    %441 = tpu.memref_slice %arg4[%c25_i32_228, %c0_i32_231] : memref<32x128xf32, #tpu.memory_space<vmem>> -> memref<1x128xf32, #tpu.memory_space<vmem>>
    %442 = tpu.memref_squeeze %441 : memref<1x128xf32, #tpu.memory_space<vmem>> -> memref<128xf32, #tpu.memory_space<vmem>>
    %443 = tpu.memref_slice %arg5[%c25_i32_229] : memref<32x!tpu.dma_semaphore, #tpu.memory_space<semaphore_mem>> -> memref<1x!tpu.dma_semaphore, #tpu.memory_space<semaphore_mem>>
    %444 = tpu.memref_squeeze %443 : memref<1x!tpu.dma_semaphore, #tpu.memory_space<semaphore_mem>> -> memref<!tpu.dma_semaphore, #tpu.memory_space<semaphore_mem>>
    tpu.wait_dma2 semaphore(%444 : memref<!tpu.dma_semaphore, #tpu.memory_space<semaphore_mem>>) src(%440 : memref<128xf32, #tpu.memory_space<any>>) dst(%442 : memref<128xf32, #tpu.memory_space<vmem>>)
    %c26_i32_232 = arith.constant 26 : i32
    %c26_i32_233 = arith.constant 26 : i32
    %c0_i32_234 = arith.constant 0 : i32
    %445 = tpu.memref_slice %arg2[%237, %c0_i32_234] : memref<512x128xf32, #tpu.memory_space<any>> -> memref<1x128xf32, #tpu.memory_space<any>>
    %446 = tpu.memref_squeeze %445 : memref<1x128xf32, #tpu.memory_space<any>> -> memref<128xf32, #tpu.memory_space<any>>
    %c0_i32_235 = arith.constant 0 : i32
    %447 = tpu.memref_slice %arg4[%c26_i32_232, %c0_i32_235] : memref<32x128xf32, #tpu.memory_space<vmem>> -> memref<1x128xf32, #tpu.memory_space<vmem>>
    %448 = tpu.memref_squeeze %447 : memref<1x128xf32, #tpu.memory_space<vmem>> -> memref<128xf32, #tpu.memory_space<vmem>>
    %449 = tpu.memref_slice %arg5[%c26_i32_233] : memref<32x!tpu.dma_semaphore, #tpu.memory_space<semaphore_mem>> -> memref<1x!tpu.dma_semaphore, #tpu.memory_space<semaphore_mem>>
    %450 = tpu.memref_squeeze %449 : memref<1x!tpu.dma_semaphore, #tpu.memory_space<semaphore_mem>> -> memref<!tpu.dma_semaphore, #tpu.memory_space<semaphore_mem>>
    tpu.wait_dma2 semaphore(%450 : memref<!tpu.dma_semaphore, #tpu.memory_space<semaphore_mem>>) src(%446 : memref<128xf32, #tpu.memory_space<any>>) dst(%448 : memref<128xf32, #tpu.memory_space<vmem>>)
    %c27_i32_236 = arith.constant 27 : i32
    %c27_i32_237 = arith.constant 27 : i32
    %c0_i32_238 = arith.constant 0 : i32
    %451 = tpu.memref_slice %arg2[%246, %c0_i32_238] : memref<512x128xf32, #tpu.memory_space<any>> -> memref<1x128xf32, #tpu.memory_space<any>>
    %452 = tpu.memref_squeeze %451 : memref<1x128xf32, #tpu.memory_space<any>> -> memref<128xf32, #tpu.memory_space<any>>
    %c0_i32_239 = arith.constant 0 : i32
    %453 = tpu.memref_slice %arg4[%c27_i32_236, %c0_i32_239] : memref<32x128xf32, #tpu.memory_space<vmem>> -> memref<1x128xf32, #tpu.memory_space<vmem>>
    %454 = tpu.memref_squeeze %453 : memref<1x128xf32, #tpu.memory_space<vmem>> -> memref<128xf32, #tpu.memory_space<vmem>>
    %455 = tpu.memref_slice %arg5[%c27_i32_237] : memref<32x!tpu.dma_semaphore, #tpu.memory_space<semaphore_mem>> -> memref<1x!tpu.dma_semaphore, #tpu.memory_space<semaphore_mem>>
    %456 = tpu.memref_squeeze %455 : memref<1x!tpu.dma_semaphore, #tpu.memory_space<semaphore_mem>> -> memref<!tpu.dma_semaphore, #tpu.memory_space<semaphore_mem>>
    tpu.wait_dma2 semaphore(%456 : memref<!tpu.dma_semaphore, #tpu.memory_space<semaphore_mem>>) src(%452 : memref<128xf32, #tpu.memory_space<any>>) dst(%454 : memref<128xf32, #tpu.memory_space<vmem>>)
    %c28_i32_240 = arith.constant 28 : i32
    %c28_i32_241 = arith.constant 28 : i32
    %c0_i32_242 = arith.constant 0 : i32
    %457 = tpu.memref_slice %arg2[%255, %c0_i32_242] : memref<512x128xf32, #tpu.memory_space<any>> -> memref<1x128xf32, #tpu.memory_space<any>>
    %458 = tpu.memref_squeeze %457 : memref<1x128xf32, #tpu.memory_space<any>> -> memref<128xf32, #tpu.memory_space<any>>
    %c0_i32_243 = arith.constant 0 : i32
    %459 = tpu.memref_slice %arg4[%c28_i32_240, %c0_i32_243] : memref<32x128xf32, #tpu.memory_space<vmem>> -> memref<1x128xf32, #tpu.memory_space<vmem>>
    %460 = tpu.memref_squeeze %459 : memref<1x128xf32, #tpu.memory_space<vmem>> -> memref<128xf32, #tpu.memory_space<vmem>>
    %461 = tpu.memref_slice %arg5[%c28_i32_241] : memref<32x!tpu.dma_semaphore, #tpu.memory_space<semaphore_mem>> -> memref<1x!tpu.dma_semaphore, #tpu.memory_space<semaphore_mem>>
    %462 = tpu.memref_squeeze %461 : memref<1x!tpu.dma_semaphore, #tpu.memory_space<semaphore_mem>> -> memref<!tpu.dma_semaphore, #tpu.memory_space<semaphore_mem>>
    tpu.wait_dma2 semaphore(%462 : memref<!tpu.dma_semaphore, #tpu.memory_space<semaphore_mem>>) src(%458 : memref<128xf32, #tpu.memory_space<any>>) dst(%460 : memref<128xf32, #tpu.memory_space<vmem>>)
    %c29_i32_244 = arith.constant 29 : i32
    %c29_i32_245 = arith.constant 29 : i32
    %c0_i32_246 = arith.constant 0 : i32
    %463 = tpu.memref_slice %arg2[%264, %c0_i32_246] : memref<512x128xf32, #tpu.memory_space<any>> -> memref<1x128xf32, #tpu.memory_space<any>>
    %464 = tpu.memref_squeeze %463 : memref<1x128xf32, #tpu.memory_space<any>> -> memref<128xf32, #tpu.memory_space<any>>
    %c0_i32_247 = arith.constant 0 : i32
    %465 = tpu.memref_slice %arg4[%c29_i32_244, %c0_i32_247] : memref<32x128xf32, #tpu.memory_space<vmem>> -> memref<1x128xf32, #tpu.memory_space<vmem>>
    %466 = tpu.memref_squeeze %465 : memref<1x128xf32, #tpu.memory_space<vmem>> -> memref<128xf32, #tpu.memory_space<vmem>>
    %467 = tpu.memref_slice %arg5[%c29_i32_245] : memref<32x!tpu.dma_semaphore, #tpu.memory_space<semaphore_mem>> -> memref<1x!tpu.dma_semaphore, #tpu.memory_space<semaphore_mem>>
    %468 = tpu.memref_squeeze %467 : memref<1x!tpu.dma_semaphore, #tpu.memory_space<semaphore_mem>> -> memref<!tpu.dma_semaphore, #tpu.memory_space<semaphore_mem>>
    tpu.wait_dma2 semaphore(%468 : memref<!tpu.dma_semaphore, #tpu.memory_space<semaphore_mem>>) src(%464 : memref<128xf32, #tpu.memory_space<any>>) dst(%466 : memref<128xf32, #tpu.memory_space<vmem>>)
    %c30_i32_248 = arith.constant 30 : i32
    %c30_i32_249 = arith.constant 30 : i32
    %c0_i32_250 = arith.constant 0 : i32
    %469 = tpu.memref_slice %arg2[%273, %c0_i32_250] : memref<512x128xf32, #tpu.memory_space<any>> -> memref<1x128xf32, #tpu.memory_space<any>>
    %470 = tpu.memref_squeeze %469 : memref<1x128xf32, #tpu.memory_space<any>> -> memref<128xf32, #tpu.memory_space<any>>
    %c0_i32_251 = arith.constant 0 : i32
    %471 = tpu.memref_slice %arg4[%c30_i32_248, %c0_i32_251] : memref<32x128xf32, #tpu.memory_space<vmem>> -> memref<1x128xf32, #tpu.memory_space<vmem>>
    %472 = tpu.memref_squeeze %471 : memref<1x128xf32, #tpu.memory_space<vmem>> -> memref<128xf32, #tpu.memory_space<vmem>>
    %473 = tpu.memref_slice %arg5[%c30_i32_249] : memref<32x!tpu.dma_semaphore, #tpu.memory_space<semaphore_mem>> -> memref<1x!tpu.dma_semaphore, #tpu.memory_space<semaphore_mem>>
    %474 = tpu.memref_squeeze %473 : memref<1x!tpu.dma_semaphore, #tpu.memory_space<semaphore_mem>> -> memref<!tpu.dma_semaphore, #tpu.memory_space<semaphore_mem>>
    tpu.wait_dma2 semaphore(%474 : memref<!tpu.dma_semaphore, #tpu.memory_space<semaphore_mem>>) src(%470 : memref<128xf32, #tpu.memory_space<any>>) dst(%472 : memref<128xf32, #tpu.memory_space<vmem>>)
    %c31_i32_252 = arith.constant 31 : i32
    %c31_i32_253 = arith.constant 31 : i32
    %c0_i32_254 = arith.constant 0 : i32
    %475 = tpu.memref_slice %arg2[%282, %c0_i32_254] : memref<512x128xf32, #tpu.memory_space<any>> -> memref<1x128xf32, #tpu.memory_space<any>>
    %476 = tpu.memref_squeeze %475 : memref<1x128xf32, #tpu.memory_space<any>> -> memref<128xf32, #tpu.memory_space<any>>
    %c0_i32_255 = arith.constant 0 : i32
    %477 = tpu.memref_slice %arg4[%c31_i32_252, %c0_i32_255] : memref<32x128xf32, #tpu.memory_space<vmem>> -> memref<1x128xf32, #tpu.memory_space<vmem>>
    %478 = tpu.memref_squeeze %477 : memref<1x128xf32, #tpu.memory_space<vmem>> -> memref<128xf32, #tpu.memory_space<vmem>>
    %479 = tpu.memref_slice %arg5[%c31_i32_253] : memref<32x!tpu.dma_semaphore, #tpu.memory_space<semaphore_mem>> -> memref<1x!tpu.dma_semaphore, #tpu.memory_space<semaphore_mem>>
    %480 = tpu.memref_squeeze %479 : memref<1x!tpu.dma_semaphore, #tpu.memory_space<semaphore_mem>> -> memref<!tpu.dma_semaphore, #tpu.memory_space<semaphore_mem>>
    tpu.wait_dma2 semaphore(%480 : memref<!tpu.dma_semaphore, #tpu.memory_space<semaphore_mem>>) src(%476 : memref<128xf32, #tpu.memory_space<any>>) dst(%478 : memref<128xf32, #tpu.memory_space<vmem>>)
    %c0 = arith.constant 0 : index
    %c0_256 = arith.constant 0 : index
    %481 = vector.load %arg4[%c0, %c0_256] : memref<32x128xf32, #tpu.memory_space<vmem>>, vector<32x128xf32>
    %c0_257 = arith.constant 0 : index
    %c0_258 = arith.constant 0 : index
    %482 = vector.load %arg3[%c0_257, %c0_258] : memref<32x128xf32, #tpu.memory_space<vmem>>, vector<32x128xf32>
    tpu.vector_store %arg3[%c0_257, %c0_258], %481 {strides = array<i32>} : memref<32x128xf32, #tpu.memory_space<vmem>>, vector<32x128xf32>,
    return
  }
  func.func @transform_1(%arg0: i32, %arg1: memref<256xi32, #tpu.memory_space<smem>>) -> (i32, i32) {
    %c0_i32 = arith.constant 0 : i32
    %c0_i32_0 = arith.constant 0 : i32
    return %arg0, %c0_i32 : i32, i32
  }
}

</mosaic_0001>

<bundles_post_ra>
// kernel: tpu_custom_call.1
= control target key start
LH: loop header
LB: loop body
LE: loop exit
PB: predicated region body
PF: predicated region fallthrough
CT: control target
= control target key end

     0   :  { %s2775_s0 = inlined_call_operand.hbm [shape: s32[256], index: 0, kind: input, shape index: {}]   ;;  %s2776_s1 = inlined_call_operand.hbm [shape: f32[512,128], index: 1, kind: input, shape index: {}]   ;;  %s2777_s2 = inlined_call_operand.hbm [shape: f32[256,128], index: 2, kind: output, shape index: {}]  }
   0x1   :  { %s1155_s11 = scalar_lea.hbm %s2775_s0, 32 }
   0x2   :  { %p1156_p0 = scmp.ne.s32.totalorder %s2775_s0, %s1155_s11  ;;  %p1159_p1 = scmp.lt.u32.totalorder %s1155_s11, %s2775_s0 }
   0x4   :  { %p1161_p2 = pnand %p1159_p1, %p1156_p0 }
   0x6   :  { %1164 = shalt.err (!%p1161_p2)  }
   0x7   :  { %s2055_s16 = smov [#allocation5]  }
   0x8   :  { %8 = dma.hbm_to_smem %s2775_s0, 32, %s2055_s16, [#allocation4] }
   0x9   :  { %1973 = dma.done.wait [#allocation4], 32 }
   0xa   :  { %1974 = vsyncadd [#allocation4], 4294967264 }
   0xb   :  { %10 = sfence }
   0xc   :  { %11 = vsyncpa [#allocation7], 0 }
   0xd   :  { %13 = vsyncpa [#allocation7 + $0x1], 0  ;;  %s2118_s19 = smov 0   ;;  %s2120_s20 = smov 0  }
   0xe   :  { %s2122_s21 = smov 0  }
   0xf LB: > { %s1014_s0 = sadd.s32 4294967295, %s2053_s21   ;;  %s2135_s22 = sadd.s32 1, %s2053_s21   ;;  %s2053_s21 = sphi %s2122_s21, %s2784_s21   ;;  %s2049_s20 = sphi %s2120_s20, %s2783_s20   ;;  %s2045_s19 = sphi %s2118_s19, %s2782_s19  }
  0x10   : > { %s22_s23 = ssub.s32 %s2053_s21, %s2135_s22  ;;  %s25_s24 = sadd.s32 1, %s2049_s20 }
  0x11   : > { %p23_p3 = scmp.eq.s32.totalorder %s22_s23, 0  ;;  %p1015_p4 = scmp.ne.s32.totalorder %s22_s23, 0 }
  0x12   : > { %p29_p5 = scmp.eq.s32.totalorder %s2053_s21, 7  ;;  %p34_p6 = scmp.ne.s32.totalorder %s2049_s20, %s2045_s19 }
  0x13   : > { %s2144_s25 = scalar_select %p23_p3, %s2049_s20, %s25_s24  }
  0x14   : > { %p2146_p7 = por %p1015_p4, %p29_p5  ;;  %p35_p8 = scmp.eq.s32.totalorder %s1014_s0, 7 }
  0x15   : > { %p1016_p10 = scmp.ge.s32.totalorder %s2053_s21, 8 }
  0x16   : > { %p2150_p9 = por %p35_p8, %p34_p6  ;;  %s2778_s28 = sand.u32 (!%p1016_p10), 1, %s2049_s20  }
  0x17   : > { %44 = sbr.rel (%p1016_p10) target bundleno = 834 (0x342), region = 12  ;;  %s2157_s29 = sshll.u32 (!%p1016_p10), %s2053_s21, 5 }
  0x18   : > { %s2161_s30 = sshll.u32 (!%p1016_p10), %s2778_s28, 5  ;;  %s54_s3 = sld [smem:[#allocation5 + %s2157_s29]] (!%p1016_p10) }
  0x19   : > { %s2056_s4 = smov (!%p1016_p10), [#allocation2]   ;;  %s68_s6 = sadd.s32 (!%p1016_p10), 1, %s2157_s29 }
  0x1a   : > { %s64_s5 = sshll.u32 (!%p1016_p10), %s2056_s4, 4  ;;  %s2167_s7 = sld [smem:[#allocation5 + %s68_s6]] (!%p1016_p10)  ;;  %s2165_s5 = int_to_ptr.vmem [resolvable:$true] %s64_s5 }
  0x1b   : > { %s85_s8 = sadd.s32 (!%p1016_p10), 2, %s2157_s29  ;;  %s2057_s9 = smov (!%p1016_p10), [#allocation2 + $0x1]  }
  0x1c   : > { %s81_s10 = sshll.u32 (!%p1016_p10), %s2057_s9, 4  ;;  %s2170_s11 = sld [smem:[#allocation5 + %s85_s8]] (!%p1016_p10)  ;;  %s2172_s10 = int_to_ptr.vmem [resolvable:$true] %s81_s10 }
  0x1d   : > { %s2180_s0 = scalar_lea.hbm (!%p1016_p10), %s2776_s1, 8192 }
  0x1e   : > { %s1019_s12 = sshll.u32 %s54_s3, 4 }
  0x1f   : > { %s56_s15 = scalar_lea.hbm %s2776_s1, %s1019_s12 }
  0x20   : > { %s1165_s16 = scalar_lea.hbm %s56_s15, 16  ;;  %p1168_p12 = scmp.lt.u32.totalorder %s56_s15, %s2776_s1 }
  0x21   : > { %p1166_p11 = scmp.ne.s32.totalorder %s56_s15, %s1165_s16  ;;  %p1169_p13 = scmp.lt.u32.totalorder %s2180_s0, %s1165_s16 }
  0x22   : > { %p1171_p1 = scmp.lt.u32.totalorder %s1165_s16, %s56_s15 }
  0x23   : > { %p1170_p0 = por %p1169_p13, %p1168_p12 }
  0x25   : > { %p1172_p2 = por %p1171_p1, %p1170_p0 }
  0x27   : > { %p1173_p3 = pnand %p1172_p2, %p1166_p11 }
  0x29   : > { %1176 = shalt.err (!%p1173_p3)  }
  0x2a   : > { %s1177_s3 = scalar_lea.vmem %s2165_s5, 16  ;;  %s2189_s4 = scalar_lea.vmem %s2165_s5, 512 }
  0x2b   : > { %p1178_p4 = scmp.ne.s32.totalorder %s2165_s5, %s1177_s3  ;;  %p1182_p5 = scmp.lt.s32.totalorder %s2165_s5, %s2165_s5 }
  0x2c   : > { %p1183_p6 = scmp.lt.s32.totalorder %s2189_s4, %s1177_s3 }
  0x2e   : > { %p1184_p8 = por %p1183_p6, %p1182_p5 }
  0x30   : > { %p1185_p10 = pnand %p1184_p8, %p1178_p4 }
  0x32   : > { %1188 = shalt.err (!%p1185_p10)  }
  0x33   : > { %67 = dma.hbm_to_vmem [thread:$0]  %s56_s15, 16, %s2165_s5, [#allocation3] }
  0x34   : > { %s1020_s6 = sshll.u32 %s2167_s7, 4  ;;  %s2058_s8 = smov [#allocation2 + $0x2]  }
  0x35   : > { %s98_s9 = sshll.u32 %s2058_s8, 4  ;;  %s71_s14 = scalar_lea.hbm %s2776_s1, %s1020_s6  ;;  %s2199_s9 = int_to_ptr.vmem [resolvable:$true] %s98_s9 }
  0x36   : > { %s1189_s16 = scalar_lea.hbm %s71_s14, 16  ;;  %p1192_p12 = scmp.lt.u32.totalorder %s71_s14, %s2776_s1 }
  0x37   : > { %p1190_p11 = scmp.ne.s32.totalorder %s71_s14, %s1189_s16  ;;  %p1193_p13 = scmp.lt.u32.totalorder %s2180_s0, %s1189_s16 }
  0x38   : > { %p1195_p1 = scmp.lt.u32.totalorder %s1189_s16, %s71_s14 }
  0x39   : > { %p1194_p0 = por %p1193_p13, %p1192_p12 }
  0x3b   : > { %p1196_p2 = por %p1195_p1, %p1194_p0 }
  0x3d   : > { %p1197_p3 = pnand %p1196_p2, %p1190_p11 }
  0x3f   : > { %1200 = shalt.err (!%p1197_p3)  }
  0x40   : > { %s1201_s7 = scalar_lea.vmem %s2172_s10, 16  ;;  %p1206_p5 = scmp.lt.s32.totalorder %s2172_s10, %s2165_s5 }
  0x41   : > { %p1202_p4 = scmp.ne.s32.totalorder %s2172_s10, %s1201_s7  ;;  %p1207_p6 = scmp.lt.s32.totalorder %s2189_s4, %s1201_s7 }
  0x43   : > { %p1208_p8 = por %p1207_p6, %p1206_p5 }
  0x45   : > { %p1209_p10 = pnand %p1208_p8, %p1202_p4 }
  0x47   : > { %1212 = shalt.err (!%p1209_p10)  }
  0x48   : > { %84 = dma.hbm_to_vmem [thread:$0]  %s71_s14, 16, %s2172_s10, [#allocation3 + $0x1] }
  0x49   : > { %s1021_s15 = sshll.u32 %s2170_s11, 4  ;;  %s102_s23 = sadd.s32 3, %s2157_s29 }
  0x4a   : > { %s88_s6 = scalar_lea.hbm %s2776_s1, %s1021_s15  ;;  %s2216_s8 = sld [smem:[#allocation5 + %s102_s23]] }
  0x4b   : > { %s1213_s12 = scalar_lea.hbm %s88_s6, 16  ;;  %p1216_p12 = scmp.lt.u32.totalorder %s88_s6, %s2776_s1 }
  0x4c   : > { %p1214_p11 = scmp.ne.s32.totalorder %s88_s6, %s1213_s12  ;;  %p1217_p13 = scmp.lt.u32.totalorder %s2180_s0, %s1213_s12 }
  0x4d   : > { %p1219_p1 = scmp.lt.u32.totalorder %s1213_s12, %s88_s6 }
  0x4e   : > { %p1218_p0 = por %p1217_p13, %p1216_p12 }
  0x50   : > { %p1220_p2 = por %p1219_p1, %p1218_p0 }
  0x52   : > { %p1221_p3 = pnand %p1220_p2, %p1214_p11 }
  0x54   : > { %1224 = shalt.err (!%p1221_p3)  }
  0x55   : > { %s1225_s10 = scalar_lea.vmem %s2199_s9, 16  ;;  %p1230_p5 = scmp.lt.s32.totalorder %s2199_s9, %s2165_s5 }
  0x56   : > { %p1226_p4 = scmp.ne.s32.totalorder %s2199_s9, %s1225_s10  ;;  %p1231_p6 = scmp.lt.s32.totalorder %s2189_s4, %s1225_s10 }
  0x58   : > { %p1232_p8 = por %p1231_p6, %p1230_p5 }
  0x5a   : > { %p1233_p10 = pnand %p1232_p8, %p1226_p4 }
  0x5c   : > { %1236 = shalt.err (!%p1233_p10)  }
  0x5d   : > { %101 = dma.hbm_to_vmem [thread:$0]  %s88_s6, 16, %s2199_s9, [#allocation3 + $0x2] }
  0x5e   : > { %s119_s11 = sadd.s32 4, %s2157_s29  ;;  %s2059_s14 = smov [#allocation2 + $0x3]  }
  0x5f   : > { %s115_s17 = sshll.u32 %s2059_s14, 4  ;;  %s120_s18 = sld [smem:[#allocation5 + %s119_s11]]  ;;  %s116_s17 = int_to_ptr.vmem [resolvable:$true] %s115_s17 }
  0x60   : > { %s2060_s7 = smov [#allocation2 + $0x4]   ;;  %s136_s23 = sadd.s32 5, %s2157_s29 }
  0x61   : > { %s132_s15 = sshll.u32 %s2060_s7, 4  ;;  %s1022_s24 = sshll.u32 %s2216_s8, 4  ;;  %s2231_s15 = int_to_ptr.vmem [resolvable:$true] %s132_s15 }
  0x62   : > { %s105_s13 = scalar_lea.hbm %s2776_s1, %s1022_s24  ;;  %s2236_s16 = sld [smem:[#allocation5 + %s136_s23]] }
  0x63   : > { %s1237_s10 = scalar_lea.hbm %s105_s13, 16  ;;  %p1240_p12 = scmp.lt.u32.totalorder %s105_s13, %s2776_s1 }
  0x64   : > { %p1238_p11 = scmp.ne.s32.totalorder %s105_s13, %s1237_s10  ;;  %p1241_p13 = scmp.lt.u32.totalorder %s2180_s0, %s1237_s10 }
  0x65   : > { %p1243_p1 = scmp.lt.u32.totalorder %s1237_s10, %s105_s13 }
  0x66   : > { %p1242_p0 = por %p1241_p13, %p1240_p12 }
  0x68   : > { %p1244_p2 = por %p1243_p1, %p1242_p0 }
  0x6a   : > { %p1245_p3 = pnand %p1244_p2, %p1238_p11 }
  0x6c   : > { %1248 = shalt.err (!%p1245_p3)  }
  0x6d   : > { %s1249_s8 = scalar_lea.vmem %s116_s17, 16  ;;  %p1254_p5 = scmp.lt.s32.totalorder %s116_s17, %s2165_s5 }
  0x6e   : > { %p1250_p4 = scmp.ne.s32.totalorder %s116_s17, %s1249_s8  ;;  %p1255_p6 = scmp.lt.s32.totalorder %s2189_s4, %s1249_s8 }
  0x70   : > { %p1256_p8 = por %p1255_p6, %p1254_p5 }
  0x72   : > { %p1257_p10 = pnand %p1256_p8, %p1250_p4 }
  0x74   : > { %1260 = shalt.err (!%p1257_p10)  }
  0x75   : > { %118 = dma.hbm_to_vmem [thread:$0]  %s105_s13, 16, %s116_s17, [#allocation3 + $0x3] }
  0x76   : > { %s1023_s11 = sshll.u32 %s120_s18, 4  ;;  %s2061_s24 = smov [#allocation2 + $0x5]  }
  0x77   : > { %s122_s23 = scalar_lea.hbm %s2776_s1, %s1023_s11  ;;  %s149_s3 = sshll.u32 %s2061_s24, 4  ;;  %s150_s3 = int_to_ptr.vmem [resolvable:$true] %s149_s3 }
  0x78   : > { %s1261_s12 = scalar_lea.hbm %s122_s23, 16  ;;  %p1264_p12 = scmp.lt.u32.totalorder %s122_s23, %s2776_s1 }
  0x79   : > { %p1262_p11 = scmp.ne.s32.totalorder %s122_s23, %s1261_s12  ;;  %p1265_p13 = scmp.lt.u32.totalorder %s2180_s0, %s1261_s12 }
  0x7a   : > { %p1267_p1 = scmp.lt.u32.totalorder %s1261_s12, %s122_s23 }
  0x7b   : > { %p1266_p0 = por %p1265_p13, %p1264_p12 }
  0x7d   : > { %p1268_p2 = por %p1267_p1, %p1266_p0 }
  0x7f   : > { %p1269_p3 = pnand %p1268_p2, %p1262_p11 }
  0x81   : > { %1272 = shalt.err (!%p1269_p3)  }
  0x82   : > { %s1273_s17 = scalar_lea.vmem %s2231_s15, 16  ;;  %p1278_p5 = scmp.lt.s32.totalorder %s2231_s15, %s2165_s5 }
  0x83   : > { %p1274_p4 = scmp.ne.s32.totalorder %s2231_s15, %s1273_s17  ;;  %p1279_p6 = scmp.lt.s32.totalorder %s2189_s4, %s1273_s17 }
  0x85   : > { %p1280_p8 = por %p1279_p6, %p1278_p5 }
  0x87   : > { %p1281_p10 = pnand %p1280_p8, %p1274_p4 }
  0x89   : > { %1284 = shalt.err (!%p1281_p10)  }
  0x8a   : > { %135 = dma.hbm_to_vmem [thread:$0]  %s122_s23, 16, %s2231_s15, [#allocation3 + $0x4] }
  0x8b   : > { %s153_s18 = sadd.s32 6, %s2157_s29  ;;  %s1024_s13 = sshll.u32 %s2236_s16, 4 }
  0x8c   : > { %s2259_s6 = sld [smem:[#allocation5 + %s153_s18]]  ;;  %s139_s14 = scalar_lea.hbm %s2776_s1, %s1024_s13 }
  0x8d   : > { %s1285_s7 = scalar_lea.hbm %s139_s14, 16  ;;  %p1288_p12 = scmp.lt.u32.totalorder %s139_s14, %s2776_s1 }
  0x8e   : > { %p1286_p11 = scmp.ne.s32.totalorder %s139_s14, %s1285_s7  ;;  %p1289_p13 = scmp.lt.u32.totalorder %s2180_s0, %s1285_s7 }
  0x8f   : > { %p1291_p1 = scmp.lt.u32.totalorder %s1285_s7, %s139_s14 }
  0x90   : > { %p1290_p0 = por %p1289_p13, %p1288_p12 }
  0x92   : > { %p1292_p2 = por %p1291_p1, %p1290_p0 }
  0x94   : > { %p1293_p3 = pnand %p1292_p2, %p1286_p11 }
  0x96   : > { %1296 = shalt.err (!%p1293_p3)  }
  0x97   : > { %s1297_s15 = scalar_lea.vmem %s150_s3, 16  ;;  %p1302_p5 = scmp.lt.s32.totalorder %s150_s3, %s2165_s5 }
  0x98   : > { %p1298_p4 = scmp.ne.s32.totalorder %s150_s3, %s1297_s15  ;;  %p1303_p6 = scmp.lt.s32.totalorder %s2189_s4, %s1297_s15 }
  0x9a   : > { %p1304_p8 = por %p1303_p6, %p1302_p5 }
  0x9c   : > { %p1305_p10 = pnand %p1304_p8, %p1298_p4 }
  0x9e   : > { %1308 = shalt.err (!%p1305_p10)  }
  0x9f   : > { %152 = dma.hbm_to_vmem [thread:$0]  %s139_s14, 16, %s150_s3, [#allocation3 + $0x5] }
  0xa0   : > { %s2062_s16 = smov [#allocation2 + $0x6]   ;;  %s170_s10 = sadd.s32 7, %s2157_s29 }
  0xa1   : > { %s166_s23 = sshll.u32 %s2062_s16, 4  ;;  %s2271_s9 = sld [smem:[#allocation5 + %s170_s10]]  ;;  %s167_s23 = int_to_ptr.vmem [resolvable:$true] %s166_s23 }
  0xa2   : > { %s187_s17 = sadd.s32 8, %s2157_s29  ;;  %s1025_s18 = sshll.u32 %s2259_s6, 4 }
  0xa3   : > { %s2063_s13 = smov [#allocation2 + $0x7]   ;;  %s156_s24 = scalar_lea.hbm %s2776_s1, %s1025_s18 }
  0xa4   : > { %s183_s8 = sshll.u32 %s2063_s13, 4  ;;  %s1309_s3 = scalar_lea.hbm %s156_s24, 16  ;;  %s2278_s8 = int_to_ptr.vmem [resolvable:$true] %s183_s8 }
  0xa5   : > { %p1310_p11 = scmp.ne.s32.totalorder %s156_s24, %s1309_s3  ;;  %p1312_p12 = scmp.lt.u32.totalorder %s156_s24, %s2776_s1 }
  0xa6   : > { %p1313_p13 = scmp.lt.u32.totalorder %s2180_s0, %s1309_s3  ;;  %p1315_p1 = scmp.lt.u32.totalorder %s1309_s3, %s156_s24 }
  0xa8   : > { %p1314_p0 = por %p1313_p13, %p1312_p12 }
  0xaa   : > { %p1316_p2 = por %p1315_p1, %p1314_p0 }
  0xac   : > { %p1317_p3 = pnand %p1316_p2, %p1310_p11 }
  0xae   : > { %1320 = shalt.err (!%p1317_p3)  }
  0xaf   : > { %s1321_s6 = scalar_lea.vmem %s167_s23, 16  ;;  %p1326_p5 = scmp.lt.s32.totalorder %s167_s23, %s2165_s5 }
  0xb0   : > { %p1322_p4 = scmp.ne.s32.totalorder %s167_s23, %s1321_s6  ;;  %p1327_p6 = scmp.lt.s32.totalorder %s2189_s4, %s1321_s6 }
  0xb2   : > { %p1328_p8 = por %p1327_p6, %p1326_p5 }
  0xb4   : > { %p1329_p10 = pnand %p1328_p8, %p1322_p4 }
  0xb6   : > { %1332 = shalt.err (!%p1329_p10)  }
  0xb7   : > { %169 = dma.hbm_to_vmem [thread:$0]  %s156_s24, 16, %s167_s23, [#allocation3 + $0x6] }
  0xb8   : > { %s2286_s15 = sld [smem:[#allocation5 + %s187_s17]]  ;;  %s1026_s16 = sshll.u32 %s2271_s9, 4 }
  0xb9   : > { %s2064_s10 = smov [#allocation2 + $0x8]   ;;  %s173_s7 = scalar_lea.hbm %s2776_s1, %s1026_s16 }
  0xba   : > { %s200_s18 = sshll.u32 %s2064_s10, 4  ;;  %s1333_s3 = scalar_lea.hbm %s173_s7, 16  ;;  %s2292_s18 = int_to_ptr.vmem [resolvable:$true] %s200_s18 }
  0xbb   : > { %p1334_p11 = scmp.ne.s32.totalorder %s173_s7, %s1333_s3  ;;  %p1336_p12 = scmp.lt.u32.totalorder %s173_s7, %s2776_s1 }
  0xbc   : > { %p1337_p13 = scmp.lt.u32.totalorder %s2180_s0, %s1333_s3  ;;  %p1339_p1 = scmp.lt.u32.totalorder %s1333_s3, %s173_s7 }
  0xbe   : > { %p1338_p0 = por %p1337_p13, %p1336_p12 }
  0xc0   : > { %p1340_p2 = por %p1339_p1, %p1338_p0 }
  0xc2   : > { %p1341_p3 = pnand %p1340_p2, %p1334_p11 }
  0xc4   : > { %1344 = shalt.err (!%p1341_p3)  }
  0xc5   : > { %s1345_s23 = scalar_lea.vmem %s2278_s8, 16  ;;  %p1350_p5 = scmp.lt.s32.totalorder %s2278_s8, %s2165_s5 }
  0xc6   : > { %p1346_p4 = scmp.ne.s32.totalorder %s2278_s8, %s1345_s23  ;;  %p1351_p6 = scmp.lt.s32.totalorder %s2189_s4, %s1345_s23 }
  0xc8   : > { %p1352_p8 = por %p1351_p6, %p1350_p5 }
  0xca   : > { %p1353_p10 = pnand %p1352_p8, %p1346_p4 }
  0xcc   : > { %1356 = shalt.err (!%p1353_p10)  }
  0xcd   : > { %186 = dma.hbm_to_vmem [thread:$0]  %s173_s7, 16, %s2278_s8, [#allocation3 + $0x7] }
  0xce   : > { %s204_s9 = sadd.s32 9, %s2157_s29  ;;  %s2065_s24 = smov [#allocation2 + $0x9]  }
  0xcf   : > { %s2305_s17 = sld [smem:[#allocation5 + %s204_s9]]  ;;  %s217_s6 = sshll.u32 %s2065_s24, 4  ;;  %s2308_s6 = int_to_ptr.vmem [resolvable:$true] %s217_s6 }
  0xd0   : > { %s1027_s16 = sshll.u32 %s2286_s15, 4  ;;  %s221_s3 = sadd.s32 10, %s2157_s29 }
  0xd1   : > { %s190_s11 = scalar_lea.hbm %s2776_s1, %s1027_s16 }
  0xd2   : > { %s1357_s14 = scalar_lea.hbm %s190_s11, 16  ;;  %p1360_p12 = scmp.lt.u32.totalorder %s190_s11, %s2776_s1 }
  0xd3   : > { %p1358_p11 = scmp.ne.s32.totalorder %s190_s11, %s1357_s14  ;;  %p1361_p13 = scmp.lt.u32.totalorder %s2180_s0, %s1357_s14 }
  0xd4   : > { %p1363_p1 = scmp.lt.u32.totalorder %s1357_s14, %s190_s11 }
  0xd5   : > { %p1362_p0 = por %p1361_p13, %p1360_p12 }
  0xd7   : > { %p1364_p2 = por %p1363_p1, %p1362_p0 }
  0xd9   : > { %p1365_p3 = pnand %p1364_p2, %p1358_p11 }
  0xdb   : > { %1368 = shalt.err (!%p1365_p3)  }
  0xdc   : > { %s1369_s8 = scalar_lea.vmem %s2292_s18, 16  ;;  %p1374_p5 = scmp.lt.s32.totalorder %s2292_s18, %s2165_s5 }
  0xdd   : > { %p1370_p4 = scmp.ne.s32.totalorder %s2292_s18, %s1369_s8  ;;  %p1375_p6 = scmp.lt.s32.totalorder %s2189_s4, %s1369_s8 }
  0xdf   : > { %p1376_p8 = por %p1375_p6, %p1374_p5 }
  0xe1   : > { %p1377_p10 = pnand %p1376_p8, %p1370_p4 }
  0xe3   : > { %1380 = shalt.err (!%p1377_p10)  }
  0xe4   : > { %203 = dma.hbm_to_vmem [thread:$0]  %s190_s11, 16, %s2292_s18, [#allocation3 + $0x8] }
  0xe5   : > { %s2324_s15 = sld [smem:[#allocation5 + %s221_s3]]  ;;  %s2066_s7 = smov [#allocation2 + $0xa]  }
  0xe6   : > { %s234_s9 = sshll.u32 %s2066_s7, 4  ;;  %s238_s24 = sadd.s32 11, %s2157_s29  ;;  %s2328_s9 = int_to_ptr.vmem [resolvable:$true] %s234_s9 }
  0xe7   : > { %s1028_s16 = sshll.u32 %s2305_s17, 4  ;;  %s2333_s12 = sld [smem:[#allocation5 + %s238_s24]] }
  0xe8   : > { %s207_s14 = scalar_lea.hbm %s2776_s1, %s1028_s16 }
  0xe9   : > { %s1381_s23 = scalar_lea.hbm %s207_s14, 16  ;;  %p1384_p12 = scmp.lt.u32.totalorder %s207_s14, %s2776_s1 }
  0xea   : > { %p1382_p11 = scmp.ne.s32.totalorder %s207_s14, %s1381_s23  ;;  %p1385_p13 = scmp.lt.u32.totalorder %s2180_s0, %s1381_s23 }
  0xeb   : > { %p1387_p1 = scmp.lt.u32.totalorder %s1381_s23, %s207_s14 }
  0xec   : > { %p1386_p0 = por %p1385_p13, %p1384_p12 }
  0xee   : > { %p1388_p2 = por %p1387_p1, %p1386_p0 }
  0xf0   : > { %p1389_p3 = pnand %p1388_p2, %p1382_p11 }
  0xf2   : > { %1392 = shalt.err (!%p1389_p3)  }
  0xf3   : > { %s1393_s18 = scalar_lea.vmem %s2308_s6, 16  ;;  %p1398_p5 = scmp.lt.s32.totalorder %s2308_s6, %s2165_s5 }
  0xf4   : > { %p1394_p4 = scmp.ne.s32.totalorder %s2308_s6, %s1393_s18  ;;  %p1399_p6 = scmp.lt.s32.totalorder %s2189_s4, %s1393_s18 }
  0xf6   : > { %p1400_p8 = por %p1399_p6, %p1398_p5 }
  0xf8   : > { %p1401_p10 = pnand %p1400_p8, %p1394_p4 }
  0xfa   : > { %1404 = shalt.err (!%p1401_p10)  }
  0xfb   : > { %220 = dma.hbm_to_vmem [thread:$0]  %s207_s14, 16, %s2308_s6, [#allocation3 + $0x9] }
  0xfc   : > { %s255_s28 = sadd.s32 12, %s2157_s29  ;;  %s1029_s17 = sshll.u32 %s2324_s15, 4 }
  0xfd   : > { %s2067_s11 = smov [#allocation2 + $0xb]   ;;  %s224_s16 = scalar_lea.hbm %s2776_s1, %s1029_s17 }
  0xfe   : > { %s251_s3 = sshll.u32 %s2067_s11, 4  ;;  %s1405_s10 = scalar_lea.hbm %s224_s16, 16  ;;  %s2350_s3 = int_to_ptr.vmem [resolvable:$true] %s251_s3 }
  0xff   : > { %p1406_p11 = scmp.ne.s32.totalorder %s224_s16, %s1405_s10  ;;  %p1408_p12 = scmp.lt.u32.totalorder %s224_s16, %s2776_s1 }
 0x100   : > { %p1409_p13 = scmp.lt.u32.totalorder %s2180_s0, %s1405_s10  ;;  %p1411_p1 = scmp.lt.u32.totalorder %s1405_s10, %s224_s16 }
 0x102   : > { %p1410_p0 = por %p1409_p13, %p1408_p12 }
 0x104   : > { %p1412_p2 = por %p1411_p1, %p1410_p0 }
 0x106   : > { %p1413_p3 = pnand %p1412_p2, %p1406_p11 }
 0x108   : > { %1416 = shalt.err (!%p1413_p3)  }
 0x109   : > { %s1417_s6 = scalar_lea.vmem %s2328_s9, 16  ;;  %p1422_p5 = scmp.lt.s32.totalorder %s2328_s9, %s2165_s5 }
 0x10a   : > { %p1418_p4 = scmp.ne.s32.totalorder %s2328_s9, %s1417_s6  ;;  %p1423_p6 = scmp.lt.s32.totalorder %s2189_s4, %s1417_s6 }
 0x10c   : > { %p1424_p8 = por %p1423_p6, %p1422_p5 }
 0x10e   : > { %p1425_p10 = pnand %p1424_p8, %p1418_p4 }
 0x110   : > { %1428 = shalt.err (!%p1425_p10)  }
 0x111   : > { %237 = dma.hbm_to_vmem [thread:$0]  %s224_s16, 16, %s2328_s9, [#allocation3 + $0xa] }
 0x112   : > { %s1030_s15 = sshll.u32 %s2333_s12, 4  ;;  %s2363_s14 = sld [smem:[#allocation5 + %s255_s28]] }
 0x113   : > { %s241_s17 = scalar_lea.hbm %s2776_s1, %s1030_s15 }
 0x114   : > { %s1429_s11 = scalar_lea.hbm %s241_s17, 16  ;;  %p1432_p12 = scmp.lt.u32.totalorder %s241_s17, %s2776_s1 }
 0x115   : > { %p1430_p11 = scmp.ne.s32.totalorder %s241_s17, %s1429_s11  ;;  %p1433_p13 = scmp.lt.u32.totalorder %s2180_s0, %s1429_s11 }
 0x116   : > { %p1435_p1 = scmp.lt.u32.totalorder %s1429_s11, %s241_s17 }
 0x117   : > { %p1434_p0 = por %p1433_p13, %p1432_p12 }
 0x119   : > { %p1436_p2 = por %p1435_p1, %p1434_p0 }
 0x11b   : > { %p1437_p3 = pnand %p1436_p2, %p1430_p11 }
 0x11d   : > { %1440 = shalt.err (!%p1437_p3)  }
 0x11e   : > { %s1441_s9 = scalar_lea.vmem %s2350_s3, 16  ;;  %p1446_p5 = scmp.lt.s32.totalorder %s2350_s3, %s2165_s5 }
 0x11f   : > { %p1442_p4 = scmp.ne.s32.totalorder %s2350_s3, %s1441_s9  ;;  %p1447_p6 = scmp.lt.s32.totalorder %s2189_s4, %s1441_s9 }
 0x121   : > { %p1448_p8 = por %p1447_p6, %p1446_p5 }
 0x123   : > { %p1449_p10 = pnand %p1448_p8, %p1442_p4 }
 0x125   : > { %1452 = shalt.err (!%p1449_p10)  }
 0x126   : > { %254 = dma.hbm_to_vmem [thread:$0]  %s241_s17, 16, %s2350_s3, [#allocation3 + $0xb] }
 0x127   : > { %s2068_s12 = smov [#allocation2 + $0xc]   ;;  %s272_s16 = sadd.s32 13, %s2157_s29 }
 0x128   : > { %s268_s28 = sshll.u32 %s2068_s12, 4  ;;  %s2379_s10 = sld [smem:[#allocation5 + %s272_s16]]  ;;  %s269_s28 = int_to_ptr.vmem [resolvable:$true] %s268_s28 }
 0x129   : > { %s289_s13 = sadd.s32 14, %s2157_s29  ;;  %s1031_s23 = sshll.u32 %s2363_s14, 4 }
 0x12a   : > { %s2069_s6 = smov [#allocation2 + $0xd]   ;;  %s258_s11 = scalar_lea.hbm %s2776_s1, %s1031_s23 }
 0x12b   : > { %s285_s15 = sshll.u32 %s2069_s6, 4  ;;  %s1453_s7 = scalar_lea.hbm %s258_s11, 16  ;;  %s2386_s15 = int_to_ptr.vmem [resolvable:$true] %s285_s15 }
 0x12c   : > { %p1454_p11 = scmp.ne.s32.totalorder %s258_s11, %s1453_s7  ;;  %p1456_p12 = scmp.lt.u32.totalorder %s258_s11, %s2776_s1 }
 0x12d   : > { %p1457_p13 = scmp.lt.u32.totalorder %s2180_s0, %s1453_s7  ;;  %p1459_p1 = scmp.lt.u32.totalorder %s1453_s7, %s258_s11 }
 0x12f   : > { %p1458_p0 = por %p1457_p13, %p1456_p12 }
 0x131   : > { %p1460_p2 = por %p1459_p1, %p1458_p0 }
 0x133   : > { %p1461_p3 = pnand %p1460_p2, %p1454_p11 }
 0x135   : > { %1464 = shalt.err (!%p1461_p3)  }
 0x136   : > { %s1465_s14 = scalar_lea.vmem %s269_s28, 16  ;;  %p1470_p5 = scmp.lt.s32.totalorder %s269_s28, %s2165_s5 }
 0x137   : > { %p1466_p4 = scmp.ne.s32.totalorder %s269_s28, %s1465_s14  ;;  %p1471_p6 = scmp.lt.s32.totalorder %s2189_s4, %s1465_s14 }
 0x139   : > { %p1472_p8 = por %p1471_p6, %p1470_p5 }
 0x13b   : > { %p1473_p10 = pnand %p1472_p8, %p1466_p4 }
 0x13d   : > { %1476 = shalt.err (!%p1473_p10)  }
 0x13e   : > { %271 = dma.hbm_to_vmem [thread:$0]  %s258_s11, 16, %s269_s28, [#allocation3 + $0xc] }
 0x13f   : > { %s2394_s17 = sld [smem:[#allocation5 + %s289_s13]]  ;;  %s1032_s9 = sshll.u32 %s2379_s10, 4 }
 0x140   : > { %s2070_s12 = smov [#allocation2 + $0xe]   ;;  %s275_s8 = scalar_lea.hbm %s2776_s1, %s1032_s9 }
 0x141   : > { %s302_s16 = sshll.u32 %s2070_s12, 4  ;;  %s1477_s18 = scalar_lea.hbm %s275_s8, 16  ;;  %s2400_s16 = int_to_ptr.vmem [resolvable:$true] %s302_s16 }
 0x142   : > { %p1478_p11 = scmp.ne.s32.totalorder %s275_s8, %s1477_s18  ;;  %p1480_p12 = scmp.lt.u32.totalorder %s275_s8, %s2776_s1 }
 0x143   : > { %p1481_p13 = scmp.lt.u32.totalorder %s2180_s0, %s1477_s18  ;;  %p1483_p1 = scmp.lt.u32.totalorder %s1477_s18, %s275_s8 }
 0x145   : > { %p1482_p0 = por %p1481_p13, %p1480_p12 }
 0x147   : > { %p1484_p2 = por %p1483_p1, %p1482_p0 }
 0x149   : > { %p1485_p3 = pnand %p1484_p2, %p1478_p11 }
 0x14b   : > { %1488 = shalt.err (!%p1485_p3)  }
 0x14c   : > { %s1489_s28 = scalar_lea.vmem %s2386_s15, 16  ;;  %p1494_p5 = scmp.lt.s32.totalorder %s2386_s15, %s2165_s5 }
 0x14d   : > { %p1490_p4 = scmp.ne.s32.totalorder %s2386_s15, %s1489_s28  ;;  %p1495_p6 = scmp.lt.s32.totalorder %s2189_s4, %s1489_s28 }
 0x14f   : > { %p1496_p8 = por %p1495_p6, %p1494_p5 }
 0x151   : > { %p1497_p10 = pnand %p1496_p8, %p1490_p4 }
 0x153   : > { %1500 = shalt.err (!%p1497_p10)  }
 0x154   : > { %288 = dma.hbm_to_vmem [thread:$0]  %s275_s8, 16, %s2386_s15, [#allocation3 + $0xd] }
 0x155   : > { %s306_s10 = sadd.s32 15, %s2157_s29  ;;  %s2071_s11 = smov [#allocation2 + $0xf]  }
 0x156   : > { %s2413_s13 = sld [smem:[#allocation5 + %s306_s10]]  ;;  %s319_s3 = sshll.u32 %s2071_s11, 4  ;;  %s2416_s3 = int_to_ptr.vmem [resolvable:$true] %s319_s3 }
 0x157   : > { %s1033_s14 = sshll.u32 %s2394_s17, 4  ;;  %s323_s6 = sadd.s32 16, %s2157_s29 }
 0x158   : > { %s292_s23 = scalar_lea.hbm %s2776_s1, %s1033_s14 }
 0x159   : > { %s1501_s18 = scalar_lea.hbm %s292_s23, 16  ;;  %p1504_p12 = scmp.lt.u32.totalorder %s292_s23, %s2776_s1 }
 0x15a   : > { %p1502_p11 = scmp.ne.s32.totalorder %s292_s23, %s1501_s18  ;;  %p1505_p13 = scmp.lt.u32.totalorder %s2180_s0, %s1501_s18 }
 0x15b   : > { %p1507_p1 = scmp.lt.u32.totalorder %s1501_s18, %s292_s23 }
 0x15c   : > { %p1506_p0 = por %p1505_p13, %p1504_p12 }
 0x15e   : > { %p1508_p2 = por %p1507_p1, %p1506_p0 }
 0x160   : > { %p1509_p3 = pnand %p1508_p2, %p1502_p11 }
 0x162   : > { %1512 = shalt.err (!%p1509_p3)  }
 0x163   : > { %s1513_s15 = scalar_lea.vmem %s2400_s16, 16  ;;  %p1518_p5 = scmp.lt.s32.totalorder %s2400_s16, %s2165_s5 }
 0x164   : > { %p1514_p4 = scmp.ne.s32.totalorder %s2400_s16, %s1513_s15  ;;  %p1519_p6 = scmp.lt.s32.totalorder %s2189_s4, %s1513_s15 }
 0x166   : > { %p1520_p8 = por %p1519_p6, %p1518_p5 }
 0x168   : > { %p1521_p10 = pnand %p1520_p8, %p1514_p4 }
 0x16a   : > { %1524 = shalt.err (!%p1521_p10)  }
 0x16b   : > { %305 = dma.hbm_to_vmem [thread:$0]  %s292_s23, 16, %s2400_s16, [#allocation3 + $0xe] }
 0x16c   : > { %s2432_s17 = sld [smem:[#allocation5 + %s323_s6]]  ;;  %s2072_s8 = smov [#allocation2 + $0x10]  }
 0x16d   : > { %s336_s28 = sshll.u32 %s2072_s8, 4  ;;  %s340_s10 = sadd.s32 17, %s2157_s29  ;;  %s2436_s28 = int_to_ptr.vmem [resolvable:$true] %s336_s28 }
 0x16e   : > { %s1034_s11 = sshll.u32 %s2413_s13, 4  ;;  %s2441_s18 = sld [smem:[#allocation5 + %s340_s10]] }
 0x16f   : > { %s309_s12 = scalar_lea.hbm %s2776_s1, %s1034_s11 }
 0x170   : > { %s1525_s7 = scalar_lea.hbm %s309_s12, 16  ;;  %p1528_p12 = scmp.lt.u32.totalorder %s309_s12, %s2776_s1 }
 0x171   : > { %p1526_p11 = scmp.ne.s32.totalorder %s309_s12, %s1525_s7  ;;  %p1529_p13 = scmp.lt.u32.totalorder %s2180_s0, %s1525_s7 }
 0x172   : > { %p1531_p1 = scmp.lt.u32.totalorder %s1525_s7, %s309_s12 }
 0x173   : > { %p1530_p0 = por %p1529_p13, %p1528_p12 }
 0x175   : > { %p1532_p2 = por %p1531_p1, %p1530_p0 }
 0x177   : > { %p1533_p3 = pnand %p1532_p2, %p1526_p11 }
 0x179   : > { %1536 = shalt.err (!%p1533_p3)  }
 0x17a   : > { %s1537_s16 = scalar_lea.vmem %s2416_s3, 16  ;;  %p1542_p5 = scmp.lt.s32.totalorder %s2416_s3, %s2165_s5 }
 0x17b   : > { %p1538_p4 = scmp.ne.s32.totalorder %s2416_s3, %s1537_s16  ;;  %p1543_p6 = scmp.lt.s32.totalorder %s2189_s4, %s1537_s16 }
 0x17d   : > { %p1544_p8 = por %p1543_p6, %p1542_p5 }
 0x17f   : > { %p1545_p10 = pnand %p1544_p8, %p1538_p4 }
 0x181   : > { %1548 = shalt.err (!%p1545_p10)  }
 0x182   : > { %322 = dma.hbm_to_vmem [thread:$0]  %s309_s12, 16, %s2416_s3, [#allocation3 + $0xf] }
 0x183   : > { %s357_s13 = sadd.s32 18, %s2157_s29  ;;  %s1035_s23 = sshll.u32 %s2432_s17, 4 }
 0x184   : > { %s2073_s6 = smov [#allocation2 + $0x11]   ;;  %s326_s14 = scalar_lea.hbm %s2776_s1, %s1035_s23 }
 0x185   : > { %s353_s8 = sshll.u32 %s2073_s6, 4  ;;  %s1549_s9 = scalar_lea.hbm %s326_s14, 16  ;;  %s2458_s8 = int_to_ptr.vmem [resolvable:$true] %s353_s8 }
 0x186   : > { %p1550_p11 = scmp.ne.s32.totalorder %s326_s14, %s1549_s9  ;;  %p1552_p12 = scmp.lt.u32.totalorder %s326_s14, %s2776_s1 }
 0x187   : > { %p1553_p13 = scmp.lt.u32.totalorder %s2180_s0, %s1549_s9  ;;  %p1555_p1 = scmp.lt.u32.totalorder %s1549_s9, %s326_s14 }
 0x189   : > { %p1554_p0 = por %p1553_p13, %p1552_p12 }
 0x18b   : > { %p1556_p2 = por %p1555_p1, %p1554_p0 }
 0x18d   : > { %p1557_p3 = pnand %p1556_p2, %p1550_p11 }
 0x18f   : > { %1560 = shalt.err (!%p1557_p3)  }
 0x190   : > { %s1561_s3 = scalar_lea.vmem %s2436_s28, 16  ;;  %p1566_p5 = scmp.lt.s32.totalorder %s2436_s28, %s2165_s5 }
 0x191   : > { %p1562_p4 = scmp.ne.s32.totalorder %s2436_s28, %s1561_s3  ;;  %p1567_p6 = scmp.lt.s32.totalorder %s2189_s4, %s1561_s3 }
 0x193   : > { %p1568_p8 = por %p1567_p6, %p1566_p5 }
 0x195   : > { %p1569_p10 = pnand %p1568_p8, %p1562_p4 }
 0x197   : > { %1572 = shalt.err (!%p1569_p10)  }
 0x198   : > { %339 = dma.hbm_to_vmem [thread:$0]  %s326_s14, 16, %s2436_s28, [#allocation3 + $0x10] }
 0x199   : > { %s1036_s17 = sshll.u32 %s2441_s18, 4  ;;  %s2471_s12 = sld [smem:[#allocation5 + %s357_s13]] }
 0x19a   : > { %s343_s23 = scalar_lea.hbm %s2776_s1, %s1036_s17 }
 0x19b   : > { %s1573_s6 = scalar_lea.hbm %s343_s23, 16  ;;  %p1576_p12 = scmp.lt.u32.totalorder %s343_s23, %s2776_s1 }
 0x19c   : > { %p1574_p11 = scmp.ne.s32.totalorder %s343_s23, %s1573_s6  ;;  %p1577_p13 = scmp.lt.u32.totalorder %s2180_s0, %s1573_s6 }
 0x19d   : > { %p1579_p1 = scmp.lt.u32.totalorder %s1573_s6, %s343_s23 }
 0x19e   : > { %p1578_p0 = por %p1577_p13, %p1576_p12 }
 0x1a0   : > { %p1580_p2 = por %p1579_p1, %p1578_p0 }
 0x1a2   : > { %p1581_p3 = pnand %p1580_p2, %p1574_p11 }
 0x1a4   : > { %1584 = shalt.err (!%p1581_p3)  }
 0x1a5   : > { %s1585_s28 = scalar_lea.vmem %s2458_s8, 16  ;;  %p1590_p5 = scmp.lt.s32.totalorder %s2458_s8, %s2165_s5 }
 0x1a6   : > { %p1586_p4 = scmp.ne.s32.totalorder %s2458_s8, %s1585_s28  ;;  %p1591_p6 = scmp.lt.s32.totalorder %s2189_s4, %s1585_s28 }
 0x1a8   : > { %p1592_p8 = por %p1591_p6, %p1590_p5 }
 0x1aa   : > { %p1593_p10 = pnand %p1592_p8, %p1586_p4 }
 0x1ac   : > { %1596 = shalt.err (!%p1593_p10)  }
 0x1ad   : > { %356 = dma.hbm_to_vmem [thread:$0]  %s343_s23, 16, %s2458_s8, [#allocation3 + $0x11] }
 0x1ae   : > { %s2074_s18 = smov [#allocation2 + $0x12]   ;;  %s374_s14 = sadd.s32 19, %s2157_s29 }
 0x1af   : > { %s370_s13 = sshll.u32 %s2074_s18, 4  ;;  %s2487_s9 = sld [smem:[#allocation5 + %s374_s14]]  ;;  %s371_s13 = int_to_ptr.vmem [resolvable:$true] %s370_s13 }
 0x1b0   : > { %s391_s7 = sadd.s32 20, %s2157_s29  ;;  %s1037_s24 = sshll.u32 %s2471_s12, 4 }
 0x1b1   : > { %s2075_s3 = smov [#allocation2 + $0x13]   ;;  %s360_s6 = scalar_lea.hbm %s2776_s1, %s1037_s24 }
 0x1b2   : > { %s387_s17 = sshll.u32 %s2075_s3, 4  ;;  %s1597_s10 = scalar_lea.hbm %s360_s6, 16  ;;  %s2494_s17 = int_to_ptr.vmem [resolvable:$true] %s387_s17 }
 0x1b3   : > { %p1598_p11 = scmp.ne.s32.totalorder %s360_s6, %s1597_s10  ;;  %p1600_p12 = scmp.lt.u32.totalorder %s360_s6, %s2776_s1 }
 0x1b4   : > { %p1601_p13 = scmp.lt.u32.totalorder %s2180_s0, %s1597_s10  ;;  %p1603_p1 = scmp.lt.u32.totalorder %s1597_s10, %s360_s6 }
 0x1b6   : > { %p1602_p0 = por %p1601_p13, %p1600_p12 }
 0x1b8   : > { %p1604_p2 = por %p1603_p1, %p1602_p0 }
 0x1ba   : > { %p1605_p3 = pnand %p1604_p2, %p1598_p11 }
 0x1bc   : > { %1608 = shalt.err (!%p1605_p3)  }
 0x1bd   : > { %s1609_s12 = scalar_lea.vmem %s371_s13, 16  ;;  %p1614_p5 = scmp.lt.s32.totalorder %s371_s13, %s2165_s5 }
 0x1be   : > { %p1610_p4 = scmp.ne.s32.totalorder %s371_s13, %s1609_s12  ;;  %p1615_p6 = scmp.lt.s32.totalorder %s2189_s4, %s1609_s12 }
 0x1c0   : > { %p1616_p8 = por %p1615_p6, %p1614_p5 }
 0x1c2   : > { %p1617_p10 = pnand %p1616_p8, %p1610_p4 }
 0x1c4   : > { %1620 = shalt.err (!%p1617_p10)  }
 0x1c5   : > { %373 = dma.hbm_to_vmem [thread:$0]  %s360_s6, 16, %s371_s13, [#allocation3 + $0x12] }
 0x1c6   : > { %s2502_s23 = sld [smem:[#allocation5 + %s391_s7]]  ;;  %s1038_s28 = sshll.u32 %s2487_s9, 4 }
 0x1c7   : > { %s2076_s18 = smov [#allocation2 + $0x14]   ;;  %s377_s15 = scalar_lea.hbm %s2776_s1, %s1038_s28 }
 0x1c8   : > { %s404_s14 = sshll.u32 %s2076_s18, 4  ;;  %s1621_s16 = scalar_lea.hbm %s377_s15, 16  ;;  %s2508_s14 = int_to_ptr.vmem [resolvable:$true] %s404_s14 }
 0x1c9   : > { %p1622_p11 = scmp.ne.s32.totalorder %s377_s15, %s1621_s16  ;;  %p1624_p12 = scmp.lt.u32.totalorder %s377_s15, %s2776_s1 }
 0x1ca   : > { %p1625_p13 = scmp.lt.u32.totalorder %s2180_s0, %s1621_s16  ;;  %p1627_p1 = scmp.lt.u32.totalorder %s1621_s16, %s377_s15 }
 0x1cc   : > { %p1626_p0 = por %p1625_p13, %p1624_p12 }
 0x1ce   : > { %p1628_p2 = por %p1627_p1, %p1626_p0 }
 0x1d0   : > { %p1629_p3 = pnand %p1628_p2, %p1622_p11 }
 0x1d2   : > { %1632 = shalt.err (!%p1629_p3)  }
 0x1d3   : > { %s1633_s13 = scalar_lea.vmem %s2494_s17, 16  ;;  %p1638_p5 = scmp.lt.s32.totalorder %s2494_s17, %s2165_s5 }
 0x1d4   : > { %p1634_p4 = scmp.ne.s32.totalorder %s2494_s17, %s1633_s13  ;;  %p1639_p6 = scmp.lt.s32.totalorder %s2189_s4, %s1633_s13 }
 0x1d6   : > { %p1640_p8 = por %p1639_p6, %p1638_p5 }
 0x1d8   : > { %p1641_p10 = pnand %p1640_p8, %p1634_p4 }
 0x1da   : > { %1644 = shalt.err (!%p1641_p10)  }
 0x1db   : > { %390 = dma.hbm_to_vmem [thread:$0]  %s377_s15, 16, %s2494_s17, [#allocation3 + $0x13] }
 0x1dc   : > { %s408_s9 = sadd.s32 21, %s2157_s29  ;;  %s2077_s6 = smov [#allocation2 + $0x15]  }
 0x1dd   : > { %s2521_s7 = sld [smem:[#allocation5 + %s408_s9]]  ;;  %s421_s8 = sshll.u32 %s2077_s6, 4  ;;  %s2524_s8 = int_to_ptr.vmem [resolvable:$true] %s421_s8 }
 0x1de   : > { %s1039_s12 = sshll.u32 %s2502_s23, 4  ;;  %s425_s3 = sadd.s32 22, %s2157_s29 }
 0x1df   : > { %s394_s24 = scalar_lea.hbm %s2776_s1, %s1039_s12 }
 0x1e0   : > { %s1645_s16 = scalar_lea.hbm %s394_s24, 16  ;;  %p1648_p12 = scmp.lt.u32.totalorder %s394_s24, %s2776_s1 }
 0x1e1   : > { %p1646_p11 = scmp.ne.s32.totalorder %s394_s24, %s1645_s16  ;;  %p1649_p13 = scmp.lt.u32.totalorder %s2180_s0, %s1645_s16 }
 0x1e2   : > { %p1651_p1 = scmp.lt.u32.totalorder %s1645_s16, %s394_s24 }
 0x1e3   : > { %p1650_p0 = por %p1649_p13, %p1648_p12 }
 0x1e5   : > { %p1652_p2 = por %p1651_p1, %p1650_p0 }
 0x1e7   : > { %p1653_p3 = pnand %p1652_p2, %p1646_p11 }
 0x1e9   : > { %1656 = shalt.err (!%p1653_p3)  }
 0x1ea   : > { %s1657_s17 = scalar_lea.vmem %s2508_s14, 16  ;;  %p1662_p5 = scmp.lt.s32.totalorder %s2508_s14, %s2165_s5 }
 0x1eb   : > { %p1658_p4 = scmp.ne.s32.totalorder %s2508_s14, %s1657_s17  ;;  %p1663_p6 = scmp.lt.s32.totalorder %s2189_s4, %s1657_s17 }
 0x1ed   : > { %p1664_p8 = por %p1663_p6, %p1662_p5 }
 0x1ef   : > { %p1665_p10 = pnand %p1664_p8, %p1658_p4 }
 0x1f1   : > { %1668 = shalt.err (!%p1665_p10)  }
 0x1f2   : > { %407 = dma.hbm_to_vmem [thread:$0]  %s394_s24, 16, %s2508_s14, [#allocation3 + $0x14] }
 0x1f3   : > { %s2540_s23 = sld [smem:[#allocation5 + %s425_s3]]  ;;  %s2078_s15 = smov [#allocation2 + $0x16]  }
 0x1f4   : > { %s438_s13 = sshll.u32 %s2078_s15, 4  ;;  %s442_s9 = sadd.s32 23, %s2157_s29  ;;  %s2544_s13 = int_to_ptr.vmem [resolvable:$true] %s438_s13 }
 0x1f5   : > { %s1040_s6 = sshll.u32 %s2521_s7, 4  ;;  %s2549_s16 = sld [smem:[#allocation5 + %s442_s9]] }
 0x1f6   : > { %s411_s18 = scalar_lea.hbm %s2776_s1, %s1040_s6 }
 0x1f7   : > { %s1669_s10 = scalar_lea.hbm %s411_s18, 16  ;;  %p1672_p12 = scmp.lt.u32.totalorder %s411_s18, %s2776_s1 }
 0x1f8   : > { %p1670_p11 = scmp.ne.s32.totalorder %s411_s18, %s1669_s10  ;;  %p1673_p13 = scmp.lt.u32.totalorder %s2180_s0, %s1669_s10 }
 0x1f9   : > { %p1675_p1 = scmp.lt.u32.totalorder %s1669_s10, %s411_s18 }
 0x1fa   : > { %p1674_p0 = por %p1673_p13, %p1672_p12 }
 0x1fc   : > { %p1676_p2 = por %p1675_p1, %p1674_p0 }
 0x1fe   : > { %p1677_p3 = pnand %p1676_p2, %p1670_p11 }
 0x200   : > { %1680 = shalt.err (!%p1677_p3)  }
 0x201   : > { %s1681_s14 = scalar_lea.vmem %s2524_s8, 16  ;;  %p1686_p5 = scmp.lt.s32.totalorder %s2524_s8, %s2165_s5 }
 0x202   : > { %p1682_p4 = scmp.ne.s32.totalorder %s2524_s8, %s1681_s14  ;;  %p1687_p6 = scmp.lt.s32.totalorder %s2189_s4, %s1681_s14 }
 0x204   : > { %p1688_p8 = por %p1687_p6, %p1686_p5 }
 0x206   : > { %p1689_p10 = pnand %p1688_p8, %p1682_p4 }
 0x208   : > { %1692 = shalt.err (!%p1689_p10)  }
 0x209   : > { %424 = dma.hbm_to_vmem [thread:$0]  %s411_s18, 16, %s2524_s8, [#allocation3 + $0x15] }
 0x20a   : > { %s459_s7 = sadd.s32 24, %s2157_s29  ;;  %s1041_s24 = sshll.u32 %s2540_s23, 4 }
 0x20b   : > { %s2079_s3 = smov [#allocation2 + $0x17]   ;;  %s428_s12 = scalar_lea.hbm %s2776_s1, %s1041_s24 }
 0x20c   : > { %s455_s15 = sshll.u32 %s2079_s3, 4  ;;  %s1693_s28 = scalar_lea.hbm %s428_s12, 16  ;;  %s2566_s15 = int_to_ptr.vmem [resolvable:$true] %s455_s15 }
 0x20d   : > { %p1694_p11 = scmp.ne.s32.totalorder %s428_s12, %s1693_s28  ;;  %p1696_p12 = scmp.lt.u32.totalorder %s428_s12, %s2776_s1 }
 0x20e   : > { %p1697_p13 = scmp.lt.u32.totalorder %s2180_s0, %s1693_s28  ;;  %p1699_p1 = scmp.lt.u32.totalorder %s1693_s28, %s428_s12 }
 0x210   : > { %p1698_p0 = por %p1697_p13, %p1696_p12 }
 0x212   : > { %p1700_p2 = por %p1699_p1, %p1698_p0 }
 0x214   : > { %p1701_p3 = pnand %p1700_p2, %p1694_p11 }
 0x216   : > { %1704 = shalt.err (!%p1701_p3)  }
 0x217   : > { %s1705_s8 = scalar_lea.vmem %s2544_s13, 16  ;;  %p1710_p5 = scmp.lt.s32.totalorder %s2544_s13, %s2165_s5 }
 0x218   : > { %p1706_p4 = scmp.ne.s32.totalorder %s2544_s13, %s1705_s8  ;;  %p1711_p6 = scmp.lt.s32.totalorder %s2189_s4, %s1705_s8 }
 0x21a   : > { %p1712_p8 = por %p1711_p6, %p1710_p5 }
 0x21c   : > { %p1713_p10 = pnand %p1712_p8, %p1706_p4 }
 0x21e   : > { %1716 = shalt.err (!%p1713_p10)  }
 0x21f   : > { %441 = dma.hbm_to_vmem [thread:$0]  %s428_s12, 16, %s2544_s13, [#allocation3 + $0x16] }
 0x220   : > { %s1042_s23 = sshll.u32 %s2549_s16, 4  ;;  %s2579_s18 = sld [smem:[#allocation5 + %s459_s7]] }
 0x221   : > { %s445_s24 = scalar_lea.hbm %s2776_s1, %s1042_s23 }
 0x222   : > { %s1717_s3 = scalar_lea.hbm %s445_s24, 16  ;;  %p1720_p12 = scmp.lt.u32.totalorder %s445_s24, %s2776_s1 }
 0x223   : > { %p1718_p11 = scmp.ne.s32.totalorder %s445_s24, %s1717_s3  ;;  %p1721_p13 = scmp.lt.u32.totalorder %s2180_s0, %s1717_s3 }
 0x224   : > { %p1723_p1 = scmp.lt.u32.totalorder %s1717_s3, %s445_s24 }
 0x225   : > { %p1722_p0 = por %p1721_p13, %p1720_p12 }
 0x227   : > { %p1724_p2 = por %p1723_p1, %p1722_p0 }
 0x229   : > { %p1725_p3 = pnand %p1724_p2, %p1718_p11 }
 0x22b   : > { %1728 = shalt.err (!%p1725_p3)  }
 0x22c   : > { %s1729_s13 = scalar_lea.vmem %s2566_s15, 16  ;;  %p1734_p5 = scmp.lt.s32.totalorder %s2566_s15, %s2165_s5 }
 0x22d   : > { %p1730_p4 = scmp.ne.s32.totalorder %s2566_s15, %s1729_s13  ;;  %p1735_p6 = scmp.lt.s32.totalorder %s2189_s4, %s1729_s13 }
 0x22f   : > { %p1736_p8 = por %p1735_p6, %p1734_p5 }
 0x231   : > { %p1737_p10 = pnand %p1736_p8, %p1730_p4 }
 0x233   : > { %1740 = shalt.err (!%p1737_p10)  }
 0x234   : > { %458 = dma.hbm_to_vmem [thread:$0]  %s445_s24, 16, %s2566_s15, [#allocation3 + $0x17] }
 0x235   : > { %s2080_s16 = smov [#allocation2 + $0x18]   ;;  %s476_s12 = sadd.s32 25, %s2157_s29 }
 0x236   : > { %s472_s7 = sshll.u32 %s2080_s16, 4  ;;  %s2595_s28 = sld [smem:[#allocation5 + %s476_s12]]  ;;  %s473_s7 = int_to_ptr.vmem [resolvable:$true] %s472_s7 }
 0x237   : > { %s493_s10 = sadd.s32 26, %s2157_s29  ;;  %s1043_s11 = sshll.u32 %s2579_s18, 4 }
 0x238   : > { %s2081_s8 = smov [#allocation2 + $0x19]   ;;  %s462_s3 = scalar_lea.hbm %s2776_s1, %s1043_s11 }
 0x239   : > { %s489_s23 = sshll.u32 %s2081_s8, 4  ;;  %s1741_s9 = scalar_lea.hbm %s462_s3, 16  ;;  %s2602_s23 = int_to_ptr.vmem [resolvable:$true] %s489_s23 }
 0x23a   : > { %p1742_p11 = scmp.ne.s32.totalorder %s462_s3, %s1741_s9  ;;  %p1744_p12 = scmp.lt.u32.totalorder %s462_s3, %s2776_s1 }
 0x23b   : > { %p1745_p13 = scmp.lt.u32.totalorder %s2180_s0, %s1741_s9  ;;  %p1747_p1 = scmp.lt.u32.totalorder %s1741_s9, %s462_s3 }
 0x23d   : > { %p1746_p0 = por %p1745_p13, %p1744_p12 }
 0x23f   : > { %p1748_p2 = por %p1747_p1, %p1746_p0 }
 0x241   : > { %p1749_p3 = pnand %p1748_p2, %p1742_p11 }
 0x243   : > { %1752 = shalt.err (!%p1749_p3)  }
 0x244   : > { %s1753_s18 = scalar_lea.vmem %s473_s7, 16  ;;  %p1758_p5 = scmp.lt.s32.totalorder %s473_s7, %s2165_s5 }
 0x245   : > { %p1754_p4 = scmp.ne.s32.totalorder %s473_s7, %s1753_s18  ;;  %p1759_p6 = scmp.lt.s32.totalorder %s2189_s4, %s1753_s18 }
 0x247   : > { %p1760_p8 = por %p1759_p6, %p1758_p5 }
 0x249   : > { %p1761_p10 = pnand %p1760_p8, %p1754_p4 }
 0x24b   : > { %1764 = shalt.err (!%p1761_p10)  }
 0x24c   : > { %475 = dma.hbm_to_vmem [thread:$0]  %s462_s3, 16, %s473_s7, [#allocation3 + $0x18] }
 0x24d   : > { %s2610_s24 = sld [smem:[#allocation5 + %s493_s10]]  ;;  %s1044_s13 = sshll.u32 %s2595_s28, 4 }
 0x24e   : > { %s2082_s16 = smov [#allocation2 + $0x1a]   ;;  %s479_s17 = scalar_lea.hbm %s2776_s1, %s1044_s13 }
 0x24f   : > { %s506_s12 = sshll.u32 %s2082_s16, 4  ;;  %s1765_s14 = scalar_lea.hbm %s479_s17, 16  ;;  %s2616_s12 = int_to_ptr.vmem [resolvable:$true] %s506_s12 }
 0x250   : > { %p1766_p11 = scmp.ne.s32.totalorder %s479_s17, %s1765_s14  ;;  %p1768_p12 = scmp.lt.u32.totalorder %s479_s17, %s2776_s1 }
 0x251   : > { %p1769_p13 = scmp.lt.u32.totalorder %s2180_s0, %s1765_s14  ;;  %p1771_p1 = scmp.lt.u32.totalorder %s1765_s14, %s479_s17 }
 0x253   : > { %p1770_p0 = por %p1769_p13, %p1768_p12 }
 0x255   : > { %p1772_p2 = por %p1771_p1, %p1770_p0 }
 0x257   : > { %p1773_p3 = pnand %p1772_p2, %p1766_p11 }
 0x259   : > { %1776 = shalt.err (!%p1773_p3)  }
 0x25a   : > { %s1777_s7 = scalar_lea.vmem %s2602_s23, 16  ;;  %p1782_p5 = scmp.lt.s32.totalorder %s2602_s23, %s2165_s5 }
 0x25b   : > { %p1778_p4 = scmp.ne.s32.totalorder %s2602_s23, %s1777_s7  ;;  %p1783_p6 = scmp.lt.s32.totalorder %s2189_s4, %s1777_s7 }
 0x25d   : > { %p1784_p8 = por %p1783_p6, %p1782_p5 }
 0x25f   : > { %p1785_p10 = pnand %p1784_p8, %p1778_p4 }
 0x261   : > { %1788 = shalt.err (!%p1785_p10)  }
 0x262   : > { %492 = dma.hbm_to_vmem [thread:$0]  %s479_s17, 16, %s2602_s23, [#allocation3 + $0x19] }
 0x263   : > { %s510_s28 = sadd.s32 27, %s2157_s29  ;;  %s2083_s3 = smov [#allocation2 + $0x1b]  }
 0x264   : > { %s2629_s10 = sld [smem:[#allocation5 + %s510_s28]]  ;;  %s523_s15 = sshll.u32 %s2083_s3, 4  ;;  %s2632_s15 = int_to_ptr.vmem [resolvable:$true] %s523_s15 }
 0x265   : > { %s1045_s18 = sshll.u32 %s2610_s24, 4  ;;  %s527_s8 = sadd.s32 28, %s2157_s29 }
 0x266   : > { %s496_s11 = scalar_lea.hbm %s2776_s1, %s1045_s18 }
 0x267   : > { %s1789_s14 = scalar_lea.hbm %s496_s11, 16  ;;  %p1792_p12 = scmp.lt.u32.totalorder %s496_s11, %s2776_s1 }
 0x268   : > { %p1790_p11 = scmp.ne.s32.totalorder %s496_s11, %s1789_s14  ;;  %p1793_p13 = scmp.lt.u32.totalorder %s2180_s0, %s1789_s14 }
 0x269   : > { %p1795_p1 = scmp.lt.u32.totalorder %s1789_s14, %s496_s11 }
 0x26a   : > { %p1794_p0 = por %p1793_p13, %p1792_p12 }
 0x26c   : > { %p1796_p2 = por %p1795_p1, %p1794_p0 }
 0x26e   : > { %p1797_p3 = pnand %p1796_p2, %p1790_p11 }
 0x270   : > { %1800 = shalt.err (!%p1797_p3)  }
 0x271   : > { %s1801_s23 = scalar_lea.vmem %s2616_s12, 16  ;;  %p1806_p5 = scmp.lt.s32.totalorder %s2616_s12, %s2165_s5 }
 0x272   : > { %p1802_p4 = scmp.ne.s32.totalorder %s2616_s12, %s1801_s23  ;;  %p1807_p6 = scmp.lt.s32.totalorder %s2189_s4, %s1801_s23 }
 0x274   : > { %p1808_p8 = por %p1807_p6, %p1806_p5 }
 0x276   : > { %p1809_p10 = pnand %p1808_p8, %p1802_p4 }
 0x278   : > { %1812 = shalt.err (!%p1809_p10)  }
 0x279   : > { %509 = dma.hbm_to_vmem [thread:$0]  %s496_s11, 16, %s2616_s12, [#allocation3 + $0x1a] }
 0x27a   : > { %s2648_s24 = sld [smem:[#allocation5 + %s527_s8]]  ;;  %s2084_s17 = smov [#allocation2 + $0x1c]  }
 0x27b   : > { %s540_s7 = sshll.u32 %s2084_s17, 4  ;;  %s544_s28 = sadd.s32 29, %s2157_s29  ;;  %s2652_s7 = int_to_ptr.vmem [resolvable:$true] %s540_s7 }
 0x27c   : > { %s1046_s3 = sshll.u32 %s2629_s10, 4  ;;  %s2657_s14 = sld [smem:[#allocation5 + %s544_s28]] }
 0x27d   : > { %s513_s16 = scalar_lea.hbm %s2776_s1, %s1046_s3 }
 0x27e   : > { %s1813_s9 = scalar_lea.hbm %s513_s16, 16  ;;  %p1816_p12 = scmp.lt.u32.totalorder %s513_s16, %s2776_s1 }
 0x27f   : > { %p1814_p11 = scmp.ne.s32.totalorder %s513_s16, %s1813_s9  ;;  %p1817_p13 = scmp.lt.u32.totalorder %s2180_s0, %s1813_s9 }
 0x280   : > { %p1819_p1 = scmp.lt.u32.totalorder %s1813_s9, %s513_s16 }
 0x281   : > { %p1818_p0 = por %p1817_p13, %p1816_p12 }
 0x283   : > { %p1820_p2 = por %p1819_p1, %p1818_p0 }
 0x285   : > { %p1821_p3 = pnand %p1820_p2, %p1814_p11 }
 0x287   : > { %1824 = shalt.err (!%p1821_p3)  }
 0x288   : > { %s1825_s12 = scalar_lea.vmem %s2632_s15, 16  ;;  %p1830_p5 = scmp.lt.s32.totalorder %s2632_s15, %s2165_s5 }
 0x289   : > { %p1826_p4 = scmp.ne.s32.totalorder %s2632_s15, %s1825_s12  ;;  %p1831_p6 = scmp.lt.s32.totalorder %s2189_s4, %s1825_s12 }
 0x28b   : > { %p1832_p8 = por %p1831_p6, %p1830_p5 }
 0x28d   : > { %p1833_p10 = pnand %p1832_p8, %p1826_p4 }
 0x28f   : > { %1836 = shalt.err (!%p1833_p10)  }
 0x290   : > { %526 = dma.hbm_to_vmem [thread:$0]  %s513_s16, 16, %s2632_s15, [#allocation3 + $0x1b] }
 0x291   : > { %s561_s10 = sadd.s32 30, %s2157_s29  ;;  %s1047_s11 = sshll.u32 %s2648_s24, 4 }
 0x292   : > { %s2085_s8 = smov [#allocation2 + $0x1d]   ;;  %s530_s18 = scalar_lea.hbm %s2776_s1, %s1047_s11 }
 0x293   : > { %s557_s17 = sshll.u32 %s2085_s8, 4  ;;  %s1837_s13 = scalar_lea.hbm %s530_s18, 16  ;;  %s2674_s17 = int_to_ptr.vmem [resolvable:$true] %s557_s17 }
 0x294   : > { %p1838_p11 = scmp.ne.s32.totalorder %s530_s18, %s1837_s13  ;;  %p1840_p12 = scmp.lt.u32.totalorder %s530_s18, %s2776_s1 }
 0x295   : > { %p1841_p13 = scmp.lt.u32.totalorder %s2180_s0, %s1837_s13  ;;  %p1843_p1 = scmp.lt.u32.totalorder %s1837_s13, %s530_s18 }
 0x297   : > { %p1842_p0 = por %p1841_p13, %p1840_p12 }
 0x299   : > { %p1844_p2 = por %p1843_p1, %p1842_p0 }
 0x29b   : > { %p1845_p3 = pnand %p1844_p2, %p1838_p11 }
 0x29d   : > { %1848 = shalt.err (!%p1845_p3)  }
 0x29e   : > { %s1849_s15 = scalar_lea.vmem %s2652_s7, 16  ;;  %p1854_p5 = scmp.lt.s32.totalorder %s2652_s7, %s2165_s5 }
 0x29f   : > { %p1850_p4 = scmp.ne.s32.totalorder %s2652_s7, %s1849_s15  ;;  %p1855_p6 = scmp.lt.s32.totalorder %s2189_s4, %s1849_s15 }
 0x2a1   : > { %p1856_p8 = por %p1855_p6, %p1854_p5 }
 0x2a3   : > { %p1857_p10 = pnand %p1856_p8, %p1850_p4 }
 0x2a5   : > { %1860 = shalt.err (!%p1857_p10)  }
 0x2a6   : > { %543 = dma.hbm_to_vmem [thread:$0]  %s530_s18, 16, %s2652_s7, [#allocation3 + $0x1c] }
 0x2a7   : > { %s1048_s24 = sshll.u32 %s2657_s14, 4  ;;  %s562_s16 = sld [smem:[#allocation5 + %s561_s10]] }
 0x2a8   : > { %s547_s11 = scalar_lea.hbm %s2776_s1, %s1048_s24 }
 0x2a9   : > { %s1861_s8 = scalar_lea.hbm %s547_s11, 16  ;;  %p1864_p12 = scmp.lt.u32.totalorder %s547_s11, %s2776_s1 }
 0x2aa   : > { %p1862_p11 = scmp.ne.s32.totalorder %s547_s11, %s1861_s8  ;;  %p1865_p13 = scmp.lt.u32.totalorder %s2180_s0, %s1861_s8 }
 0x2ab   : > { %p1867_p1 = scmp.lt.u32.totalorder %s1861_s8, %s547_s11 }
 0x2ac   : > { %p1866_p0 = por %p1865_p13, %p1864_p12 }
 0x2ae   : > { %p1868_p2 = por %p1867_p1, %p1866_p0 }
 0x2b0   : > { %p1869_p3 = pnand %p1868_p2, %p1862_p11 }
 0x2b2   : > { %1872 = shalt.err (!%p1869_p3)  }
 0x2b3   : > { %s1873_s7 = scalar_lea.vmem %s2674_s17, 16  ;;  %p1878_p5 = scmp.lt.s32.totalorder %s2674_s17, %s2165_s5 }
 0x2b4   : > { %p1874_p4 = scmp.ne.s32.totalorder %s2674_s17, %s1873_s7  ;;  %p1879_p6 = scmp.lt.s32.totalorder %s2189_s4, %s1873_s7 }
 0x2b6   : > { %p1880_p8 = por %p1879_p6, %p1878_p5 }
 0x2b8   : > { %p1881_p10 = pnand %p1880_p8, %p1874_p4 }
 0x2ba   : > { %1884 = shalt.err (!%p1881_p10)  }
 0x2bb   : > { %560 = dma.hbm_to_vmem [thread:$0]  %s547_s11, 16, %s2674_s17, [#allocation3 + $0x1d] }
 0x2bc   : > { %s2086_s14 = smov [#allocation2 + $0x1e]   ;;  %s578_s18 = sadd.s32 31, %s2157_s29 }
 0x2bd   : > { %s574_s10 = sshll.u32 %s2086_s14, 4  ;;  %s579_s13 = sld [smem:[#allocation5 + %s578_s18]]  ;;  %s575_s10 = int_to_ptr.vmem [resolvable:$true] %s574_s10 }
 0x2be   : > { %s1049_s9 = sshll.u32 %s562_s16, 4  ;;  %s2087_s6 = smov [#allocation2 + $0x1f]  }
 0x2bf   : > { %s591_s15 = sshll.u32 %s2087_s6, 4  ;;  %s564_s12 = scalar_lea.hbm %s2776_s1, %s1049_s9  ;;  %s592_s15 = int_to_ptr.vmem [resolvable:$true] %s591_s15 }
 0x2c0   : > { %s1885_s8 = scalar_lea.hbm %s564_s12, 16  ;;  %p1888_p12 = scmp.lt.u32.totalorder %s564_s12, %s2776_s1 }
 0x2c1   : > { %p1886_p11 = scmp.ne.s32.totalorder %s564_s12, %s1885_s8  ;;  %p1889_p13 = scmp.lt.u32.totalorder %s2180_s0, %s1885_s8 }
 0x2c2   : > { %p1891_p1 = scmp.lt.u32.totalorder %s1885_s8, %s564_s12 }
 0x2c3   : > { %p1890_p0 = por %p1889_p13, %p1888_p12 }
 0x2c5   : > { %p1892_p2 = por %p1891_p1, %p1890_p0 }
 0x2c7   : > { %p1893_p3 = pnand %p1892_p2, %p1886_p11 }
 0x2c9   : > { %1896 = shalt.err (!%p1893_p3)  }
 0x2ca   : > { %s1897_s29 = scalar_lea.vmem %s575_s10, 16  ;;  %p1902_p5 = scmp.lt.s32.totalorder %s575_s10, %s2165_s5 }
 0x2cb   : > { %p1898_p4 = scmp.ne.s32.totalorder %s575_s10, %s1897_s29  ;;  %p1903_p6 = scmp.lt.s32.totalorder %s2189_s4, %s1897_s29 }
 0x2cd   : > { %p1904_p8 = por %p1903_p6, %p1902_p5 }
 0x2cf   : > { %p1905_p10 = pnand %p1904_p8, %p1898_p4 }
 0x2d1   : > { %1908 = shalt.err (!%p1905_p10)  }
 0x2d2   : > { %577 = dma.hbm_to_vmem [thread:$0]  %s564_s12, 16, %s575_s10, [#allocation3 + $0x1e] }
 0x2d3   : > { %s1050_s17 = sshll.u32 %s579_s13, 4 }
 0x2d4   : > { %s581_s7 = scalar_lea.hbm %s2776_s1, %s1050_s17 }
 0x2d5   : > { %s1909_s14 = scalar_lea.hbm %s581_s7, 16  ;;  %p1912_p12 = scmp.lt.u32.totalorder %s581_s7, %s2776_s1 }
 0x2d6   : > { %p1910_p11 = scmp.ne.s32.totalorder %s581_s7, %s1909_s14  ;;  %p1913_p13 = scmp.lt.u32.totalorder %s2180_s0, %s1909_s14 }
 0x2d7   : > { %p1915_p1 = scmp.lt.u32.totalorder %s1909_s14, %s581_s7 }
 0x2d8   : > { %p1914_p0 = por %p1913_p13, %p1912_p12 }
 0x2da   : > { %p1916_p2 = por %p1915_p1, %p1914_p0 }
 0x2dc   : > { %p1917_p3 = pnand %p1916_p2, %p1910_p11 }
 0x2de   : > { %1920 = shalt.err (!%p1917_p3)  }
 0x2df   : > { %s1921_s10 = scalar_lea.vmem %s592_s15, 16  ;;  %p1926_p5 = scmp.lt.s32.totalorder %s592_s15, %s2165_s5 }
 0x2e0   : > { %p1922_p4 = scmp.ne.s32.totalorder %s592_s15, %s1921_s10  ;;  %p1927_p6 = scmp.lt.s32.totalorder %s2189_s4, %s1921_s10 }
 0x2e2   : > { %p1928_p8 = por %p1927_p6, %p1926_p5 }
 0x2e4   : > { %p1929_p10 = pnand %p1928_p8, %p1922_p4 }
 0x2e6   : > { %1932 = shalt.err (!%p1929_p10)  }
 0x2e7   : > { %594 = dma.hbm_to_vmem [thread:$0]  %s581_s7, 16, %s592_s15, [#allocation3 + $0x1f] }
 0x2e8   : > { %s2720_s13 = scalar_lea.vmem [#allocation6], %s2161_s30 }
 0x2e9   : > { %1975 = dma.done.wait [#allocation3], 16 }
 0x2ea   : > { %1976 = vsyncadd [#allocation3], 4294967280 }
 0x2eb   : > { %1977 = dma.done.wait [#allocation3 + $0x1], 16 }
 0x2ec   : > { %1978 = vsyncadd [#allocation3 + $0x1], 4294967280 }
 0x2ed   : > { %1979 = dma.done.wait [#allocation3 + $0x2], 16 }
 0x2ee   : > { %1980 = vsyncadd [#allocation3 + $0x2], 4294967280 }
 0x2ef   : > { %1981 = dma.done.wait [#allocation3 + $0x3], 16 }
 0x2f0   : > { %1982 = vsyncadd [#allocation3 + $0x3], 4294967280 }
 0x2f1   : > { %1983 = dma.done.wait [#allocation3 + $0x4], 16 }
 0x2f2   : > { %1984 = vsyncadd [#allocation3 + $0x4], 4294967280 }
 0x2f3   : > { %1985 = dma.done.wait [#allocation3 + $0x5], 16 }
 0x2f4   : > { %1986 = vsyncadd [#allocation3 + $0x5], 4294967280 }
 0x2f5   : > { %1987 = dma.done.wait [#allocation3 + $0x6], 16 }
 0x2f6   : > { %1988 = vsyncadd [#allocation3 + $0x6], 4294967280 }
 0x2f7   : > { %1989 = dma.done.wait [#allocation3 + $0x7], 16 }
 0x2f8   : > { %1990 = vsyncadd [#allocation3 + $0x7], 4294967280 }
 0x2f9   : > { %1991 = dma.done.wait [#allocation3 + $0x8], 16 }
 0x2fa   : > { %1992 = vsyncadd [#allocation3 + $0x8], 4294967280 }
 0x2fb   : > { %1993 = dma.done.wait [#allocation3 + $0x9], 16 }
 0x2fc   : > { %1994 = vsyncadd [#allocation3 + $0x9], 4294967280 }
 0x2fd   : > { %1995 = dma.done.wait [#allocation3 + $0xa], 16 }
 0x2fe   : > { %1996 = vsyncadd [#allocation3 + $0xa], 4294967280 }
 0x2ff   : > { %1997 = dma.done.wait [#allocation3 + $0xb], 16 }
 0x300   : > { %1998 = vsyncadd [#allocation3 + $0xb], 4294967280 }
 0x301   : > { %1999 = dma.done.wait [#allocation3 + $0xc], 16 }
 0x302   : > { %2000 = vsyncadd [#allocation3 + $0xc], 4294967280 }
 0x303   : > { %2001 = dma.done.wait [#allocation3 + $0xd], 16 }
 0x304   : > { %2002 = vsyncadd [#allocation3 + $0xd], 4294967280 }
 0x305   : > { %2003 = dma.done.wait [#allocation3 + $0xe], 16 }
 0x306   : > { %2004 = vsyncadd [#allocation3 + $0xe], 4294967280 }
 0x307   : > { %2005 = dma.done.wait [#allocation3 + $0xf], 16 }
 0x308   : > { %2006 = vsyncadd [#allocation3 + $0xf], 4294967280 }
 0x309   : > { %2007 = dma.done.wait [#allocation3 + $0x10], 16 }
 0x30a   : > { %2008 = vsyncadd [#allocation3 + $0x10], 4294967280 }
 0x30b   : > { %2009 = dma.done.wait [#allocation3 + $0x11], 16 }
 0x30c   : > { %2010 = vsyncadd [#allocation3 + $0x11], 4294967280 }
 0x30d   : > { %2011 = dma.done.wait [#allocation3 + $0x12], 16 }
 0x30e   : > { %2012 = vsyncadd [#allocation3 + $0x12], 4294967280 }
 0x30f   : > { %2013 = dma.done.wait [#allocation3 + $0x13], 16 }
 0x310   : > { %2014 = vsyncadd [#allocation3 + $0x13], 4294967280 }
 0x311   : > { %2015 = dma.done.wait [#allocation3 + $0x14], 16 }
 0x312   : > { %2016 = vsyncadd [#allocation3 + $0x14], 4294967280 }
 0x313   : > { %2017 = dma.done.wait [#allocation3 + $0x15], 16 }
 0x314   : > { %2018 = vsyncadd [#allocation3 + $0x15], 4294967280 }
 0x315   : > { %2019 = dma.done.wait [#allocation3 + $0x16], 16 }
 0x316   : > { %2020 = vsyncadd [#allocation3 + $0x16], 4294967280 }
 0x317   : > { %2021 = dma.done.wait [#allocation3 + $0x17], 16 }
 0x318   : > { %2022 = vsyncadd [#allocation3 + $0x17], 4294967280 }
 0x319   : > { %2023 = dma.done.wait [#allocation3 + $0x18], 16 }
 0x31a   : > { %2024 = vsyncadd [#allocation3 + $0x18], 4294967280 }
 0x31b   : > { %2025 = dma.done.wait [#allocation3 + $0x19], 16 }
 0x31c   : > { %2026 = vsyncadd [#allocation3 + $0x19], 4294967280 }
 0x31d   : > { %2027 = dma.done.wait [#allocation3 + $0x1a], 16 }
 0x31e   : > { %2028 = vsyncadd [#allocation3 + $0x1a], 4294967280 }
 0x31f   : > { %2029 = dma.done.wait [#allocation3 + $0x1b], 16 }
 0x320   : > { %2030 = vsyncadd [#allocation3 + $0x1b], 4294967280 }
 0x321   : > { %2031 = dma.done.wait [#allocation3 + $0x1c], 16 }
 0x322   : > { %2032 = vsyncadd [#allocation3 + $0x1c], 4294967280 }
 0x323   : > { %2033 = dma.done.wait [#allocation3 + $0x1d], 16 }
 0x324   : > { %2034 = vsyncadd [#allocation3 + $0x1d], 4294967280 }
 0x325   : > { %2035 = dma.done.wait [#allocation3 + $0x1e], 16 }
 0x326   : > { %2036 = vsyncadd [#allocation3 + $0x1e], 4294967280 }
 0x327   : > { %2037 = dma.done.wait [#allocation3 + $0x1f], 16 }
 0x328   : > { %2038 = vsyncadd [#allocation3 + $0x1f], 4294967280  ;;  %s1088_s30 = sshll.u32 %s2053_s21, 9  ;;  %s681_s5 = sshll.u32 %s2720_s13, 4  ;;  %v659_v0 = vld [vmem:[#allocation2] sm:$0xff]  ;;  %v660_v1 = vld [vmem:[#allocation2 + $0x8] sm:$0xff]  ;;  %s2729_s5 = int_to_ptr.vmem [resolvable:$true] %s681_s5 }
 0x329   : > { %s2727_s6 = scalar_lea.hbm %s2777_s2, %s1088_s30  ;;  %v661_v2 = vld [vmem:[#allocation2 + $0x10] sm:$0xff]  ;;  %663 = vst [vmem:[%s2720_s13] sm:$0xff] %v659_v0  ;;  %664 = vst [vmem:[%s2720_s13 + $0x8] sm:$0xff] %v660_v1  ;;  %v662_v3 = vld [vmem:[#allocation2 + $0x18] sm:$0xff]  ;;  %s2781_s15 = sand.u32 1, %s2049_s20  }
 0x32a   : > { %665 = vst [vmem:[%s2720_s13 + $0x10] sm:$0xff] %v661_v2  ;;  %666 = vst [vmem:[%s2720_s13 + $0x18] sm:$0xff] %v662_v3  ;;  %s2737_s24 = scalar_lea.sflag [#allocation7], %s2781_s15  ;;  %s1933_s23 = scalar_lea.vmem %s2729_s5, 512 }
 0x32b   : > { %p1934_p11 = scmp.ne.s32.totalorder %s2729_s5, %s1933_s23  ;;  %s2088_s12 = smov [#allocation6]  }
 0x32c   : > { %s1937_s8 = sshll.u32 %s2088_s12, 4  ;;  %s1938_s8 = int_to_ptr.vmem [resolvable:$false] %s1937_s8 }
 0x32d   : > { %p1935_p12 = pnand %p1934_p11, %p2146_p7  ;;  %s1939_s28 = scalar_lea.vmem %s1938_s8, 1024 }
 0x32e   : > { %p1940_p0 = scmp.lt.s32.totalorder %s2729_s5, %s1938_s8  ;;  %p1941_p1 = scmp.lt.s32.totalorder %s1939_s28, %s1933_s23 }
 0x32f   : > { %p1936_p13 = pneg %p1935_p12 }
 0x330   : > { %p1942_p2 = por %p1941_p1, %p1940_p0 }
 0x332   : > { %p1943_p3 = pnand %p1942_p2, %p1936_p13 }
 0x334   : > { %1946 = shalt.err (!%p1943_p3)
}
 0x335   : > { %s1947_s3 = scalar_lea.hbm %s2727_s6, 512  ;;  %s1951_s16 = scalar_lea.hbm %s2777_s2, 4096 }
 0x336   : > { %p1948_p4 = scmp.ne.s32.totalorder %s2727_s6, %s1947_s3  ;;  %p1952_p8 = scmp.lt.u32.totalorder %s2727_s6, %s2777_s2 }
 0x337   : > { %p1953_p10 = scmp.lt.u32.totalorder %s1951_s16, %s1947_s3  ;;  %p1955_p12 = scmp.lt.u32.totalorder %s1947_s3, %s2727_s6 }
 0x338   : > { %p1949_p5 = pnand %p1948_p4, %p2146_p7 }
 0x339   : > { %p1954_p11 = por %p1953_p10, %p1952_p8 }
 0x33a   : > { %p1950_p6 = pneg %p1949_p5 }
 0x33b   : > { %p1956_p13 = por %p1955_p12, %p1954_p11 }
 0x33d   : > { %p1957_p0 = pnand %p1956_p13, %p1950_p6 }
 0x33f   : > { %1960 = shalt.err (!%p1957_p0)
}
 0x340   : > { %s2089_s14 = smov 128   ;;  %s2090_s18 = smov 8  }
 0x341   : > { %1089 = dma.vmem_to_hbm [thread:$0]  (%p2146_p7), %s2729_s5, 512, %s2727_s6, %s2737_s24, %s2089_s14, %s2089_s14, %s2090_s18  }
 0x342 PF: > { %p1095_p1 = scmp.ge.s32.totalorder %s2053_s21, 1  ;;  %s696_s9 = sand.u32 1, %s2045_s19  }
 0x343   : > { %s697_s10 = scalar_lea.sflag [#allocation7], %s696_s9 }
 0x344   : > { %p1092_p2 = pnand %p1095_p1, %p2150_p9 }
 0x346   : > { %2040 = dma.done.wait (!%p1092_p2), %s697_s10, 512  }
 0x347   : > { %2042 = vsyncadd (!%p1092_p2), %s697_s10, 4294966784  ;;  %p16_p3 = scmp.ge.s32.totalorder %s2135_s22, 9   ;;  %s2782_s19 = smov %s2049_s20 }
 0x348   : > { %s2783_s20 = smov %s2144_s25  ;;  %s2784_s21 = smov %s2135_s22 }
 0x349   :  { %18 = sbr.rel (!%p16_p3) target bundleno = 15 (0xf), region = 297 }
 0x350   :  { %702 = vsyncpa [#allocation7], 1 }
 0x351   :  { %704 = vsyncpa [#allocation7 + $0x1], 1 }
 0x352   :  { %705 = vsyncmov [#allocation3] }
 0x355   :  { %s706_s21 = vpop.sfrf %705 }
 0x356   :  { %p1056_p7 = scmp.ne.s32.totalorder %s706_s21, 0 }
 0x358   :  { %710 = shalt.err (%p1056_p7)  }
 0x359   :  { %712 = vsyncmov [#allocation3 + $0x1] }
 0x35c   :  { %s713_s26 = vpop.sfrf %712 }
 0x35d   :  { %p1057_p9 = scmp.ne.s32.totalorder %s713_s26, 0 }
 0x35f   :  { %717 = shalt.err (%p1057_p9)  }
 0x360   :  { %719 = vsyncmov [#allocation3 + $0x2] }
 0x363   :  { %s720_s27 = vpop.sfrf %719 }
 0x364   :  { %p1058_p4 = scmp.ne.s32.totalorder %s720_s27, 0 }
 0x366   :  { %724 = shalt.err (%p1058_p4)  }
 0x367   :  { %726 = vsyncmov [#allocation3 + $0x3] }
 0x36a   :  { %s727_s13 = vpop.sfrf %726 }
 0x36b   :  { %p1059_p5 = scmp.ne.s32.totalorder %s727_s13, 0 }
 0x36d   :  { %731 = shalt.err (%p1059_p5)  }
 0x36e   :  { %733 = vsyncmov [#allocation3 + $0x4] }
 0x371   :  { %s734_s22 = vpop.sfrf %733 }
 0x372   :  { %p1060_p6 = scmp.ne.s32.totalorder %s734_s22, 0 }
 0x374   :  { %738 = shalt.err (%p1060_p6)  }
 0x375   :  { %740 = vsyncmov [#allocation3 + $0x5] }
 0x378   :  { %s741_s1 = vpop.sfrf %740 }
 0x379   :  { %p1061_p8 = scmp.ne.s32.totalorder %s741_s1, 0 }
 0x37b   :  { %745 = shalt.err (%p1061_p8)  }
 0x37c   :  { %747 = vsyncmov [#allocation3 + $0x6] }
 0x37f   :  { %s748_s2 = vpop.sfrf %747 }
 0x380   :  { %p1062_p10 = scmp.ne.s32.totalorder %s748_s2, 0 }
 0x382   :  { %752 = shalt.err (%p1062_p10)  }
 0x383   :  { %754 = vsyncmov [#allocation3 + $0x7] }
 0x386   :  { %s755_s19 = vpop.sfrf %754 }
 0x387   :  { %p1063_p11 = scmp.ne.s32.totalorder %s755_s19, 0 }
 0x389   :  { %759 = shalt.err (%p1063_p11)  }
 0x38a   :  { %761 = vsyncmov [#allocation3 + $0x8] }
 0x38d   :  { %s762_s20 = vpop.sfrf %761 }
 0x38e   :  { %p1064_p12 = scmp.ne.s32.totalorder %s762_s20, 0 }
 0x390   :  { %766 = shalt.err (%p1064_p12)  }
 0x391   :  { %768 = vsyncmov [#allocation3 + $0x9] }
 0x394   :  { %s769_s25 = vpop.sfrf %768 }
 0x395   :  { %p1065_p13 = scmp.ne.s32.totalorder %s769_s25, 0 }
 0x397   :  { %773 = shalt.err (%p1065_p13)  }
 0x398   :  { %775 = vsyncmov [#allocation3 + $0xa] }
 0x39b   :  { %s776_s30 = vpop.sfrf %775 }
 0x39c   :  { %p1066_p0 = scmp.ne.s32.totalorder %s776_s30, 0 }
 0x39e   :  { %780 = shalt.err (%p1066_p0)  }
 0x39f   :  { %782 = vsyncmov [#allocation3 + $0xb] }
 0x3a2   :  { %s783_s5 = vpop.sfrf %782 }
 0x3a3   :  { %p1067_p1 = scmp.ne.s32.totalorder %s783_s5, 0 }
 0x3a5   :  { %787 = shalt.err (%p1067_p1)  }
 0x3a6   :  { %789 = vsyncmov [#allocation3 + $0xc] }
 0x3a9   :  { %s790_s0 = vpop.sfrf %789 }
 0x3aa   :  { %p1068_p2 = scmp.ne.s32.totalorder %s790_s0, 0 }
 0x3ac   :  { %794 = shalt.err (%p1068_p2)  }
 0x3ad   :  { %796 = vsyncmov [#allocation3 + $0xd] }
 0x3b0   :  { %s797_s4 = vpop.sfrf %796 }
 0x3b1   :  { %p1069_p3 = scmp.ne.s32.totalorder %s797_s4, 0 }
 0x3b3   :  { %801 = shalt.err (%p1069_p3)  }
 0x3b4   :  { %803 = vsyncmov [#allocation3 + $0xe] }
 0x3b7   :  { %s804_s6 = vpop.sfrf %803 }
 0x3b8   :  { %p1070_p7 = scmp.ne.s32.totalorder %s804_s6, 0 }
 0x3ba   :  { %808 = shalt.err (%p1070_p7)  }
 0x3bb   :  { %810 = vsyncmov [#allocation3 + $0xf] }
 0x3be   :  { %s811_s15 = vpop.sfrf %810 }
 0x3bf   :  { %p1071_p9 = scmp.ne.s32.totalorder %s811_s15, 0 }
 0x3c1   :  { %815 = shalt.err (%p1071_p9)  }
 0x3c2   :  { %817 = vsyncmov [#allocation3 + $0x10] }
 0x3c5   :  { %s818_s24 = vpop.sfrf %817 }
 0x3c6   :  { %p1072_p4 = scmp.ne.s32.totalorder %s818_s24, 0 }
 0x3c8   :  { %822 = shalt.err (%p1072_p4)  }
 0x3c9   :  { %824 = vsyncmov [#allocation3 + $0x11] }
 0x3cc   :  { %s825_s23 = vpop.sfrf %824 }
 0x3cd   :  { %p1073_p5 = scmp.ne.s32.totalorder %s825_s23, 0 }
 0x3cf   :  { %829 = shalt.err (%p1073_p5)  }
 0x3d0   :  { %831 = vsyncmov [#allocation3 + $0x12] }
 0x3d3   :  { %s832_s12 = vpop.sfrf %831 }
 0x3d4   :  { %p1074_p6 = scmp.ne.s32.totalorder %s832_s12, 0 }
 0x3d6   :  { %836 = shalt.err (%p1074_p6)  }
 0x3d7   :  { %838 = vsyncmov [#allocation3 + $0x13] }
 0x3da   :  { %s839_s8 = vpop.sfrf %838 }
 0x3db   :  { %p1075_p8 = scmp.ne.s32.totalorder %s839_s8, 0 }
 0x3dd   :  { %843 = shalt.err (%p1075_p8)  }
 0x3de   :  { %845 = vsyncmov [#allocation3 + $0x14] }
 0x3e1   :  { %s846_s28 = vpop.sfrf %845 }
 0x3e2   :  { %p1076_p10 = scmp.ne.s32.totalorder %s846_s28, 0 }
 0x3e4   :  { %850 = shalt.err (%p1076_p10)  }
 0x3e5   :  { %852 = vsyncmov [#allocation3 + $0x15] }
 0x3e8   :  { %s853_s3 = vpop.sfrf %852 }
 0x3e9   :  { %p1077_p11 = scmp.ne.s32.totalorder %s853_s3, 0 }
 0x3eb   :  { %857 = shalt.err (%p1077_p11)  }
 0x3ec   :  { %859 = vsyncmov [#allocation3 + $0x16] }
 0x3ef   :  { %s860_s29 = vpop.sfrf %859 }
 0x3f0   :  { %p1078_p12 = scmp.ne.s32.totalorder %s860_s29, 0 }
 0x3f2   :  { %864 = shalt.err (%p1078_p12)  }
 0x3f3   :  { %866 = vsyncmov [#allocation3 + $0x17] }
 0x3f6   :  { %s867_s17 = vpop.sfrf %866 }
 0x3f7   :  { %p1079_p13 = scmp.ne.s32.totalorder %s867_s17, 0 }
 0x3f9   :  { %871 = shalt.err (%p1079_p13)  }
 0x3fa   :  { %873 = vsyncmov [#allocation3 + $0x18] }
 0x3fd   :  { %s874_s16 = vpop.sfrf %873 }
 0x3fe   :  { %p1080_p0 = scmp.ne.s32.totalorder %s874_s16, 0 }
 0x400   :  { %878 = shalt.err (%p1080_p0)  }
 0x401   :  { %880 = vsyncmov [#allocation3 + $0x19] }
 0x404   :  { %s881_s11 = vpop.sfrf %880 }
 0x405   :  { %p1081_p1 = scmp.ne.s32.totalorder %s881_s11, 0 }
 0x407   :  { %885 = shalt.err (%p1081_p1)  }
 0x408   :  { %887 = vsyncmov [#allocation3 + $0x1a] }
 0x40b   :  { %s888_s7 = vpop.sfrf %887 }
 0x40c   :  { %p1082_p2 = scmp.ne.s32.totalorder %s888_s7, 0 }
 0x40e   :  { %892 = shalt.err (%p1082_p2)  }
 0x40f   :  { %894 = vsyncmov [#allocation3 + $0x1b] }
 0x412   :  { %s895_s14 = vpop.sfrf %894 }
 0x413   :  { %p1083_p3 = scmp.ne.s32.totalorder %s895_s14, 0 }
 0x415   :  { %899 = shalt.err (%p1083_p3)  }
 0x416   :  { %901 = vsyncmov [#allocation3 + $0x1c] }
 0x419   :  { %s902_s18 = vpop.sfrf %901 }
 0x41a   :  { %p1084_p7 = scmp.ne.s32.totalorder %s902_s18, 0 }
 0x41c   :  { %906 = shalt.err (%p1084_p7)  }
 0x41d   :  { %908 = vsyncmov [#allocation3 + $0x1d] }
 0x420   :  { %s909_s9 = vpop.sfrf %908 }
 0x421   :  { %p1085_p9 = scmp.ne.s32.totalorder %s909_s9, 0 }
 0x423   :  { %913 = shalt.err (%p1085_p9)  }
 0x424   :  { %915 = vsyncmov [#allocation3 + $0x1e] }
 0x427   :  { %s916_s10 = vpop.sfrf %915 }
 0x428   :  { %p1086_p4 = scmp.ne.s32.totalorder %s916_s10, 0 }
 0x42a   :  { %920 = shalt.err (%p1086_p4)  }
 0x42b   :  { %922 = vsyncmov [#allocation3 + $0x1f] }
 0x42e   :  { %s923_s21 = vpop.sfrf %922 }
 0x42f   :  { %p1087_p5 = scmp.ne.s32.totalorder %s923_s21, 0 }
 0x431   :  { %927 = shalt.err (%p1087_p5)  }

</bundles_post_ra>
